<compile_context>
chip_gen: v5e
topology: v5e:2x2
jax: 0.10.0
libtpu: 0.0.40
codegen_flags: <defaults>
</compile_context>

<pallas_src>
import functools

import jax
import jax.numpy as jnp
from jax.experimental import pallas as pl
from jax.experimental.pallas import tpu as pltpu


# ---------------------------------------------------------------------------
# Stage 1: conv1 (3x3, pad=1) + bn1 + ReLU, and shortcut 1x1 conv + shortcut_bn.
# One grid step = (batch b, rotation k); writes channel group k of both outputs.
# ---------------------------------------------------------------------------
def _stage1_kernel(x_ref, w1_ref, ws_ref, bn1_ref, sbn_ref,
                   out1_ref, short_ref, *, H, W, Cin):
    S = H * W
    x = x_ref[...].astype(jnp.float32)                       # (Cin, H+2, W+2)

    # im2col patch matrix (9*Cin, S) -> single MXU matmul.
    taps = [x[:, dh:dh + H, dw:dw + W].reshape(Cin, S)
            for dh in range(3) for dw in range(3)]
    patches = jnp.concatenate(taps, axis=0)
    conv = jnp.dot(w1_ref[...].astype(jnp.float32), patches,
                   preferred_element_type=jnp.float32)       # (C1, S)

    bn = bn1_ref[...].astype(jnp.float32)                    # (C1, 2) [scale, shift]
    out1_ref[...] = jnp.maximum(conv * bn[:, 0:1] + bn[:, 1:2],
                                0.0).astype(out1_ref.dtype)

    # Shortcut: 1x1 conv (no pad) on the interior; shortcut_bn folded in here.
    xin = x[:, 1:1 + H, 1:1 + W].reshape(Cin, S)
    sc = jnp.dot(ws_ref[...].astype(jnp.float32), xin,
                 preferred_element_type=jnp.float32)         # (C1, S)
    sb = sbn_ref[...].astype(jnp.float32)
    short_ref[...] = (sc * sb[:, 0:1] + sb[:, 1:2]).astype(short_ref.dtype)


def stage1(xrp, w1, ws, bn1, sbn):
    B, R, Cin, Hp, Wp = xrp.shape
    H, W = Hp - 2, Wp - 2
    S = H * W
    C1 = w1.shape[0]
    kernel = functools.partial(_stage1_kernel, H=H, W=W, Cin=Cin)
    return pl.pallas_call(
        kernel,
        out_shape=(jax.ShapeDtypeStruct((B, R, C1, S), xrp.dtype),
                   jax.ShapeDtypeStruct((B, R, C1, S), xrp.dtype)),
        grid=(B, R),
        in_specs=[
            pl.BlockSpec((None, None, Cin, Hp, Wp), lambda b, k: (b, k, 0, 0, 0)),
            pl.BlockSpec((C1, 9 * Cin), lambda b, k: (0, 0)),
            pl.BlockSpec((C1, Cin), lambda b, k: (0, 0)),
            pl.BlockSpec((None, C1, 2), lambda b, k: (k, 0, 0)),
            pl.BlockSpec((None, C1, 2), lambda b, k: (k, 0, 0)),
        ],
        out_specs=(
            pl.BlockSpec((None, None, C1, S), lambda b, k: (b, k, 0, 0)),
            pl.BlockSpec((None, None, C1, S), lambda b, k: (b, k, 0, 0)),
        ),
        compiler_params=pltpu.CompilerParams(
            dimension_semantics=("parallel", "parallel"),
            vmem_limit_bytes=32 * 1024 * 1024),
    )(xrp, w1, ws, bn1, sbn)


# ---------------------------------------------------------------------------
# Stage 2: conv2 (3x3, pad=1) + bn2 + SRM gate + residual add + final ReLU.
# One grid step = (batch b, rotation k); writes channel group k of the result.
# ---------------------------------------------------------------------------
def _stage2_kernel(u_ref, short_ref, w2_ref, bn2_ref, cfc_ref, srm_ref,
                   o_ref, *, H, W, Cm):
    S = H * W
    u = u_ref[...].astype(jnp.float32)                       # (planes, H+2, W+2)

    taps = [u[:, dh:dh + H, dw:dw + W].reshape(Cm, S)
            for dh in range(3) for dw in range(3)]
    patches = jnp.concatenate(taps, axis=0)                  # (9*planes, S)
    y = jnp.dot(w2_ref[...].astype(jnp.float32), patches,
                preferred_element_type=jnp.float32)          # (C1, S)

    bn = bn2_ref[...].astype(jnp.float32)                    # bn2 (eval mode)
    y = y * bn[:, 0:1] + bn[:, 1:2]

    # SRM: style pooling (mean + unbiased std, like torch.std) -> CFC -> BN -> gate.
    mean = jnp.mean(y, axis=1, keepdims=True)                # (C1, 1)
    var = jnp.sum((y - mean) ** 2, axis=1, keepdims=True) / (S - 1)
    std = jnp.sqrt(var)
    cfc = cfc_ref[...].astype(jnp.float32)                   # (C1, 2) [w_mean, w_std]
    z = cfc[:, 0:1] * mean + cfc[:, 1:2] * std
    sb = srm_ref[...].astype(jnp.float32)
    z = z * sb[:, 0:1] + sb[:, 1:2]
    g = jax.nn.sigmoid(z)
    y = y * g

    # Residual (shortcut_bn already folded in stage 1) + final ReLU.
    out = y + short_ref[...].astype(jnp.float32)
    o_ref[...] = jnp.maximum(out, 0.0).astype(o_ref.dtype)


def stage2(urp, short, w2, bn2, cfc, srm_bn):
    B, R, Cm, Hp, Wp = urp.shape
    H, W = Hp - 2, Wp - 2
    S = H * W
    C1 = w2.shape[0]
    kernel = functools.partial(_stage2_kernel, H=H, W=W, Cm=Cm)
    return pl.pallas_call(
        kernel,
        out_shape=jax.ShapeDtypeStruct((B, R, C1, S), urp.dtype),
        grid=(B, R),
        in_specs=[
            pl.BlockSpec((None, None, Cm, Hp, Wp), lambda b, k: (b, k, 0, 0, 0)),
            pl.BlockSpec((None, None, C1, S), lambda b, k: (b, k, 0, 0)),
            pl.BlockSpec((C1, 9 * Cm), lambda b, k: (0, 0)),
            pl.BlockSpec((None, C1, 2), lambda b, k: (k, 0, 0)),
            pl.BlockSpec((None, C1, 2), lambda b, k: (k, 0, 0)),
            pl.BlockSpec((None, C1, 2), lambda b, k: (k, 0, 0)),
        ],
        out_specs=pl.BlockSpec((None, None, C1, S), lambda b, k: (b, k, 0, 0)),
        compiler_params=pltpu.CompilerParams(
            dimension_semantics=("parallel", "parallel"),
            vmem_limit_bytes=32 * 1024 * 1024),
    )(urp, short, w2, bn2, cfc, srm_bn)


# ---------------------------------------------------------------------------
# Glue: symmetric pad once, then the 4 rotations (tiny pure data movement).
# torch.rot90(x, k, [2, 3])  ==  jnp.rot90(x, k, axes=(2, 3)) on NCHW.
# ---------------------------------------------------------------------------
def _rot4_pad(x_nchw):
    xp = jnp.pad(x_nchw, ((0, 0), (0, 0), (1, 1), (1, 1)))
    return jnp.stack([jnp.rot90(xp, k, axes=(2, 3)) for k in range(4)], axis=1)


@jax.jit
def basic_block_forward(x_nchw, params):
    B, Cin, H, W = x_nchw.shape
    C1 = params["conv1_w"].shape[0]
    planes = 4 * C1
    # Stage 1: conv1 + bn1 + relu, and the shortcut (conv + BN), fused.
    out1, short = stage1(_rot4_pad(x_nchw), params["conv1_w"], params["short_w"],
                         params["bn1"], params["sbn"])
    # Stage 2: conv2 + bn2 + SRM + residual + relu, fused.
    out1_img = out1.reshape(B, planes, H, W)                 # channel = k*C1 + c (torch.cat order)
    y = stage2(_rot4_pad(out1_img), short, params["conv2_w"],
               params["bn2"], params["cfc"], params["srm_bn"])
    return y.reshape(B, planes, H, W)                        # NCHW, matches PyTorch


# ---------------------------------------------------------------------------
# Deterministic parameter init (shapes follow the PyTorch module __init__),
# pre-packed into the kernel-friendly layouts.
# ---------------------------------------------------------------------------
def init_params(key, in_planes, planes, eps=1e-5):
    c4 = planes // 4
    ks = jax.random.split(key, 8)

    def bn_fold(k, c):    # eval-mode BatchNorm folded to (scale, shift)
        k1, k2, k3, k4 = jax.random.split(k, 4)
        gamma = 1.0 + 0.1 * jax.random.normal(k1, (c,), jnp.float32)
        beta = 0.1 * jax.random.normal(k2, (c,), jnp.float32)
        rmean = 0.1 * jax.random.normal(k3, (c,), jnp.float32)
        rvar = 1.0 + 0.1 * jax.random.uniform(k4, (c,), jnp.float32)
        scale = gamma / jnp.sqrt(rvar + eps)
        shift = beta - rmean * scale
        return scale, shift

    def conv_to_mat(w_oihw):   # torch (O, I, KH, KW) -> (O, KH*KW*I), im2col order
        O, I, KH, KW = w_oihw.shape
        return jnp.transpose(w_oihw, (0, 2, 3, 1)).reshape(O, KH * KW * I)

    def per_group(scale, shift):   # (planes,) x2 -> (4, c4, 2) per rotation group
        return jnp.stack([scale.reshape(4, c4), shift.reshape(4, c4)], axis=-1)

    conv1_w = 0.1 * jax.random.normal(ks[0], (c4, in_planes, 3, 3), jnp.float32)
    conv2_w = 0.1 * jax.random.normal(ks[1], (c4, planes, 3, 3), jnp.float32)
    short_w = 0.1 * jax.random.normal(ks[2], (c4, in_planes, 1, 1), jnp.float32)

    # SRM CFC: Conv1d(C, C, k=2, groups=C, bias=False) weight (C, 1, 2) -> (C, 2)
    cfc_w = 0.1 * jax.random.normal(ks[6], (planes, 2), jnp.float32)

    return dict(
        conv1_w=conv_to_mat(conv1_w),                  # (c4, 9*in_planes)
        conv2_w=conv_to_mat(conv2_w),                  # (c4, 9*planes)
        short_w=short_w.reshape(c4, in_planes),        # (c4, in_planes)
        bn1=per_group(*bn_fold(ks[3], planes)),        # (4, c4, 2)
        bn2=per_group(*bn_fold(ks[4], planes)),
        sbn=per_group(*bn_fold(ks[5], planes)),
        cfc=cfc_w.reshape(4, c4, 2),                   # (4, c4, 2): [w_mean, w_std]
        srm_bn=per_group(*bn_fold(ks[7], planes)),
    )


if __name__ == "__main__":
    B, in_planes, planes, H = 2, 4, 8, 16          # H == W required (rot90 + channel concat)
    key = jax.random.PRNGKey(0)
    kx, kp = jax.random.split(key)
    x = jax.random.normal(kx, (B, in_planes, H, H), jnp.float32)
    params = init_params(kp, in_planes, planes)

    y = basic_block_forward(x, params)
    jax.block_until_ready(y)
    assert y.shape == (B, planes, H, H), y.shape
    assert bool(jnp.all(jnp.isfinite(y)))
    print("KERNEL_OK")
</pallas_src>

<mosaic_0001>
module attributes {stable_mosaic.version = 11 : i64} {
  func.func @_stage1_kernel(%arg0: i32, %arg1: i32, %arg2: memref<1x1x4x18x18xf32, #tpu.memory_space<vmem>>, %arg3: memref<2x36xf32, #tpu.memory_space<vmem>>, %arg4: memref<2x4xf32, #tpu.memory_space<vmem>>, %arg5: memref<1x2x2xf32, #tpu.memory_space<vmem>>, %arg6: memref<1x2x2xf32, #tpu.memory_space<vmem>>, %arg7: memref<1x1x2x256xf32, #tpu.memory_space<vmem>>, %arg8: memref<1x1x2x256xf32, #tpu.memory_space<vmem>>) attributes {dimension_semantics = [#tpu.dimension_semantics<parallel>, #tpu.dimension_semantics<parallel>], iteration_bounds = array<i64: 2, 4>, scalar_prefetch = 0 : i64, scratch_operands = 0 : i64, tpu.core_type = #tpu.core_type<tc>, window_params = [{transform_indices = @transform_0, window_bounds = array<i64: 1, 1, 4, 18, 18>}, {pipeline_mode = #tpu.pipeline_mode<synchronous>, transform_indices = @transform_1, window_bounds = array<i64: 2, 36>}, {pipeline_mode = #tpu.pipeline_mode<synchronous>, transform_indices = @transform_2, window_bounds = array<i64: 2, 4>}, {transform_indices = @transform_3, window_bounds = array<i64: 1, 2, 2>}, {transform_indices = @transform_4, window_bounds = array<i64: 1, 2, 2>}, {transform_indices = @transform_5, window_bounds = array<i64: 1, 1, 2, 256>}, {transform_indices = @transform_6, window_bounds = array<i64: 1, 1, 2, 256>}]} {
    %c0 = arith.constant 0 : index
    %c0_0 = arith.constant 0 : index
    %c0_1 = arith.constant 0 : index
    %c0_2 = arith.constant 0 : index
    %c0_3 = arith.constant 0 : index
    %0 = vector.load %arg2[%c0, %c0_0, %c0_1, %c0_2, %c0_3] : memref<1x1x4x18x18xf32, #tpu.memory_space<vmem>>, vector<1x1x4x18x18xf32>
    %1 = vector.shape_cast %0 : vector<1x1x4x18x18xf32> to vector<4x18x18xf32>
    %2 = vector.extract_strided_slice %1 {offsets = [0, 0, 0], sizes = [4, 16, 16], strides = [1, 1, 1]} : vector<4x18x18xf32> to vector<4x16x16xf32>
    %3 = vector.shape_cast %2 : vector<4x16x16xf32> to vector<4x256xf32>
    %4 = vector.extract_strided_slice %1 {offsets = [0, 0, 1], sizes = [4, 16, 16], strides = [1, 1, 1]} : vector<4x18x18xf32> to vector<4x16x16xf32>
    %5 = vector.shape_cast %4 : vector<4x16x16xf32> to vector<4x256xf32>
    %6 = vector.extract_strided_slice %1 {offsets = [0, 0, 2], sizes = [4, 16, 16], strides = [1, 1, 1]} : vector<4x18x18xf32> to vector<4x16x16xf32>
    %7 = vector.shape_cast %6 : vector<4x16x16xf32> to vector<4x256xf32>
    %8 = vector.extract_strided_slice %1 {offsets = [0, 1, 0], sizes = [4, 16, 16], strides = [1, 1, 1]} : vector<4x18x18xf32> to vector<4x16x16xf32>
    %9 = vector.shape_cast %8 : vector<4x16x16xf32> to vector<4x256xf32>
    %10 = vector.extract_strided_slice %1 {offsets = [0, 1, 1], sizes = [4, 16, 16], strides = [1, 1, 1]} : vector<4x18x18xf32> to vector<4x16x16xf32>
    %11 = vector.shape_cast %10 : vector<4x16x16xf32> to vector<4x256xf32>
    %12 = vector.extract_strided_slice %1 {offsets = [0, 1, 2], sizes = [4, 16, 16], strides = [1, 1, 1]} : vector<4x18x18xf32> to vector<4x16x16xf32>
    %13 = vector.shape_cast %12 : vector<4x16x16xf32> to vector<4x256xf32>
    %14 = vector.extract_strided_slice %1 {offsets = [0, 2, 0], sizes = [4, 16, 16], strides = [1, 1, 1]} : vector<4x18x18xf32> to vector<4x16x16xf32>
    %15 = vector.shape_cast %14 : vector<4x16x16xf32> to vector<4x256xf32>
    %16 = vector.extract_strided_slice %1 {offsets = [0, 2, 1], sizes = [4, 16, 16], strides = [1, 1, 1]} : vector<4x18x18xf32> to vector<4x16x16xf32>
    %17 = vector.shape_cast %16 : vector<4x16x16xf32> to vector<4x256xf32>
    %18 = vector.extract_strided_slice %1 {offsets = [0, 2, 2], sizes = [4, 16, 16], strides = [1, 1, 1]} : vector<4x18x18xf32> to vector<4x16x16xf32>
    %19 = vector.shape_cast %18 : vector<4x16x16xf32> to vector<4x256xf32>
    %20 = tpu.concatenate %3, %5, %7, %9, %11, %13, %15, %17, %19 in 0 : vector<4x256xf32>, vector<4x256xf32>, vector<4x256xf32>, vector<4x256xf32>, vector<4x256xf32>, vector<4x256xf32>, vector<4x256xf32>, vector<4x256xf32>, vector<4x256xf32> -> vector<36x256xf32>
    %c0_4 = arith.constant 0 : index
    %c0_5 = arith.constant 0 : index
    %21 = vector.load %arg3[%c0_4, %c0_5] : memref<2x36xf32, #tpu.memory_space<vmem>>, vector<2x36xf32>
    %cst = arith.constant dense<0.000000e+00> : vector<2x256xf32>
    %22 = tpu.matmul %21, %20, %cst {dimension_numbers = #tpu.dot_dimension_numbers<[1], [0], [0], [1], [0, 0, 1, 1], [], []>} : vector<2x36xf32>, vector<36x256xf32>, vector<2x256xf32> -> vector<2x256xf32>
    %c0_6 = arith.constant 0 : index
    %c0_7 = arith.constant 0 : index
    %c0_8 = arith.constant 0 : index
    %23 = vector.load %arg5[%c0_6, %c0_7, %c0_8] : memref<1x2x2xf32, #tpu.memory_space<vmem>>, vector<1x2x2xf32>
    %24 = vector.shape_cast %23 : vector<1x2x2xf32> to vector<2x2xf32>
    %25 = vector.extract_strided_slice %24 {offsets = [0, 0], sizes = [2, 1], strides = [1, 1]} : vector<2x2xf32> to vector<2x1xf32>
    %26 = vector.broadcast %25 : vector<2x1xf32> to vector<2x256xf32>
    %27 = arith.mulf %22, %26 : vector<2x256xf32>
    %28 = vector.extract_strided_slice %24 {offsets = [0, 1], sizes = [2, 1], strides = [1, 1]} : vector<2x2xf32> to vector<2x1xf32>
    %29 = vector.broadcast %28 : vector<2x1xf32> to vector<2x256xf32>
    %30 = arith.addf %27, %29 : vector<2x256xf32>
    %cst_9 = arith.constant 0.000000e+00 : f32
    %31 = vector.broadcast %cst_9 : f32 to vector<2x256xf32>
    %32 = arith.maximumf %30, %31 : vector<2x256xf32>
    %c0_10 = arith.constant 0 : index
    %c0_11 = arith.constant 0 : index
    %c0_12 = arith.constant 0 : index
    %c0_13 = arith.constant 0 : index
    %33 = vector.load %arg7[%c0_10, %c0_11, %c0_12, %c0_13] : memref<1x1x2x256xf32, #tpu.memory_space<vmem>>, vector<1x1x2x256xf32>
    %34 = vector.shape_cast %33 : vector<1x1x2x256xf32> to vector<2x256xf32>
    %35 = vector.shape_cast %32 : vector<2x256xf32> to vector<1x1x2x256xf32>
    tpu.vector_store %arg7[%c0_10, %c0_11, %c0_12, %c0_13], %35 {strides = array<i32>} : memref<1x1x2x256xf32, #tpu.memory_space<vmem>>, vector<1x1x2x256xf32>,
    %36 = vector.extract_strided_slice %1 {offsets = [0, 1, 1], sizes = [4, 16, 16], strides = [1, 1, 1]} : vector<4x18x18xf32> to vector<4x16x16xf32>
    %37 = vector.shape_cast %36 : vector<4x16x16xf32> to vector<4x256xf32>
    %c0_14 = arith.constant 0 : index
    %c0_15 = arith.constant 0 : index
    %38 = vector.load %arg4[%c0_14, %c0_15] : memref<2x4xf32, #tpu.memory_space<vmem>>, vector<2x4xf32>
    %cst_16 = arith.constant dense<0.000000e+00> : vector<2x256xf32>
    %39 = tpu.matmul %38, %37, %cst_16 {dimension_numbers = #tpu.dot_dimension_numbers<[1], [0], [0], [1], [0, 0, 1, 1], [], []>} : vector<2x4xf32>, vector<4x256xf32>, vector<2x256xf32> -> vector<2x256xf32>
    %c0_17 = arith.constant 0 : index
    %c0_18 = arith.constant 0 : index
    %c0_19 = arith.constant 0 : index
    %40 = vector.load %arg6[%c0_17, %c0_18, %c0_19] : memref<1x2x2xf32, #tpu.memory_space<vmem>>, vector<1x2x2xf32>
    %41 = vector.shape_cast %40 : vector<1x2x2xf32> to vector<2x2xf32>
    %42 = vector.extract_strided_slice %41 {offsets = [0, 0], sizes = [2, 1], strides = [1, 1]} : vector<2x2xf32> to vector<2x1xf32>
    %43 = vector.broadcast %42 : vector<2x1xf32> to vector<2x256xf32>
    %44 = arith.mulf %39, %43 : vector<2x256xf32>
    %45 = vector.extract_strided_slice %41 {offsets = [0, 1], sizes = [2, 1], strides = [1, 1]} : vector<2x2xf32> to vector<2x1xf32>
    %46 = vector.broadcast %45 : vector<2x1xf32> to vector<2x256xf32>
    %47 = arith.addf %44, %46 : vector<2x256xf32>
    %c0_20 = arith.constant 0 : index
    %c0_21 = arith.constant 0 : index
    %c0_22 = arith.constant 0 : index
    %c0_23 = arith.constant 0 : index
    %48 = vector.load %arg8[%c0_20, %c0_21, %c0_22, %c0_23] : memref<1x1x2x256xf32, #tpu.memory_space<vmem>>, vector<1x1x2x256xf32>
    %49 = vector.shape_cast %48 : vector<1x1x2x256xf32> to vector<2x256xf32>
    %50 = vector.shape_cast %47 : vector<2x256xf32> to vector<1x1x2x256xf32>
    tpu.vector_store %arg8[%c0_20, %c0_21, %c0_22, %c0_23], %50 {strides = array<i32>} : memref<1x1x2x256xf32, #tpu.memory_space<vmem>>, vector<1x1x2x256xf32>,
    return
  }
  func.func @transform_0(%arg0: i32, %arg1: i32) -> (i32, i32, i32, i32, i32) {
    %c0_i32 = arith.constant 0 : i32
    %c0_i32_0 = arith.constant 0 : i32
    %c0_i32_1 = arith.constant 0 : i32
    %c0_i32_2 = arith.constant 0 : i32
    return %arg0, %arg1, %c0_i32, %c0_i32_0, %c0_i32_1 : i32, i32, i32, i32, i32
  }
  func.func @transform_1(%arg0: i32, %arg1: i32) -> (i32, i32) {
    %c0_i32 = arith.constant 0 : i32
    %c0_i32_0 = arith.constant 0 : i32
    %c0_i32_1 = arith.constant 0 : i32
    return %c0_i32, %c0_i32_0 : i32, i32
  }
  func.func @transform_2(%arg0: i32, %arg1: i32) -> (i32, i32) {
    %c0_i32 = arith.constant 0 : i32
    %c0_i32_0 = arith.constant 0 : i32
    %c0_i32_1 = arith.constant 0 : i32
    return %c0_i32, %c0_i32_0 : i32, i32
  }
  func.func @transform_3(%arg0: i32, %arg1: i32) -> (i32, i32, i32) {
    %c0_i32 = arith.constant 0 : i32
    %c0_i32_0 = arith.constant 0 : i32
    %c0_i32_1 = arith.constant 0 : i32
    return %arg1, %c0_i32, %c0_i32_0 : i32, i32, i32
  }
  func.func @transform_4(%arg0: i32, %arg1: i32) -> (i32, i32, i32) {
    %c0_i32 = arith.constant 0 : i32
    %c0_i32_0 = arith.constant 0 : i32
    %c0_i32_1 = arith.constant 0 : i32
    return %arg1, %c0_i32, %c0_i32_0 : i32, i32, i32
  }
  func.func @transform_5(%arg0: i32, %arg1: i32) -> (i32, i32, i32, i32) {
    %c0_i32 = arith.constant 0 : i32
    %c0_i32_0 = arith.constant 0 : i32
    %c0_i32_1 = arith.constant 0 : i32
    return %arg0, %arg1, %c0_i32, %c0_i32_0 : i32, i32, i32, i32
  }
  func.func @transform_6(%arg0: i32, %arg1: i32) -> (i32, i32, i32, i32) {
    %c0_i32 = arith.constant 0 : i32
    %c0_i32_0 = arith.constant 0 : i32
    %c0_i32_1 = arith.constant 0 : i32
    return %arg0, %arg1, %c0_i32, %c0_i32_0 : i32, i32, i32, i32
  }
}

module attributes {stable_mosaic.version = 11 : i64} {
  func.func @_stage2_kernel(%arg0: i32, %arg1: i32, %arg2: memref<1x1x8x18x18xf32, #tpu.memory_space<vmem>>, %arg3: memref<1x1x2x256xf32, #tpu.memory_space<vmem>>, %arg4: memref<2x72xf32, #tpu.memory_space<vmem>>, %arg5: memref<1x2x2xf32, #tpu.memory_space<vmem>>, %arg6: memref<1x2x2xf32, #tpu.memory_space<vmem>>, %arg7: memref<1x2x2xf32, #tpu.memory_space<vmem>>, %arg8: memref<1x1x2x256xf32, #tpu.memory_space<vmem>>) attributes {dimension_semantics = [#tpu.dimension_semantics<parallel>, #tpu.dimension_semantics<parallel>], iteration_bounds = array<i64: 2, 4>, scalar_prefetch = 0 : i64, scratch_operands = 0 : i64, tpu.core_type = #tpu.core_type<tc>, window_params = [{transform_indices = @transform_0, window_bounds = array<i64: 1, 1, 8, 18, 18>}, {transform_indices = @transform_1, window_bounds = array<i64: 1, 1, 2, 256>}, {pipeline_mode = #tpu.pipeline_mode<synchronous>, transform_indices = @transform_2, window_bounds = array<i64: 2, 72>}, {transform_indices = @transform_3, window_bounds = array<i64: 1, 2, 2>}, {transform_indices = @transform_4, window_bounds = array<i64: 1, 2, 2>}, {transform_indices = @transform_5, window_bounds = array<i64: 1, 2, 2>}, {transform_indices = @transform_6, window_bounds = array<i64: 1, 1, 2, 256>}]} {
    %c0 = arith.constant 0 : index
    %c0_0 = arith.constant 0 : index
    %c0_1 = arith.constant 0 : index
    %c0_2 = arith.constant 0 : index
    %c0_3 = arith.constant 0 : index
    %0 = vector.load %arg2[%c0, %c0_0, %c0_1, %c0_2, %c0_3] : memref<1x1x8x18x18xf32, #tpu.memory_space<vmem>>, vector<1x1x8x18x18xf32>
    %1 = vector.shape_cast %0 : vector<1x1x8x18x18xf32> to vector<8x18x18xf32>
    %2 = vector.extract_strided_slice %1 {offsets = [0, 0, 0], sizes = [8, 16, 16], strides = [1, 1, 1]} : vector<8x18x18xf32> to vector<8x16x16xf32>
    %3 = vector.shape_cast %2 : vector<8x16x16xf32> to vector<8x256xf32>
    %4 = vector.extract_strided_slice %1 {offsets = [0, 0, 1], sizes = [8, 16, 16], strides = [1, 1, 1]} : vector<8x18x18xf32> to vector<8x16x16xf32>
    %5 = vector.shape_cast %4 : vector<8x16x16xf32> to vector<8x256xf32>
    %6 = vector.extract_strided_slice %1 {offsets = [0, 0, 2], sizes = [8, 16, 16], strides = [1, 1, 1]} : vector<8x18x18xf32> to vector<8x16x16xf32>
    %7 = vector.shape_cast %6 : vector<8x16x16xf32> to vector<8x256xf32>
    %8 = vector.extract_strided_slice %1 {offsets = [0, 1, 0], sizes = [8, 16, 16], strides = [1, 1, 1]} : vector<8x18x18xf32> to vector<8x16x16xf32>
    %9 = vector.shape_cast %8 : vector<8x16x16xf32> to vector<8x256xf32>
    %10 = vector.extract_strided_slice %1 {offsets = [0, 1, 1], sizes = [8, 16, 16], strides = [1, 1, 1]} : vector<8x18x18xf32> to vector<8x16x16xf32>
    %11 = vector.shape_cast %10 : vector<8x16x16xf32> to vector<8x256xf32>
    %12 = vector.extract_strided_slice %1 {offsets = [0, 1, 2], sizes = [8, 16, 16], strides = [1, 1, 1]} : vector<8x18x18xf32> to vector<8x16x16xf32>
    %13 = vector.shape_cast %12 : vector<8x16x16xf32> to vector<8x256xf32>
    %14 = vector.extract_strided_slice %1 {offsets = [0, 2, 0], sizes = [8, 16, 16], strides = [1, 1, 1]} : vector<8x18x18xf32> to vector<8x16x16xf32>
    %15 = vector.shape_cast %14 : vector<8x16x16xf32> to vector<8x256xf32>
    %16 = vector.extract_strided_slice %1 {offsets = [0, 2, 1], sizes = [8, 16, 16], strides = [1, 1, 1]} : vector<8x18x18xf32> to vector<8x16x16xf32>
    %17 = vector.shape_cast %16 : vector<8x16x16xf32> to vector<8x256xf32>
    %18 = vector.extract_strided_slice %1 {offsets = [0, 2, 2], sizes = [8, 16, 16], strides = [1, 1, 1]} : vector<8x18x18xf32> to vector<8x16x16xf32>
    %19 = vector.shape_cast %18 : vector<8x16x16xf32> to vector<8x256xf32>
    %20 = tpu.concatenate %3, %5, %7, %9, %11, %13, %15, %17, %19 in 0 : vector<8x256xf32>, vector<8x256xf32>, vector<8x256xf32>, vector<8x256xf32>, vector<8x256xf32>, vector<8x256xf32>, vector<8x256xf32>, vector<8x256xf32>, vector<8x256xf32> -> vector<72x256xf32>
    %c0_4 = arith.constant 0 : index
    %c0_5 = arith.constant 0 : index
    %21 = vector.load %arg4[%c0_4, %c0_5] : memref<2x72xf32, #tpu.memory_space<vmem>>, vector<2x72xf32>
    %cst = arith.constant dense<0.000000e+00> : vector<2x256xf32>
    %22 = tpu.matmul %21, %20, %cst {dimension_numbers = #tpu.dot_dimension_numbers<[1], [0], [0], [1], [0, 0, 1, 1], [], []>} : vector<2x72xf32>, vector<72x256xf32>, vector<2x256xf32> -> vector<2x256xf32>
    %c0_6 = arith.constant 0 : index
    %c0_7 = arith.constant 0 : index
    %c0_8 = arith.constant 0 : index
    %23 = vector.load %arg5[%c0_6, %c0_7, %c0_8] : memref<1x2x2xf32, #tpu.memory_space<vmem>>, vector<1x2x2xf32>
    %24 = vector.shape_cast %23 : vector<1x2x2xf32> to vector<2x2xf32>
    %25 = vector.extract_strided_slice %24 {offsets = [0, 0], sizes = [2, 1], strides = [1, 1]} : vector<2x2xf32> to vector<2x1xf32>
    %26 = vector.broadcast %25 : vector<2x1xf32> to vector<2x256xf32>
    %27 = arith.mulf %22, %26 : vector<2x256xf32>
    %28 = vector.extract_strided_slice %24 {offsets = [0, 1], sizes = [2, 1], strides = [1, 1]} : vector<2x2xf32> to vector<2x1xf32>
    %29 = vector.broadcast %28 : vector<2x1xf32> to vector<2x256xf32>
    %30 = arith.addf %27, %29 : vector<2x256xf32>
    %cst_9 = arith.constant dense<0.000000e+00> : vector<2xf32>
    %31 = vector.multi_reduction <add>, %30, %cst_9 [1] : vector<2x256xf32> to vector<2xf32>
    %32 = vector.shape_cast %31 : vector<2xf32> to vector<2x1xf32>
    %cst_10 = arith.constant 2.560000e+02 : f32
    %33 = vector.broadcast %cst_10 : f32 to vector<2x1xf32>
    %34 = arith.divf %32, %33 : vector<2x1xf32>
    %35 = vector.broadcast %34 : vector<2x1xf32> to vector<2x256xf32>
    %36 = arith.subf %30, %35 : vector<2x256xf32>
    %37 = arith.mulf %36, %36 : vector<2x256xf32>
    %cst_11 = arith.constant dense<0.000000e+00> : vector<2xf32>
    %38 = vector.multi_reduction <add>, %37, %cst_11 [1] : vector<2x256xf32> to vector<2xf32>
    %39 = vector.shape_cast %38 : vector<2xf32> to vector<2x1xf32>
    %cst_12 = arith.constant 2.550000e+02 : f32
    %40 = vector.broadcast %cst_12 : f32 to vector<2x1xf32>
    %41 = arith.divf %39, %40 : vector<2x1xf32>
    %42 = math.sqrt %41 : vector<2x1xf32>
    %c0_13 = arith.constant 0 : index
    %c0_14 = arith.constant 0 : index
    %c0_15 = arith.constant 0 : index
    %43 = vector.load %arg6[%c0_13, %c0_14, %c0_15] : memref<1x2x2xf32, #tpu.memory_space<vmem>>, vector<1x2x2xf32>
    %44 = vector.shape_cast %43 : vector<1x2x2xf32> to vector<2x2xf32>
    %45 = vector.extract_strided_slice %44 {offsets = [0, 0], sizes = [2, 1], strides = [1, 1]} : vector<2x2xf32> to vector<2x1xf32>
    %46 = arith.mulf %45, %34 : vector<2x1xf32>
    %47 = vector.extract_strided_slice %44 {offsets = [0, 1], sizes = [2, 1], strides = [1, 1]} : vector<2x2xf32> to vector<2x1xf32>
    %48 = arith.mulf %47, %42 : vector<2x1xf32>
    %49 = arith.addf %46, %48 : vector<2x1xf32>
    %c0_16 = arith.constant 0 : index
    %c0_17 = arith.constant 0 : index
    %c0_18 = arith.constant 0 : index
    %50 = vector.load %arg7[%c0_16, %c0_17, %c0_18] : memref<1x2x2xf32, #tpu.memory_space<vmem>>, vector<1x2x2xf32>
    %51 = vector.shape_cast %50 : vector<1x2x2xf32> to vector<2x2xf32>
    %52 = vector.extract_strided_slice %51 {offsets = [0, 0], sizes = [2, 1], strides = [1, 1]} : vector<2x2xf32> to vector<2x1xf32>
    %53 = arith.mulf %49, %52 : vector<2x1xf32>
    %54 = vector.extract_strided_slice %51 {offsets = [0, 1], sizes = [2, 1], strides = [1, 1]} : vector<2x2xf32> to vector<2x1xf32>
    %55 = arith.addf %53, %54 : vector<2x1xf32>
    %56 = arith.negf %55 : vector<2x1xf32>
    %57 = math.exp %56 : vector<2x1xf32>
    %cst_19 = arith.constant 1.000000e+00 : f32
    %58 = vector.broadcast %cst_19 : f32 to vector<2x1xf32>
    %59 = arith.addf %58, %57 : vector<2x1xf32>
    %60 = arith.divf %58, %59 : vector<2x1xf32>
    %61 = vector.broadcast %60 : vector<2x1xf32> to vector<2x256xf32>
    %62 = arith.mulf %30, %61 : vector<2x256xf32>
    %c0_20 = arith.constant 0 : index
    %c0_21 = arith.constant 0 : index
    %c0_22 = arith.constant 0 : index
    %c0_23 = arith.constant 0 : index
    %63 = vector.load %arg3[%c0_20, %c0_21, %c0_22, %c0_23] : memref<1x1x2x256xf32, #tpu.memory_space<vmem>>, vector<1x1x2x256xf32>
    %64 = vector.shape_cast %63 : vector<1x1x2x256xf32> to vector<2x256xf32>
    %65 = arith.addf %62, %64 : vector<2x256xf32>
    %cst_24 = arith.constant 0.000000e+00 : f32
    %66 = vector.broadcast %cst_24 : f32 to vector<2x256xf32>
    %67 = arith.maximumf %65, %66 : vector<2x256xf32>
    %c0_25 = arith.constant 0 : index
    %c0_26 = arith.constant 0 : index
    %c0_27 = arith.constant 0 : index
    %c0_28 = arith.constant 0 : index
    %68 = vector.load %arg8[%c0_25, %c0_26, %c0_27, %c0_28] : memref<1x1x2x256xf32, #tpu.memory_space<vmem>>, vector<1x1x2x256xf32>
    %69 = vector.shape_cast %68 : vector<1x1x2x256xf32> to vector<2x256xf32>
    %70 = vector.shape_cast %67 : vector<2x256xf32> to vector<1x1x2x256xf32>
    tpu.vector_store %arg8[%c0_25, %c0_26, %c0_27, %c0_28], %70 {strides = array<i32>} : memref<1x1x2x256xf32, #tpu.memory_space<vmem>>, vector<1x1x2x256xf32>,
    return
  }
  func.func @transform_0(%arg0: i32, %arg1: i32) -> (i32, i32, i32, i32, i32) {
    %c0_i32 = arith.constant 0 : i32
    %c0_i32_0 = arith.constant 0 : i32
    %c0_i32_1 = arith.constant 0 : i32
    %c0_i32_2 = arith.constant 0 : i32
    return %arg0, %arg1, %c0_i32, %c0_i32_0, %c0_i32_1 : i32, i32, i32, i32, i32
  }
  func.func @transform_1(%arg0: i32, %arg1: i32) -> (i32, i32, i32, i32) {
    %c0_i32 = arith.constant 0 : i32
    %c0_i32_0 = arith.constant 0 : i32
    %c0_i32_1 = arith.constant 0 : i32
    return %arg0, %arg1, %c0_i32, %c0_i32_0 : i32, i32, i32, i32
  }
  func.func @transform_2(%arg0: i32, %arg1: i32) -> (i32, i32) {
    %c0_i32 = arith.constant 0 : i32
    %c0_i32_0 = arith.constant 0 : i32
    %c0_i32_1 = arith.constant 0 : i32
    return %c0_i32, %c0_i32_0 : i32, i32
  }
  func.func @transform_3(%arg0: i32, %arg1: i32) -> (i32, i32, i32) {
    %c0_i32 = arith.constant 0 : i32
    %c0_i32_0 = arith.constant 0 : i32
    %c0_i32_1 = arith.constant 0 : i32
    return %arg1, %c0_i32, %c0_i32_0 : i32, i32, i32
  }
  func.func @transform_4(%arg0: i32, %arg1: i32) -> (i32, i32, i32) {
    %c0_i32 = arith.constant 0 : i32
    %c0_i32_0 = arith.constant 0 : i32
    %c0_i32_1 = arith.constant 0 : i32
    return %arg1, %c0_i32, %c0_i32_0 : i32, i32, i32
  }
  func.func @transform_5(%arg0: i32, %arg1: i32) -> (i32, i32, i32) {
    %c0_i32 = arith.constant 0 : i32
    %c0_i32_0 = arith.constant 0 : i32
    %c0_i32_1 = arith.constant 0 : i32
    return %arg1, %c0_i32, %c0_i32_0 : i32, i32, i32
  }
  func.func @transform_6(%arg0: i32, %arg1: i32) -> (i32, i32, i32, i32) {
    %c0_i32 = arith.constant 0 : i32
    %c0_i32_0 = arith.constant 0 : i32
    %c0_i32_1 = arith.constant 0 : i32
    return %arg0, %arg1, %c0_i32, %c0_i32_0 : i32, i32, i32, i32
  }
}

</mosaic_0001>

<bundles_post_ra>
// kernel: basic_block_forward.2
= control target key start
LH: loop header
LB: loop body
LE: loop exit
PB: predicated region body
PF: predicated region fallthrough
CT: control target
= control target key end

     0   :  { %s3072_s21 = smov 0   ;;  %s3074_s22 = smov 0   ;;  %s4528_s0 = inlined_call_operand.vmem [shape: f32[2,4,4,18,18], index: 0, kind: input, shape index: {}]   ;;  %s4529_s1 = inlined_call_operand.vmem [shape: f32[2,36], index: 1, kind: input, shape index: {}]   ;;  %s4530_s2 = inlined_call_operand.vmem [shape: f32[2,4], index: 2, kind: input, shape index: {}]   ;;  %s4531_s3 = inlined_call_operand.vmem [shape: f32[4,2,2], index: 3, kind: input, shape index: {}]   ;;  %s4532_s4 = inlined_call_operand.vmem [shape: f32[4,2,2], index: 4, kind: input, shape index: {}]   ;;  %s4533_s5 = inlined_call_operand.vmem [shape: f32[2,4,2,256], index: 5, kind: output, shape index: {0}]   ;;  %s4534_s6 = inlined_call_operand.vmem [shape: f32[2,4,2,256], index: 6, kind: output, shape index: {1}]  }
   0x1   :  { %s3076_s23 = smov 0   ;;  %s3078_s24 = smov 0  }
   0x2   :  { %s3080_s25 = smov 0  }
   0x3 LB: > { %s26_s26 = sadd.s32 1, %s3014_s23  ;;  %s29_s27 = sadd.s32 1, %s3018_s24  ;;  %s3022_s25 = sphi %s3080_s25, %s17_s25   ;;  %s3018_s24 = sphi %s3078_s24, %s4546_s24   ;;  %s3014_s23 = sphi %s3076_s23, %s4545_s23   ;;  %s3010_s22 = sphi %s3074_s22, %s4544_s22   ;;  %s3006_s21 = sphi %s3072_s21, %s4543_s21  }
   0x4   : > { %p27_p0 = scmp.ge.s32.totalorder %s26_s26, 4  ;;  %p2571_p1 = scmp.ge.s32.totalorder %s3022_s25, 1 }
   0x5   : > { %p255_p2 = scmp.lt.s32.totalorder %s3022_s25, 9 }
   0x6   : > { %s4548_s26 = smov (%p27_p0, %s26_s26), 0  ;;  %s4550_s27 = smov (!%p27_p0, %s29_s27), %s3018_s24 }
   0x7   : > { %p256_p3 = pnand %p2571_p1, %p255_p2  ;;  %p31_p4 = scmp.ge.s32.totalorder %s4550_s27, 2 }
   0x8   : > { %p310_p5 = scmp.lt.s32.totalorder (!%p256_p3), %s3010_s22, 1  ;;  %p312_p6 = scmp.lt.s32.totalorder (!%p256_p3), %s3006_s21, 3 }
   0x9   : > { %s4552_s27 = smov (%p31_p4, %s4550_s27), 0  ;;  %259 = sbr.rel (%p256_p3) target bundleno = 772 (0x304), region = 40 }
   0xa   : > { %s3026_s11 = smov (!%p256_p3), 127   ;;  %s3027_s12 = smov (!%p256_p3), 32  }
   0xb   : > { %s3028_s13 = smov (!%p256_p3), 64   ;;  %s3029_s14 = smov (!%p256_p3), 16  }
   0xc   : > { %s3030_s15 = smov (!%p256_p3), 48   ;;  %s3031_s16 = smov (!%p256_p3), 96  }
   0xd   : > { %s3032_s17 = smov (!%p256_p3), 112   ;;  %s3033_s18 = smov (!%p256_p3), 80  }
   0xe   : > { %s4554_s22 = smov (!%p310_p5, %s3010_s22), 1  ;;  %s4556_s21 = smov (!%p312_p6, %s3006_s21), 3  ;;  %v3024_v0 = vmov 1983009808   ;;  %v3025_v2 = vmov 1934713408  }
   0xf   : > { %s2592_s28 = smul.u32 48, %s4554_s22  ;;  %v363_v1 = vunpack.c.l.s4 %v3024_v0  ;;  %v387_v3 = vunpack.c.l.s4 %v3025_v2  ;;  %vm358_vm0 = vcmask 1047556   ;;  %vm971_vm1 = vcmask 1046528   ;;  %s3034_s19 = smov 126  }
  0x10   : > { %s2591_s29 = smul.u32 12, %s4556_s21  ;;  %vm526_vm2 = vcmask 130048   ;;  %vm528_vm3 = vcmask 261120   ;;  %vm530_vm4 = vcmask 392192   ;;  %vm532_vm5 = vcmask 523264  }
  0x11   : > { %v3135_v11 = vunpack.c.0.s8 %v363_v1  ;;  %v3137_v12 = vunpack.c.0.s8 %v387_v3  ;;  %vm534_vm6 = vcmask 654336   ;;  %vm536_vm7 = vcmask 785408  }
  0x12   : > { %s316_s30 = sadd.s32 %s2592_s28, %s2591_s29  ;;  %vm538_vm8 = vcmask 916480   ;;  %vm1594_vm9 = vcmask 1045504   ;;  %vm2241_vm10 = vcmask 1043456   ;;  %vm2325_vm11 = vcmask 31744   ;;  %s4397_s29 = sshll.u32 %s4556_s21, 1 }
  0x13   : > { %s2572_s7 = sshll.u32 %s316_s30, 3  ;;  %vm2251_vm12 = vcmask 293888   ;;  %vm2320_vm13 = vcmask 1041408  }
  0x14   : > { %s3111_s10 = scalar_lea.vmem %s4528_s0, %s2572_s7  ;;  %s322_s7 = scalar_lea.vmem %s4531_s3, %s4397_s29 }
  0x15   : > { %v3114_v4 = vld [vmem:[%s3111_s10] sm:$0xff]  ;;  %v3117_v5 = vld [vmem:[%s3111_s10 + $0x8] sm:$0xff]  ;;  %v3120_v6 = vld [vmem:[%s3111_s10 + $0x18] sm:$0xff] }
  0x16   : > { %v3124_v7 = vpack.i.bf16 %v3117_v5, %v3114_v4  ;;  %v3127_v8 = vld [vmem:[%s3111_s10 + $0x20] sm:$0xff]  ;;  %v3130_v9 = vld [vmem:[%s3111_s10 + $0x30] sm:$0xff]  ;;  %v3133_v10 = vld [vmem:[%s3111_s10 + $0x38] sm:$0xff]  ;;  %v360_v13 = vrot.slane %v3114_v4, 4  ;;  %v372_v18 = vrot.slane %v3120_v6, 4  ;;  %v416_v19 = vrot.slane %v3117_v5, 4 }
  0x17   : > { %v3141_v14 = vld [vmem:[%s3111_s10 + $0x48] sm:$0xff]  ;;  %v3144_v15 = vld [vmem:[%s3111_s10 + $0x50] sm:$0xff]  ;;  %v357_v16 = vrot.slane %v3130_v9, 4  ;;  %v414_v17 = vrot.slane %v3133_v10, 4  ;;  %v428_v23 = vrot.slane %v3127_v8, 4 }
  0x18   : > { %2647 = vrot.lane.b32.xlu1 %v3124_v7, %s3026_s11  ;;  %v370_v20 = vrot.slane %v3141_v14, 4  ;;  %v426_v21 = vrot.slane %v3144_v15, 4  ;;  %v361_v22 = vsel %vm358_vm0, %v3130_v9, %v360_v13  ;;  %v373_v27 = vsel %vm358_vm0, %v3141_v14, %v372_v18 }
  0x19   : > { %v359_v24 = vsel %vm358_vm0, %v357_v16, %v3114_v4  ;;  %v415_v25 = vsel %vm358_vm0, %v414_v17, %v3117_v5  ;;  %v369_v26 = vperm.slane %v361_v22, %v3135_v11  ;;  %v381_v34 = vperm.slane %v373_v27, %v3135_v11 }
  0x1a   : > { %v365_v28 = vperm.slane %v359_v24, %v3135_v11  ;;  %v371_v29 = vsel %vm358_vm0, %v370_v20, %v3120_v6  ;;  %v421_v30 = vperm.slane %v415_v25, %v3135_v11  ;;  %v427_v31 = vsel %vm358_vm0, %v426_v21, %v3127_v8  ;;  %v3215_v25 = vld [vmem:[%s3111_s10 + $0x10] sm:$0x3] }
  0x1b   : > { %v377_v32 = vperm.slane %v371_v29, %v3135_v11  ;;  %v433_v33 = vperm.slane %v427_v31, %v3135_v11  ;;  %v396_v35 = vrot.slane %v369_v26, 4  ;;  %v417_v38 = vsel %vm358_vm0, %v3133_v10, %v416_v19 }
  0x1c   : > { %v384_v36 = vrot.slane %v365_v28, 4  ;;  %v440_v37 = vrot.slane %v421_v30, 4  ;;  %v429_v39 = vsel %vm358_vm0, %v3144_v15, %v428_v23  ;;  %v394_v42 = vrot.slane %v381_v34, 4 }
  0x1d   : > { %v382_v40 = vrot.slane %v377_v32, 4  ;;  %v438_v41 = vrot.slane %v433_v33, 4  ;;  %v425_v43 = vperm.slane %v417_v38, %v3135_v11  ;;  %v437_v46 = vperm.slane %v429_v39, %v3135_v11 }
  0x1e   : > { %v385_v44 = vsel %vm358_vm0, %v377_v32, %v384_v36  ;;  %v441_v45 = vsel %vm358_vm0, %v433_v33, %v440_v37  ;;  %v397_v47 = vsel %vm358_vm0, %v381_v34, %v396_v35  ;;  %v395_v50 = vsel %vm358_vm0, %v394_v42, %v369_v26  ;;  %v3224_v33 = vld [vmem:[%s3111_s10 + $0x40] sm:$0x3]  ;;  %v3227_v34 = vld [vmem:[%s3111_s10 + $0x58] sm:$0x3] }
  0x1f   : > { %v393_v48 = vperm.slane %v385_v44, %v3137_v12  ;;  %v449_v49 = vperm.slane %v441_v45, %v3137_v12  ;;  %v452_v51 = vrot.slane %v425_v43, 4  ;;  %v401_v52 = vperm.slane %v395_v50, %v3137_v12 }
  0x20   : > { %v450_v53 = vrot.slane %v437_v46, 4  ;;  %v383_v54 = vsel %vm358_vm0, %v382_v40, %v365_v28  ;;  %v439_v55 = vsel %vm358_vm0, %v438_v41, %v421_v30  ;;  %v405_v62 = vperm.slane %v397_v47, %v3137_v12  ;;  %v3221_v30 = vld [vmem:[%s3111_s10 + $0x28] sm:$0x3] }
  0x21   : > { %v464_v56 = vrot.slane %v449_v49, 4  ;;  %v2656_v57 = vpack.i.bf16 %v449_v49, %v393_v48  ;;  %v408_v58 = vrot.slane %v393_v48, 4  ;;  %v3189_v59 = vperm.slane %v383_v54, %v3137_v12 }
  0x22   : > { %v451_v60 = vsel %vm358_vm0, %v450_v53, %v425_v43  ;;  %v3193_v61 = vperm.slane %v439_v55, %v3137_v12  ;;  %v453_v63 = vsel %vm358_vm0, %v437_v46, %v452_v51  ;;  %v412_v3 = vrot.slane %v405_v62, 4 }
  0x23   : > { %2657 = vrot.lane.b32.xlu0 %v2656_v57, %s3027_s12  ;;  %v457_v0 = vperm.slane %v451_v60, %v3137_v12  ;;  %v406_v1 = vrot.slane %v3189_v59, 4  ;;  %v461_v13 = vperm.slane %v453_v63, %v3137_v12  ;;  %v3205_v18 = vpack.i.bf16 %v3127_v8, %v3120_v6 }
  0x24   : > { %v462_v2 = vrot.slane %v3193_v61, 4  ;;  %v409_v20 = vsel %vm358_vm0, 0.0, %v408_v58  ;;  %v465_v21 = vsel %vm358_vm0, 0.0, %v464_v56  ;;  %v973_v23 = vrot.slane %v3117_v5, 1 }
  0x25   : > { %v2661_v16 = vpack.i.bf16 %v457_v0, %v401_v52  ;;  %v407_v17 = vsel %vm358_vm0, 0.0, %v406_v1  ;;  %v468_v22 = vrot.slane %v461_v13, 4  ;;  %2652 = vrot.lane.b32.xlu2 %v3205_v18, %s3026_s11  ;;  %v972_v26 = vrot.slane %v3114_v4, 1 }
  0x26   : > { %v463_v19 = vsel %vm358_vm0, 0.0, %v462_v2  ;;  %v413_v27 = vsel %vm358_vm0, 0.0, %v412_v3  ;;  %v410_v29 = vrot.slane %v401_v52, 4  ;;  %v2676_v31 = vpack.i.bf16 %v465_v21, %v409_v20 }
  0x27   : > { %2662 = vrot.lane.b32.xlu1 %v2661_v16, %s3028_s13  ;;  %v2671_v24 = vpack.i.bf16 %v463_v19, %v407_v17  ;;  %v469_v28 = vsel %vm358_vm0, 0.0, %v468_v22  ;;  %v2666_v5 = vpack.i.bf16 %v461_v13, %v405_v62  ;;  %v466_v32 = vrot.slane %v457_v0, 4 }
  0x28   : > { %v975_v35 = vrot.slane %v3215_v25, 1  ;;  %v977_v36 = vrot.slane %v3120_v6, 1  ;;  %v978_v4 = vrot.slane %v3127_v8, 1  ;;  %v2686_v37 = vpack.i.bf16 %v469_v28, %v413_v27 }
  0x29   : > { %v980_v38 = vrot.slane %v3221_v30, 1  ;;  %v982_v39 = vrot.slane %v3130_v9, 1  ;;  %v983_v40 = vrot.slane %v3133_v10, 1  ;;  %v411_v41 = vsel %vm358_vm0, 0.0, %v410_v29 }
  0x2a   : > { %v3238_v42 = vsel %vm971_vm1, %v972_v26, %v973_v23  ;;  %v985_v43 = vrot.slane %v3224_v33, 1  ;;  %v987_v6 = vrot.slane %v3141_v14, 1  ;;  %v467_v8 = vsel %vm358_vm0, 0.0, %v466_v32 }
  0x2b   : > { %2672 = vrot.lane.b32.xlu0 %v2671_v24, %s3029_s14  ;;  %v3244_v44 = vsel %vm971_vm1, %v982_v39, %v983_v40  ;;  %v988_v45 = vrot.slane %v3144_v15, 1  ;;  %v990_v46 = vrot.slane %v3227_v34, 1  ;;  %v3249_v47 = vsel %vm971_vm1, %v973_v23, %v975_v35 }
  0x2c   : > { %v3252_v48 = vsel %vm971_vm1, %v977_v36, %v978_v4  ;;  %v3255_v49 = vsel %vm971_vm1, %v983_v40, %v985_v43  ;;  %v1000_v50 = vrot.slane %v3244_v44, 4  ;;  %v3261_v51 = vsel %vm971_vm1, %v978_v4, %v980_v38 }
  0x2d   : > { %2667 = vrot.lane.b32.xlu2 %v2666_v5, %s3031_s16  ;;  %v3264_v52 = vsel %vm971_vm1, %v987_v6, %v988_v45  ;;  %v3267_v53 = vsel %vm971_vm1, %v988_v45, %v990_v46  ;;  %v1056_v54 = vrot.slane %v3255_v49, 4  ;;  %v3276_v58 = vpack.i.bf16 %v3144_v15, %v3141_v14 }
  0x2e   : > { %v1001_v55 = vsel %vm358_vm0, %v1000_v50, %v3238_v42  ;;  %v1012_v56 = vrot.slane %v3264_v52, 4  ;;  %v1068_v57 = vrot.slane %v3267_v53, 4  ;;  %v2681_v63 = vpack.i.bf16 %v467_v8, %v411_v41 }
  0x2f   : > { %2677 = vrot.lane.b32.xlu1 %v2676_v31, %s3030_s15  ;;  %v1007_v60 = vperm.slane %v1001_v55, %v3135_v11  ;;  %v1057_v62 = vsel %vm358_vm0, %v1056_v54, %v3249_v47  ;;  %v1002_v13 = vrot.slane %v3238_v42, 4  ;;  %v1058_v19 = vrot.slane %v3249_v47, 4 }
  0x30   : > { %v1013_v0 = vsel %vm358_vm0, %v1012_v56, %v3252_v48  ;;  %v1063_v1 = vperm.slane %v1057_v62, %v3135_v11  ;;  %v1069_v2 = vsel %vm358_vm0, %v1068_v57, %v3261_v51  ;;  %v2691_v21 = vpack.i.bf16 %v3133_v10, %v3130_v9 }
  0x31   : > { %v1019_v14 = vperm.slane %v1013_v0, %v3135_v11  ;;  %v1026_v15 = vrot.slane %v1007_v60, 4  ;;  %v1075_v3 = vperm.slane %v1069_v2, %v3135_v11  ;;  %v1003_v22 = vsel %vm358_vm0, %v3244_v44, %v1002_v13 }
  0x32   : > { %v1082_v16 = vrot.slane %v1063_v1, 4  ;;  %v1014_v23 = vrot.slane %v3252_v48, 4  ;;  %v1070_v24 = vrot.slane %v3261_v51, 4  ;;  %v1059_v31 = vsel %vm358_vm0, %v3255_v49, %v1058_v19 }
  0x33   : > { %2687 = vrot.lane.b32.xlu0 %v2686_v37, %s3032_s17  ;;  %v1027_v17 = vsel %vm358_vm0, %v1019_v14, %v1026_v15  ;;  %v1024_v28 = vrot.slane %v1019_v14, 4  ;;  %v1080_v29 = vrot.slane %v1075_v3, 4  ;;  %v1011_v9 = vperm.slane %v1003_v22, %v3135_v11 }
  0x34   : > { %v1083_v20 = vsel %vm358_vm0, %v1075_v3, %v1082_v16  ;;  %v1035_v26 = vperm.slane %v1027_v17, %v3137_v12  ;;  %v1015_v5 = vsel %vm358_vm0, %v3264_v52, %v1014_v23  ;;  %v1067_v37 = vperm.slane %v1059_v31, %v3135_v11 }
  0x35   : > { %2682 = vrot.lane.b32.xlu2 %v2681_v63, %s3033_s18  ;;  %v1091_v27 = vperm.slane %v1083_v20, %v3137_v12  ;;  %v1025_v10 = vsel %vm358_vm0, %v1024_v28, %v1007_v60  ;;  %v1081_v35 = vsel %vm358_vm0, %v1080_v29, %v1063_v1  ;;  %v1071_v38 = vsel %vm358_vm0, %v3267_v53, %v1070_v24 }
  0x36   : > { %v3312_v32 = vperm.slane %v1025_v10, %v3137_v12  ;;  %v1050_v36 = vrot.slane %v1035_v26, 4  ;;  %v3320_v40 = vperm.slane %v1081_v35, %v3137_v12  ;;  %v1023_v41 = vperm.slane %v1015_v5, %v3135_v11 }
  0x37   : > { %2697 = vrot.lane.b32.xlu1 %v3276_v58, %s3026_s11  ;;  %v1106_v4 = vrot.slane %v1091_v27, 4  ;;  %v1038_v43 = vrot.slane %v1011_v9, 4  ;;  %v1079_v6 = vperm.slane %v1071_v38, %v3135_v11  ;;  %v1094_v50 = vrot.slane %v1067_v37, 4 }
  0x38   : > { %v1048_v39 = vrot.slane %v3312_v32, 4  ;;  %v1104_v8 = vrot.slane %v3320_v40, 4  ;;  %v1051_v45 = vsel %vm358_vm0, 0.0, %v1050_v36  ;;  %v1036_v56 = vrot.slane %v1023_v41, 4 }
  0x39   : > { %v1107_v46 = vsel %vm358_vm0, 0.0, %v1106_v4  ;;  %v1039_v62 = vsel %vm358_vm0, %v1023_v41, %v1038_v43  ;;  %v1095_v63 = vsel %vm358_vm0, %v1079_v6, %v1094_v50  ;;  %v2726_v19 = vpack.i.bf16 %v1091_v27, %v1035_v26 }
  0x3a   : > { %v1049_v54 = vsel %vm358_vm0, 0.0, %v1048_v39  ;;  %v1105_v55 = vsel %vm358_vm0, 0.0, %v1104_v8  ;;  %v2731_v57 = vpack.i.bf16 %v1107_v46, %v1051_v45  ;;  %v1037_v0 = vsel %vm358_vm0, %v1036_v56, %v1011_v9 }
  0x3b   : > { %2692 = vrot.lane.b32.xlu0 %v2691_v21, %s3026_s11  ;;  %v2721_v60 = vpack.i.bf16 %v1105_v55, %v1049_v54  ;;  %v1047_v2 = vperm.slane %v1039_v62, %v3137_v12  ;;  %v1103_v14 = vperm.slane %v1095_v63, %v3137_v12 }
  0x3d   : > { %2712 = vrot.lane.b32.xlu2 %v2691_v21, %s3034_s19  ;;  %v2746_v3 = vpack.i.bf16 %v1103_v14, %v1047_v2  ;;  %v1054_v16 = vrot.slane %v1047_v2, 4  ;;  %v1110_v17 = vrot.slane %v1103_v14, 4 }
  0x3f   : > { %2707 = vrot.lane.b32.xlu1 %v3205_v18, %s3034_s19  ;;  %v1092_v18 = vrot.slane %v1079_v6, 4  ;;  %v1055_v22 = vsel %vm358_vm0, 0.0, %v1054_v16  ;;  %v1111_v23 = vsel %vm358_vm0, 0.0, %v1110_v17 }
  0x40   : > { %v2751_v24 = vpack.i.bf16 %v1111_v23, %v1055_v22 }
  0x41   : > { %v1093_v1 = vsel %vm358_vm0, %v1092_v18, %v1067_v37 }
  0x42   : > { %v1099_v15 = vperm.slane %v1093_v1, %v3137_v12 }
  0x43   : > { %2702 = vrot.lane.b32.xlu0 %v3124_v7, %s3034_s19  ;;  %v1043_v7 = vperm.slane %v1037_v0, %v3137_v12 }
  0x44   : > { %v1108_v21 = vrot.slane %v1099_v15, 4 }
  0x45   : > { %2722 = vrot.lane.b32.xlu2 %v2721_v60, %s3029_s14  ;;  %v2736_v13 = vpack.i.bf16 %v1099_v15, %v1043_v7  ;;  %v1052_v20 = vrot.slane %v1043_v7, 4 }
  0x46   : > { %v1109_v28 = vsel %vm358_vm0, 0.0, %v1108_v21 }
  0x47   : > { %2732 = vrot.lane.b32.xlu1 %v2731_v57, %s3030_s15 }
  0x4b   : > { %2717 = vrot.lane.b32.xlu0 %v3276_v58, %s3034_s19  ;;  %v1053_v58 = vsel %vm358_vm0, 0.0, %v1052_v20 }
  0x4c   : > { %v2741_v29 = vpack.i.bf16 %v1109_v28, %v1053_v58 }
  0x4d   : > { %2737 = vrot.lane.b32.xlu2 %v2736_v13, %s3028_s13 }
  0x4f   : > { %2747 = vrot.lane.b32.xlu1 %v2746_v3, %s3031_s16 }
  0x53   : > { %2727 = vrot.lane.b32.xlu0 %v2726_v19, %s3027_s12 }
  0x55   : > { %2752 = vrot.lane.b32.xlu2 %v2751_v24, %s3032_s17 }
  0x57   : > { %1184 = vrot.lane.b32.xlu1 %v3249_v47, %s3026_s11 }
  0x5b   : > { %2742 = vrot.lane.b32.xlu0 %v2741_v29, %s3033_s18 }
  0x5d   : > { %1186 = vrot.lane.b32.xlu2 %v3252_v48, %s3026_s11 }
  0x5f   : > { %1190 = vrot.lane.b32.xlu1 %v3244_v44, %s3026_s11 }
  0x63   : > { %1182 = vrot.lane.b32.xlu0 %v3238_v42, %s3026_s11 }
  0x65   : > { %1192 = vrot.lane.b32.xlu2 %v3255_v49, %s3026_s11 }
  0x67   : > { %1196 = vrot.lane.b32.xlu1 %v3267_v53, %s3026_s11 }
  0x6b   : > { %1188 = vrot.lane.b32.xlu0 %v3261_v51, %s3026_s11 }
  0x73   : > { %1194 = vrot.lane.b32.xlu0 %v3264_v52, %s3026_s11 }
  0x7f   : > { %v3371_v26 = vpop.permute.xlu2 %2652 }
  0x80   : > { %v2655_v18 = vunpack.i.h.bf16 %v3371_v26 }
  0x82   : > { %v649_v14 = vrot.slane %v2655_v18, 4 }
  0x87   : > { %v3375_v31 = vpop.permute.xlu2 %2667 }
  0x8a   : > { %v3373_v27 = vpop.permute.xlu1 %2647 }
  0x8b   : > { %v2650_v15 = vunpack.i.h.bf16 %v3373_v27  ;;  %v2649_v13 = vunpack.i.l.bf16 %v3373_v27 }
  0x8d   : > { %v637_v23 = vrot.slane %v2650_v15, 4 }
  0x8f   : > { %v2683_v35 = vpop.permute.xlu2 %2682 }
  0x90   : > { %v2685_v55 = vunpack.i.h.bf16 %v2683_v35  ;;  %v2684_v56 = vunpack.i.l.bf16 %v2683_v35 }
  0x95   : > { %v2658_v9 = vpop.permute.xlu0 %2657 }
  0x96   : > { %v2660_v37 = vunpack.i.h.bf16 %v2658_v9  ;;  %v2659_v38 = vunpack.i.l.bf16 %v2658_v9 }
  0x97   : > { %v3391_v0 = vpop.permute.xlu2 %2712 }
  0x98   : > { %v2715_v19 = vunpack.i.h.bf16 %v3391_v0  ;;  %v2714_v20 = vunpack.i.l.bf16 %v3391_v0 }
  0x99   : > { %v2663_v10 = vpop.permute.xlu1 %2662 }
  0x9a   : > { %v2665_v43 = vunpack.i.h.bf16 %v2663_v10  ;;  %v2664_v6 = vunpack.i.l.bf16 %v2663_v10 }
  0x9d   : > { %v2673_v5 = vpop.permute.xlu0 %2672 }
  0x9e   : > { %v2675_v36 = vunpack.i.h.bf16 %v2673_v5  ;;  %v2674_v4 = vunpack.i.l.bf16 %v2673_v5 }
  0xa0   : > { %v540_v39 = vsel %vm526_vm2, %v3193_v61, %v2675_v36  ;;  %v527_v41 = vsel %vm526_vm2, %v3189_v59, %v2674_v4  ;;  %v2654_v61 = vunpack.i.l.bf16 %v3371_v26  ;;  %v581_v26 = vrot.slane %v2649_v13, 4 }
  0xa1   : > { %v2678_v8 = vpop.permute.xlu1 %2677  ;;  %v529_v45 = vsel %vm528_vm3, %v527_v41, %v2659_v38  ;;  %v541_v46 = vsel %vm528_vm3, %v540_v39, %v2660_v37  ;;  %v841_v36 = vrot.slane %v2715_v19, 4  ;;  %v785_v4 = vrot.slane %v2714_v20, 4  ;;  %v2723_v37 = vpop.permute.xlu2 %2722 }
  0xa2   : > { %v2680_v50 = vunpack.i.h.bf16 %v2678_v8  ;;  %v2679_v54 = vunpack.i.l.bf16 %v2678_v8  ;;  %v593_v7 = vrot.slane %v2654_v61, 4 }
  0xa4   : > { %v531_v59 = vsel %vm530_vm4, %v529_v45, %v2679_v54  ;;  %v542_v57 = vsel %vm530_vm4, %v541_v46, %v2680_v50  ;;  %v2725_v50 = vunpack.i.h.bf16 %v2723_v37 }
  0xa5   : > { %v533_v60 = vsel %vm532_vm5, %v531_v59, %v2664_v6  ;;  %v543_v62 = vsel %vm532_vm5, %v542_v57, %v2665_v43  ;;  %v3389_v63 = vpop.permute.xlu0 %2687  ;;  %v2724_v59 = vunpack.i.l.bf16 %v2723_v37 }
  0xa6   : > { %v3394_v1 = vsel %vm534_vm6, %v533_v60, %v2684_v56  ;;  %v3397_v2 = vsel %vm534_vm6, %v543_v62, %v2685_v55 }
  0xa9   : > { %v2698_v3 = vpop.permute.xlu1 %2697 }
  0xaa   : > { %v2700_v16 = vunpack.i.h.bf16 %v2698_v3  ;;  %v2699_v17 = vunpack.i.l.bf16 %v2698_v3 }
  0xac   : > { %v650_v21 = vsel %vm358_vm0, %v2700_v16, %v649_v14  ;;  %v594_v22 = vsel %vm358_vm0, %v2699_v17, %v593_v7  ;;  %v591_v58 = vrot.slane %v2699_v17, 4  ;;  %v647_v9 = vrot.slane %v2700_v16, 4 }
  0xad   : > { %v658_v24 = vperm.slane %v650_v21, %v3135_v11  ;;  %v602_v28 = vperm.slane %v594_v22, %v3135_v11  ;;  %v2693_v29 = vpop.permute.xlu0 %2692 }
  0xae   : > { %v2695_v27 = vunpack.i.h.bf16 %v2693_v29  ;;  %v2694_v10 = vunpack.i.l.bf16 %v2693_v29  ;;  %v592_v6 = vsel %vm358_vm0, %v591_v58, %v2654_v61  ;;  %v648_v54 = vsel %vm358_vm0, %v647_v9, %v2655_v18 }
  0xaf   : > { %v671_v5 = vrot.slane %v658_v24, 4  ;;  %v615_v35 = vrot.slane %v602_v28, 4  ;;  %v3428_v14 = vperm.slane %v592_v6, %v3135_v11  ;;  %v1168_v6 = vsel %vm526_vm2, %v3312_v32, %v2724_v59 }
  0xb0   : > { %v635_v38 = vrot.slane %v2695_v27, 4  ;;  %v638_v39 = vsel %vm358_vm0, %v2695_v27, %v637_v23  ;;  %v579_v41 = vrot.slane %v2694_v10, 4  ;;  %v582_v43 = vsel %vm358_vm0, %v2694_v10, %v581_v26 }
  0xb1   : > { %v646_v8 = vperm.slane %v638_v39, %v3135_v11  ;;  %v590_v45 = vperm.slane %v582_v43, %v3135_v11  ;;  %v3416_v46 = vpop.permute.xlu1 %2707  ;;  %v603_v0 = vrot.slane %v3428_v14, 4 }
  0xb2   : > { %v636_v55 = vsel %vm358_vm0, %v635_v38, %v2650_v15  ;;  %v580_v56 = vsel %vm358_vm0, %v579_v41, %v2649_v13  ;;  %v2710_v7 = vunpack.i.h.bf16 %v3416_v46  ;;  %v2709_v13 = vunpack.i.l.bf16 %v3416_v46  ;;  %v3463_v41 = vpop.permute.xlu2 %2737 }
  0xb3   : > { %v3422_v57 = vperm.slane %v636_v55, %v3135_v11  ;;  %v673_v60 = vrot.slane %v646_v8, 4  ;;  %v3425_v61 = vperm.slane %v580_v56, %v3135_v11  ;;  %v617_v62 = vrot.slane %v590_v45, 4 }
  0xb4   : > { %v616_v18 = vsel %vm358_vm0, %v615_v35, %v590_v45  ;;  %v672_v15 = vsel %vm358_vm0, %v671_v5, %v646_v8  ;;  %v2740_v8 = vunpack.i.h.bf16 %v3463_v41  ;;  %v855_v32 = vrot.slane %v2710_v7, 4 }
  0xb5   : > { %v605_v3 = vrot.slane %v3425_v61, 4  ;;  %v2703_v16 = vpop.permute.xlu0 %2702  ;;  %v3436_v17 = vperm.slane %v616_v18, %v3137_v12  ;;  %v3439_v21 = vperm.slane %v672_v15, %v3137_v12  ;;  %v618_v58 = vsel %vm358_vm0, %v602_v28, %v617_v62 }
  0xb6   : > { %v2705_v22 = vunpack.i.h.bf16 %v2703_v16  ;;  %v2704_v23 = vunpack.i.l.bf16 %v2703_v16  ;;  %v674_v29 = vsel %vm358_vm0, %v658_v24, %v673_v60  ;;  %v661_v26 = vrot.slane %v3422_v57, 4 }
  0xb7   : > { %v2761_v9 = vpack.i.bf16 %v3439_v21, %v3436_v17  ;;  %v3447_v27 = vperm.slane %v618_v58, %v3137_v12  ;;  %v3450_v10 = vperm.slane %v674_v29, %v3137_v12  ;;  %v606_v28 = vsel %vm358_vm0, %v3428_v14, %v605_v3 }
  0xb8   : > { %v842_v5 = vsel %vm358_vm0, %v841_v36, %v2705_v22  ;;  %v843_v35 = vrot.slane %v2705_v22, 4  ;;  %v787_v37 = vrot.slane %v2704_v23, 4  ;;  %v3456_v24 = vperm.slane %v648_v54, %v3135_v11 }
  0xb9   : > { %2762 = vrot.lane.b32.xlu2 %v2761_v9, %s3028_s13  ;;  %v2766_v38 = vpack.i.bf16 %v3450_v10, %v3447_v27  ;;  %v3461_v39 = vpop.permute.xlu1 %2732  ;;  %v786_v43 = vsel %vm358_vm0, %v785_v4, %v2704_v23  ;;  %v1175_v36 = vsel %vm526_vm2, %v3320_v40, %v2725_v50  ;;  %v3475_v54 = vperm.slane %v842_v5, %v3135_v11 }
  0xba   : > { %v844_v45 = vsel %vm358_vm0, %v2715_v19, %v843_v35  ;;  %v788_v55 = vsel %vm358_vm0, %v2714_v20, %v787_v37  ;;  %v3482_v40 = vperm.slane %v606_v28, %v3137_v12  ;;  %v799_v4 = vrot.slane %v2709_v13, 4 }
  0xbb   : > { %2767 = vrot.lane.b32.xlu1 %v2766_v38, %s3031_s16  ;;  %v662_v50 = vsel %vm358_vm0, %v3456_v24, %v661_v26  ;;  %v2739_v19 = vunpack.i.l.bf16 %v3463_v41  ;;  %v659_v56 = vrot.slane %v3456_v24, 4  ;;  %v3492_v20 = vperm.slane %v786_v43, %v3135_v11 }
  0xbc   : > { %v3495_v59 = vperm.slane %v662_v50, %v3137_v12  ;;  %v852_v62 = vperm.slane %v844_v45, %v3135_v11  ;;  %v796_v18 = vperm.slane %v788_v55, %v3135_v11  ;;  %v867_v16 = vrot.slane %v3475_v54, 4 }
  0xbd   : > { %v2718_v60 = vpop.permute.xlu0 %2717  ;;  %v2735_v22 = vunpack.i.h.bf16 %v3461_v39  ;;  %v2734_v23 = vunpack.i.l.bf16 %v3461_v39  ;;  %v811_v5 = vrot.slane %v3492_v20, 4  ;;  %v631_v28 = vrot.slane %v3436_v17, 4 }
  0xbe   : > { %v2720_v15 = vunpack.i.h.bf16 %v2718_v60  ;;  %v2719_v3 = vunpack.i.l.bf16 %v2718_v60  ;;  %v2756_v14 = vpack.i.bf16 %v3495_v59, %v3482_v40  ;;  %v879_v38 = vrot.slane %v852_v62, 4 }
  0xbf   : > { %v823_v39 = vrot.slane %v796_v18, 4  ;;  %v687_v60 = vrot.slane %v3439_v21, 4  ;;  %v629_v46 = vrot.slane %v3482_v40, 4  ;;  %v604_v21 = vsel %vm358_vm0, %v603_v0, %v3425_v61 }
  0xc0   : > { %v853_v58 = vrot.slane %v2720_v15, 4  ;;  %v856_v29 = vsel %vm358_vm0, %v2720_v15, %v855_v32  ;;  %v797_v26 = vrot.slane %v2719_v3, 4  ;;  %v800_v9 = vsel %vm358_vm0, %v2719_v3, %v799_v4  ;;  %2757 = vrot.lane.b32.xlu0 %v2756_v14, %s3027_s12 }
  0xc1   : > { %v864_v35 = vperm.slane %v856_v29, %v3135_v11  ;;  %v808_v37 = vperm.slane %v800_v9, %v3135_v11  ;;  %v3515_v55 = vpop.permute.xlu1 %2747 }
  0xc2   : > { %v854_v43 = vsel %vm358_vm0, %v853_v58, %v2710_v7  ;;  %v798_v45 = vsel %vm358_vm0, %v797_v26, %v2709_v13  ;;  %v685_v58 = vrot.slane %v3495_v59, 4 }
  0xc3   : > { %v877_v32 = vrot.slane %v864_v35, 4  ;;  %v804_v4 = vperm.slane %v798_v45, %v3135_v11  ;;  %v821_v50 = vrot.slane %v808_v37, 4  ;;  %v860_v15 = vperm.slane %v854_v43, %v3135_v11  ;;  %v3550_v45 = vpop.permute.xlu2 %2752 }
  0xc4   : > { %v824_v17 = vsel %vm358_vm0, %v808_v37, %v823_v39  ;;  %v880_v3 = vsel %vm358_vm0, %v864_v35, %v879_v38 }
  0xc5   : > { %v2728_v14 = vpop.permute.xlu0 %2727  ;;  %v3524_v7 = vperm.slane %v824_v17, %v3137_v12  ;;  %v3527_v13 = vperm.slane %v880_v3, %v3137_v12  ;;  %v822_v9 = vsel %vm358_vm0, %v821_v50, %v796_v18  ;;  %v878_v35 = vsel %vm358_vm0, %v877_v32, %v852_v62 }
  0xc6   : > { %v2730_v29 = vunpack.i.h.bf16 %v2728_v14  ;;  %v2729_v26 = vunpack.i.l.bf16 %v2728_v14  ;;  %v3537_v37 = vperm.slane %v822_v9, %v3137_v12  ;;  %v3540_v38 = vperm.slane %v878_v35, %v3137_v12 }
  0xc7   : > { %v2781_v40 = vpack.i.bf16 %v3527_v13, %v3524_v7  ;;  %v812_v59 = vsel %vm358_vm0, %v804_v4, %v811_v5  ;;  %v868_v18 = vsel %vm358_vm0, %v860_v15, %v867_v16  ;;  %v660_v50 = vsel %vm358_vm0, %v659_v56, %v3422_v57 }
  0xc8   : > { %v1176_v39 = vsel %vm528_vm3, %v1175_v36, %v2730_v29  ;;  %v1169_v61 = vsel %vm528_vm3, %v1168_v6, %v2729_v26  ;;  %v820_v0 = vperm.slane %v812_v59, %v3137_v12  ;;  %v2776_v32 = vpack.i.bf16 %v3540_v38, %v3537_v37 }
  0xc9   : > { %v1177_v62 = vsel %vm530_vm4, %v1176_v39, %v2735_v22  ;;  %v1170_v43 = vsel %vm530_vm4, %v1169_v61, %v2734_v23  ;;  %2782 = vrot.lane.b32.xlu0 %v2781_v40, %s3031_s16  ;;  %v876_v5 = vperm.slane %v868_v18, %v3137_v12  ;;  %v809_v36 = vrot.slane %v804_v4, 4  ;;  %v3567_v17 = vpop.permute.xlu1 %1184 }
  0xca   : > { %v1171_v6 = vsel %vm532_vm5, %v1170_v43, %v2739_v19  ;;  %v1178_v16 = vsel %vm532_vm5, %v1177_v62, %v2740_v8  ;;  %2777 = vrot.lane.b32.xlu1 %v2776_v32, %s3028_s13  ;;  %v3561_v23 = vperm.slane %v604_v21, %v3137_v12  ;;  %v632_v4 = vsel %vm358_vm0, 0.0, %v631_v28 }
  0xcb   : > { %v2771_v22 = vpack.i.bf16 %v876_v5, %v820_v0  ;;  %v688_v19 = vsel %vm358_vm0, 0.0, %v687_v60  ;;  %v3572_v41 = vperm.slane %v660_v50, %v3137_v12  ;;  %v865_v8 = vrot.slane %v860_v15, 4  ;;  %v3600_v18 = vpop.permute.xlu2 %1186 }
  0xcc   : > { %v630_v14 = vsel %vm358_vm0, 0.0, %v629_v46  ;;  %v686_v21 = vsel %vm358_vm0, 0.0, %v685_v58  ;;  %v627_v24 = vrot.slane %v3561_v23, 4  ;;  %v810_v28 = vsel %vm358_vm0, %v809_v36, %v3492_v20 }
  0xcd   : > { %2772 = vrot.lane.b32.xlu2 %v2771_v22, %s3027_s12  ;;  %v2743_v3 = vpop.permute.xlu0 %2742  ;;  %v683_v29 = vrot.slane %v3572_v41, 4  ;;  %v2796_v60 = vpack.i.bf16 %v688_v19, %v632_v4  ;;  %v835_v26 = vrot.slane %v820_v0, 4  ;;  %v891_v9 = vrot.slane %v876_v5, 4 }
  0xce   : > { %v2745_v57 = vunpack.i.h.bf16 %v2743_v3  ;;  %v2744_v56 = vunpack.i.l.bf16 %v2743_v3  ;;  %v628_v46 = vsel %vm358_vm0, 0.0, %v627_v24  ;;  %v2791_v40 = vpack.i.bf16 %v686_v21, %v630_v14 }
  0xcf   : > { %v684_v58 = vsel %vm358_vm0, 0.0, %v683_v29  ;;  %v3591_v59 = vperm.slane %v810_v28, %v3137_v12  ;;  %v866_v20 = vsel %vm358_vm0, %v865_v8, %v3475_v54  ;;  %v2670_v39 = vunpack.i.h.bf16 %v3375_v31 }
  0xd0   : > { %v3582_v15 = vsel %vm534_vm6, %v1171_v6, %v2744_v56  ;;  %v3585_v35 = vsel %vm534_vm6, %v1178_v16, %v2745_v57  ;;  %v3597_v61 = vperm.slane %v866_v20, %v3137_v12  ;;  %v2669_v0 = vunpack.i.l.bf16 %v3375_v31 }
  0xd1   : > { %2797 = vrot.lane.b32.xlu0 %v2796_v60, %s3033_s18  ;;  %v2786_v62 = vpack.i.bf16 %v684_v58, %v628_v46  ;;  %v836_v43 = vsel %vm358_vm0, 0.0, %v835_v26  ;;  %v833_v32 = vrot.slane %v3591_v59, 4  ;;  %v892_v5 = vsel %vm358_vm0, 0.0, %v891_v9  ;;  %v1191_v50 = vpop.permute.xlu1 %1190 }
  0xd2   : > { %2792 = vrot.lane.b32.xlu1 %v2791_v40, %s3030_s15  ;;  %v889_v54 = vrot.slane %v3597_v61, 4  ;;  %v633_v36 = vrot.slane %v3447_v27, 4  ;;  %v689_v6 = vrot.slane %v3450_v10, 4  ;;  %v2690_v16 = vunpack.i.h.bf16 %v3389_v63 }
  0xd3   : > { %v2689_v31 = vunpack.i.l.bf16 %v3389_v63  ;;  %v834_v4 = vsel %vm358_vm0, 0.0, %v833_v32  ;;  %v2811_v8 = vpack.i.bf16 %v892_v5, %v836_v43  ;;  %v545_v10 = vsel %vm536_vm7, %v3397_v2, %v2670_v39  ;;  %v3632_v26 = vpop.permute.xlu2 %1192 }
  0xd4   : > { %v890_v19 = vsel %vm358_vm0, 0.0, %v889_v54  ;;  %v634_v3 = vsel %vm358_vm0, 0.0, %v633_v36  ;;  %v690_v27 = vsel %vm358_vm0, 0.0, %v689_v6  ;;  %v537_v63 = vsel %vm536_vm7, %v3394_v1, %v2669_v0 }
  0xd5   : > { %2787 = vrot.lane.b32.xlu2 %v2786_v62, %s3029_s14  ;;  %v1183_v22 = vpop.permute.xlu0 %1182  ;;  %v2806_v14 = vpack.i.bf16 %v890_v19, %v834_v4  ;;  %v3622_v21 = vsel %vm538_vm8, %v545_v10, %v2690_v16  ;;  %v3625_v24 = vsel %vm538_vm8, %v537_v63, %v2689_v31  ;;  %v839_v57 = vrot.slane %v3524_v7, 4 }
  0xd6   : > { %v895_v56 = vrot.slane %v3527_v13, 4  ;;  %v2801_v29 = vpack.i.bf16 %v690_v27, %v634_v3  ;;  %v1208_v2 = vrot.slane %v1183_v22, 4  ;;  %v837_v28 = vrot.slane %v3537_v37, 4 }
  0xd7   : > { %v893_v1 = vrot.slane %v3540_v38, 4  ;;  %v1206_v60 = vrot.slane %v1191_v50, 4  ;;  %v840_v46 = vsel %vm358_vm0, 0.0, %v839_v57  ;;  %v1262_v58 = vrot.slane %v3632_v26, 4 }
  0xd8   : > { %v896_v7 = vsel %vm358_vm0, 0.0, %v895_v56  ;;  %v1209_v13 = vsel %vm358_vm0, %v1191_v50, %v1208_v2  ;;  %v838_v20 = vsel %vm358_vm0, 0.0, %v837_v28  ;;  %v2750_v38 = vunpack.i.h.bf16 %v3515_v55 }
  0xd9   : > { %2812 = vrot.lane.b32.xlu0 %v2811_v8, %s3030_s15  ;;  %v1197_v40 = vpop.permute.xlu1 %1196  ;;  %v894_v37 = vsel %vm358_vm0, 0.0, %v893_v1  ;;  %v2749_v39 = vunpack.i.l.bf16 %v3515_v55  ;;  %v1207_v0 = vsel %vm358_vm0, %v1206_v60, %v1183_v22  ;;  %v2821_v62 = vpack.i.bf16 %v896_v7, %v840_v46 }
  0xda   : > { %2807 = vrot.lane.b32.xlu1 %v2806_v14, %s3029_s14  ;;  %v1220_v43 = vrot.slane %v3600_v18, 4  ;;  %v1217_v32 = vperm.slane %v1209_v13, %v3135_v11  ;;  %v1274_v5 = vrot.slane %v1197_v40, 4  ;;  %v2816_v54 = vpack.i.bf16 %v894_v37, %v838_v20 }
  0xdb   : > { %v2755_v36 = vunpack.i.h.bf16 %v3550_v45  ;;  %v1213_v6 = vperm.slane %v1207_v0, %v3135_v11  ;;  %v1263_v16 = vsel %vm358_vm0, %v1262_v58, %v3567_v17  ;;  %v1180_v31 = vsel %vm536_vm7, %v3585_v35, %v2750_v38 }
  0xdc   : > { %v1173_v22 = vsel %vm536_vm7, %v3582_v15, %v2749_v39  ;;  %v2754_v50 = vunpack.i.l.bf16 %v3550_v45  ;;  %v1244_v8 = vrot.slane %v1217_v32, 4  ;;  %v1269_v3 = vperm.slane %v1263_v16, %v3135_v11 }
  0xdd   : > { %2802 = vrot.lane.b32.xlu2 %v2801_v29, %s3032_s17  ;;  %v1189_v9 = vpop.permute.xlu0 %1188  ;;  %v1232_v63 = vrot.slane %v1213_v6, 4  ;;  %v3664_v35 = vsel %vm538_vm8, %v1180_v31, %v2755_v36  ;;  %v1264_v38 = vrot.slane %v3567_v17, 4 }
  0xde   : > { %v1275_v27 = vsel %vm358_vm0, %v1274_v5, %v1189_v9  ;;  %v1276_v15 = vrot.slane %v1189_v9, 4  ;;  %v3671_v28 = vsel %vm538_vm8, %v1173_v22, %v2754_v50  ;;  %v1288_v1 = vrot.slane %v1269_v3, 4 }
  0xdf   : > { %v1281_v29 = vperm.slane %v1275_v27, %v3135_v11  ;;  %v1265_v5 = vsel %vm358_vm0, %v3632_v26, %v1264_v38 }
  0xe0   : > { %v1277_v13 = vsel %vm358_vm0, %v1197_v40, %v1276_v15  ;;  %v1273_v16 = vperm.slane %v1265_v5, %v3135_v11  ;;  %v2980_v5 = vld [vmem:[%s3111_s10 + $0x48] sm:$0xff] }
  0xe1   : > { %v1286_v20 = vrot.slane %v1281_v29, 4  ;;  %v1289_v39 = vsel %vm358_vm0, %v1281_v29, %v1288_v1  ;;  %v1285_v0 = vperm.slane %v1277_v13, %v3135_v11  ;;  %v2826_v13 = vpack.i.bf16 %v3249_v47, %v3238_v42 }
  0xe2   : > { %2822 = vrot.lane.b32.xlu1 %v2821_v62, %s3032_s17  ;;  %v1297_v40 = vperm.slane %v1289_v39, %v3137_v12  ;;  %v1608_v39 = vrot.slane %v3224_v33, 2  ;;  %v1598_v47 = vrot.slane %v3215_v25, 2  ;;  %v2841_v33 = vpack.i.bf16 %v3267_v53, %v3264_v52 }
  0xe5   : > { %2817 = vrot.lane.b32.xlu2 %v2816_v54, %s3033_s18  ;;  %v1195_v55 = vpop.permute.xlu0 %1194  ;;  %v1298_v54 = vrot.slane %v1285_v0, 4 }
  0xe6   : > { %v1218_v4 = vrot.slane %v1195_v55, 4  ;;  %v1221_v19 = vsel %vm358_vm0, %v1195_v55, %v1220_v43 }
  0xe7   : > { %v1229_v10 = vperm.slane %v1221_v19, %v3135_v11  ;;  %v1299_v26 = vsel %vm358_vm0, %v1298_v54, %v1273_v16  ;;  %v2976_v19 = vld [vmem:[%s3111_s10 + $0x50] sm:$0xff]  ;;  %v1610_v54 = vrot.slane %v2980_v5, 2 }
  0xe8   : > { %v1219_v14 = vsel %vm358_vm0, %v1218_v4, %v3600_v18  ;;  %v1305_v4 = vperm.slane %v1299_v26, %v3137_v12  ;;  %v2981_v26 = vld [vmem:[%s3111_s10] sm:$0xff] }
  0xe9   : > { %v1225_v45 = vperm.slane %v1219_v14, %v3135_v11  ;;  %v1242_v57 = vrot.slane %v1229_v10, 4  ;;  %v1245_v56 = vsel %vm358_vm0, %v1229_v10, %v1244_v8  ;;  %v1611_v8 = vrot.slane %v2976_v19, 2 }
  0xea   : > { %v1253_v2 = vperm.slane %v1245_v56, %v3137_v12  ;;  %v1603_v10 = vrot.slane %v3221_v30, 2  ;;  %v1314_v30 = vrot.slane %v1305_v4, 4  ;;  %v1595_v25 = vrot.slane %v2981_v26, 2 }
  0xeb   : > { %v1230_v60 = vrot.slane %v1225_v45, 4  ;;  %v1233_v18 = vsel %vm358_vm0, %v1225_v45, %v1232_v63  ;;  %v1243_v46 = vsel %vm358_vm0, %v1242_v57, %v1217_v32  ;;  %v1287_v32 = vsel %vm358_vm0, %v1286_v20, %v1269_v3  ;;  %v3709_v3 = vld [vmem:[%s3111_s10 + $0x20] sm:$0xff]  ;;  %v2978_v20 = vld [vmem:[%s3111_s10 + $0x38] sm:$0xff] }
  0xec   : > { %1339 = vrot.lane.b32.xlu1 %v1253_v2, %s3031_s16  ;;  %v1241_v9 = vperm.slane %v1233_v18, %v3137_v12  ;;  %v1249_v7 = vperm.slane %v1243_v46, %v3137_v12  ;;  %v1260_v22 = vrot.slane %v1253_v2, 4  ;;  %v1601_v27 = vrot.slane %v3709_v3, 2 }
  0xed   : > { %v1231_v58 = vsel %vm358_vm0, %v1230_v60, %v1213_v6  ;;  %v3697_v6 = vperm.slane %v1287_v32, %v3137_v12  ;;  %v1613_v63 = vrot.slane %v3227_v34, 2  ;;  %v1300_v45 = vrot.slane %v1273_v16, 4 }
  0xee   : > { %1323 = vrot.lane.b32.xlu0 %v1241_v9, %s3027_s12  ;;  %1331 = vrot.lane.b32.xlu2 %v1249_v7, %s3028_s13  ;;  %v3683_v37 = vperm.slane %v1231_v58, %v3137_v12  ;;  %v1258_v62 = vrot.slane %v1249_v7, 4  ;;  %v1256_v55 = vrot.slane %v1241_v9, 4  ;;  %v1261_v15 = vsel %vm358_vm0, 0.0, %v1260_v22 }
  0xef   : > { %v1310_v31 = vrot.slane %v3697_v6, 4  ;;  %v1604_v57 = vsel %vm1594_vm9, %v1601_v27, %v1603_v10  ;;  %v1614_v56 = vsel %vm1594_vm9, %v1611_v8, %v1613_v63  ;;  %v1312_v2 = vrot.slane %v1297_v40, 4  ;;  %v2983_v63 = vld [vmem:[%s3111_s10 + $0x18] sm:$0xff] }
  0xf0   : > { %v1254_v43 = vrot.slane %v3683_v37, 4  ;;  %v1259_v17 = vsel %vm358_vm0, 0.0, %v1258_v62  ;;  %v1257_v50 = vsel %vm358_vm0, 0.0, %v1256_v55  ;;  %v1691_v29 = vrot.slane %v1614_v56, 4 }
  0xf1   : > { %v1311_v14 = vsel %vm358_vm0, 0.0, %v1310_v31  ;;  %v1693_v34 = vrot.slane %v1604_v57, 4  ;;  %v1301_v18 = vsel %vm358_vm0, %v1285_v0, %v1300_v45  ;;  %v1315_v46 = vsel %vm358_vm0, 0.0, %v1314_v30  ;;  %v2982_v31 = vld [vmem:[%s3111_s10 + $0x30] sm:$0xff] }
  0xf2   : > { %v1255_v36 = vsel %vm358_vm0, 0.0, %v1254_v43  ;;  %v3723_v1 = vsel %vm358_vm0, %v1691_v29, %v1604_v57  ;;  %v1313_v9 = vsel %vm358_vm0, 0.0, %v1312_v2  ;;  %v1309_v7 = vperm.slane %v1301_v18, %v3137_v12  ;;  %v2979_v43 = vld [vmem:[%s3111_s10 + $0x8] sm:$0xff]  ;;  %s326_s10 = scalar_lea.vmem %s4532_s4, %s4397_s29 }
  0xf3   : > { %v3726_v60 = vsel %vm358_vm0, %v1614_v56, %v1693_v34  ;;  %v1606_v38 = vrot.slane %v2978_v20, 2  ;;  %v1596_v42 = vrot.slane %v2979_v43, 2  ;;  %v2836_v16 = vpack.i.bf16 %v3255_v49, %v3244_v44 }
  0xf4   : > { %1351 = vrot.lane.b32.xlu1 %v1297_v40, %s3027_s12  ;;  %v1316_v58 = vrot.slane %v1309_v7, 4  ;;  %v2831_v55 = vpack.i.bf16 %v3261_v51, %v3252_v48  ;;  %v1605_v22 = vrot.slane %v2982_v31, 2  ;;  %v2846_v10 = vpack.i.bf16 %v1604_v57, %v1614_v56 }
  0xf5   : > { %v1609_v62 = vsel %vm1594_vm9, %v1606_v38, %v1608_v39  ;;  %v1599_v32 = vsel %vm1594_vm9, %v1596_v42, %v1598_v47  ;;  %v1597_v53 = vsel %vm1594_vm9, %v1595_v25, %v1596_v42 }
  0xf6   : > { %1335 = vrot.lane.b32.xlu0 %v1259_v17, %s3033_s18  ;;  %1319 = vrot.lane.b32.xlu2 %v1255_v36, %s3029_s14  ;;  %v1317_v0 = vsel %vm358_vm0, 0.0, %v1316_v58  ;;  %v1679_v40 = vrot.slane %v1609_v62, 4  ;;  %v1681_v36 = vrot.slane %v1599_v32, 4  ;;  %v1607_v44 = vsel %vm1594_vm9, %v1605_v22, %v1606_v38 }
  0xf7   : > { %v1625_v49 = vrot.slane %v1597_v53, 4  ;;  %v1623_v48 = vrot.slane %v1607_v44, 4  ;;  %v2861_v30 = vpack.i.bf16 %v1597_v53, %v1607_v44 }
  0xf8   : > { %v3751_v17 = vsel %vm358_vm0, %v1679_v40, %v1599_v32  ;;  %v3760_v52 = vsel %vm358_vm0, %v1609_v62, %v1681_v36 }
  0xf9   : > { %v3771_v51 = vsel %vm358_vm0, %v1607_v44, %v1625_v49  ;;  %v3775_v19 = vsel %vm358_vm0, %v1623_v48, %v1597_v53 }
  0xfc   : > { %1327 = vrot.lane.b32.xlu1 %v1257_v50, %s3030_s15  ;;  %v3765_v50 = vsel %vm1594_vm9, %v1610_v54, %v1611_v8 }
  0xfe   : > { %1347 = vrot.lane.b32.xlu0 %v1311_v14, %s3029_s14  ;;  %1343 = vrot.lane.b32.xlu2 %v1261_v15, %s3032_s17  ;;  %v1600_v14 = vrot.slane %v2983_v63, 2 }
 0x100   : > { %v3788_v45 = vsel %vm1594_vm9, %v1600_v14, %v1601_v27 }
 0x104   : > { %1363 = vrot.lane.b32.xlu1 %v1315_v46, %s3033_s18 }
 0x106   : > { %1359 = vrot.lane.b32.xlu0 %v1305_v4, %s3028_s13  ;;  %1355 = vrot.lane.b32.xlu2 %v1313_v9, %s3030_s15  ;;  %v2851_v4 = vpack.i.bf16 %v3765_v50, %v1609_v62 }
 0x10c   : > { %2827 = vrot.lane.b32.xlu1 %v2826_v13, %s3034_s19 }
 0x10e   : > { %1371 = vrot.lane.b32.xlu0 %v1317_v0, %s3032_s17  ;;  %1367 = vrot.lane.b32.xlu2 %v1309_v7, %s3031_s16 }
 0x113   : > { %v2763_v8 = vpop.permute.xlu2 %2762 }
 0x114   : > { %2842 = vrot.lane.b32.xlu1 %v2841_v33, %s3034_s19  ;;  %v2765_v43 = vunpack.i.h.bf16 %v2763_v8  ;;  %v2764_v42 = vunpack.i.l.bf16 %v2763_v8 }
 0x116   : > { %2837 = vrot.lane.b32.xlu0 %v2836_v16, %s3034_s19  ;;  %2832 = vrot.lane.b32.xlu2 %v2831_v55, %s3034_s19 }
 0x11c   : > { %2852 = vrot.lane.b32.xlu1 %v2851_v4, %s3026_s11 }
 0x11e   : > { %2025 = vrot.lane.b32.xlu0 %v1614_v56, %s3034_s19  ;;  %2847 = vrot.lane.b32.xlu2 %v2846_v10, %s3026_s11  ;;  %v2856_v56 = vpack.i.bf16 %v3788_v45, %v1599_v32 }
 0x124   : > { %2023 = vrot.lane.b32.xlu1 %v3765_v50, %s3034_s19 }
 0x126   : > { %2021 = vrot.lane.b32.xlu0 %v1609_v62, %s3034_s19  ;;  %2017 = vrot.lane.b32.xlu2 %v1604_v57, %s3034_s19 }
 0x127   : > { %v2773_v15 = vpop.permute.xlu2 %2772 }
 0x128   : > { %v2775_v26 = vunpack.i.h.bf16 %v2773_v15  ;;  %v2774_v25 = vunpack.i.l.bf16 %v2773_v15 }
 0x12c   : > { %2013 = vrot.lane.b32.xlu1 %v1599_v32, %s3034_s19 }
 0x12d   : > { %v2768_v9 = vpop.permute.xlu1 %2767 }
 0x12e   : > { %2862 = vrot.lane.b32.xlu0 %v2861_v30, %s3026_s11  ;;  %2857 = vrot.lane.b32.xlu2 %v2856_v56, %s3026_s11  ;;  %v2770_v56 = vunpack.i.h.bf16 %v2768_v9 }
 0x12f   : > { %v2788_v29 = vpop.permute.xlu2 %2787 }
 0x130   : > { %v2790_v34 = vunpack.i.h.bf16 %v2788_v29  ;;  %v2789_v2 = vunpack.i.l.bf16 %v2788_v29  ;;  %v2769_v29 = vunpack.i.l.bf16 %v2768_v9 }
 0x132   : > { %v754_v57 = vsel %vm526_vm2, %v3572_v41, %v2790_v34  ;;  %v747_v3 = vsel %vm526_vm2, %v3561_v23, %v2789_v2  ;;  %v2758_v27 = vpop.permute.xlu0 %2757 }
 0x133   : > { %v2760_v18 = vunpack.i.h.bf16 %v2758_v27  ;;  %v2759_v46 = vunpack.i.l.bf16 %v2758_v27 }
 0x134   : > { %2011 = vrot.lane.b32.xlu1 %v1597_v53, %s3034_s19 }
 0x135   : > { %v748_v7 = vsel %vm528_vm3, %v747_v3, %v2759_v46  ;;  %v755_v13 = vsel %vm528_vm3, %v754_v57, %v2760_v18 }
 0x136   : > { %2019 = vrot.lane.b32.xlu0 %v1607_v44, %s3034_s19  ;;  %2015 = vrot.lane.b32.xlu2 %v3788_v45, %s3034_s19 }
 0x137   : > { %v2803_v58 = vpop.permute.xlu2 %2802 }
 0x138   : > { %v2805_v34 = vunpack.i.h.bf16 %v2803_v58 }
 0x13b   : > { %v3804_v41 = vpop.permute.xlu0 %2782 }
 0x13c   : > { %v2778_v20 = vpop.permute.xlu1 %2777 }
 0x13f   : > { %v3806_v23 = vpop.permute.xlu2 %2817 }
 0x143   : > { %v2798_v38 = vpop.permute.xlu0 %2797 }
 0x144   : > { %v2793_v39 = vpop.permute.xlu1 %2792  ;;  %v2800_v15 = vunpack.i.h.bf16 %v2798_v38  ;;  %v2799_v30 = vunpack.i.l.bf16 %v2798_v38 }
 0x145   : > { %v2795_v0 = vunpack.i.h.bf16 %v2793_v39  ;;  %v2794_v62 = vunpack.i.l.bf16 %v2793_v39 }
 0x147   : > { %v749_v47 = vsel %vm530_vm4, %v748_v7, %v2794_v62  ;;  %v756_v40 = vsel %vm530_vm4, %v755_v13, %v2795_v0  ;;  %v2780_v0 = vunpack.i.h.bf16 %v2778_v20  ;;  %v2779_v62 = vunpack.i.l.bf16 %v2778_v20 }
 0x148   : > { %v3810_v33 = vpop.permute.xlu2 %1331  ;;  %v750_v32 = vsel %vm532_vm5, %v749_v47, %v2764_v42  ;;  %v757_v5 = vsel %vm532_vm5, %v756_v40, %v2765_v43  ;;  %v2820_v43 = vunpack.i.h.bf16 %v3806_v23  ;;  %v2819_v42 = vunpack.i.l.bf16 %v3806_v23 }
 0x149   : > { %v758_v2 = vsel %vm534_vm6, %v757_v5, %v2800_v15  ;;  %v2785_v47 = vunpack.i.h.bf16 %v3804_v41  ;;  %v2784_v40 = vunpack.i.l.bf16 %v3804_v41  ;;  %v2225_v41 = vrot.slane %v3671_v28, 4 }
 0x14a   : > { %v759_v3 = vsel %vm536_vm7, %v758_v2, %v2770_v56 }
 0x14b   : > { %v2813_v54 = vpop.permute.xlu0 %2812  ;;  %v760_v18 = vsel %vm538_vm8, %v759_v3, %v2805_v34 }
 0x14c   : > { %v2808_v36 = vpop.permute.xlu1 %2807  ;;  %v2815_v31 = vunpack.i.h.bf16 %v2813_v54  ;;  %v2814_v22 = vunpack.i.l.bf16 %v2813_v54  ;;  %v2220_v38 = vrot.slane %v760_v18, 4 }
 0x14d   : > { %v2810_v16 = vunpack.i.h.bf16 %v2808_v36  ;;  %v2809_v55 = vunpack.i.l.bf16 %v2808_v36 }
 0x14f   : > { %v960_v53 = vsel %vm526_vm2, %v3597_v61, %v2810_v16  ;;  %v953_v44 = vsel %vm526_vm2, %v3591_v59, %v2809_v55  ;;  %v2804_v61 = vunpack.i.l.bf16 %v2803_v58  ;;  %v751_v59 = vsel %vm534_vm6, %v750_v32, %v2799_v30 }
 0x150   : > { %v1320_v49 = vpop.permute.xlu2 %1319  ;;  %v961_v48 = vsel %vm528_vm3, %v960_v53, %v2775_v26  ;;  %v954_v4 = vsel %vm528_vm3, %v953_v44, %v2774_v25  ;;  %v752_v27 = vsel %vm536_vm7, %v751_v59, %v2769_v29  ;;  %v3830_v58 = vsel %vm2241_vm10, %v3622_v21, %v2220_v38 }
 0x151   : > { %v962_v10 = vsel %vm530_vm4, %v961_v48, %v2815_v31  ;;  %v955_v8 = vsel %vm530_vm4, %v954_v4, %v2814_v22  ;;  %v753_v46 = vsel %vm538_vm8, %v752_v27, %v2804_v61  ;;  %v2226_v25 = vrot.slane %v3664_v35, 4 }
 0x152   : > { %v2219_v9 = vrot.slane %v753_v46, 4  ;;  %v963_v5 = vsel %vm532_vm5, %v962_v10, %v2780_v0  ;;  %v956_v21 = vsel %vm532_vm5, %v955_v8, %v2779_v62  ;;  %v1374_v48 = vsel %vm526_vm2, %v3683_v37, %v1320_v49 }
 0x153   : > { %v957_v16 = vsel %vm534_vm6, %v956_v21, %v2819_v42 }
 0x154   : > { %v2823_v63 = vpop.permute.xlu1 %2822  ;;  %v3834_v39 = vsel %vm2241_vm10, %v3625_v24, %v2219_v9  ;;  %v964_v24 = vsel %vm534_vm6, %v963_v5, %v2820_v43  ;;  %v958_v23 = vsel %vm536_vm7, %v957_v16, %v2784_v40 }
 0x155   : > { %v2825_v54 = vunpack.i.h.bf16 %v2823_v63  ;;  %v2824_v36 = vunpack.i.l.bf16 %v2823_v63  ;;  %v965_v55 = vsel %vm536_vm7, %v964_v24, %v2785_v47 }
 0x157   : > { %v966_v31 = vsel %vm538_vm8, %v965_v55, %v2825_v54  ;;  %v959_v22 = vsel %vm538_vm8, %v958_v23, %v2824_v36 }
 0x158   : > { %v1344_v14 = vpop.permute.xlu2 %1343  ;;  %v3851_v53 = vsel %vm2241_vm10, %v966_v31, %v2226_v25  ;;  %v3854_v44 = vsel %vm2241_vm10, %v959_v22, %v2225_v41 }
 0x15e   : > { %v1340_v57 = vpop.permute.xlu1 %1339 }
 0x160   : > { %v1324_v7 = vpop.permute.xlu0 %1323  ;;  %v1356_v13 = vpop.permute.xlu2 %1355 }
 0x161   : > { %v1375_v4 = vsel %vm528_vm3, %v1374_v48, %v1324_v7 }
 0x166   : > { %v1352_v32 = vpop.permute.xlu1 %1351 }
 0x168   : > { %v1336_v20 = vpop.permute.xlu0 %1335  ;;  %v1368_v26 = vpop.permute.xlu2 %1367 }
 0x16e   : > { %v1328_v10 = vpop.permute.xlu1 %1327 }
 0x16f   : > { %v1376_v35 = vsel %vm530_vm4, %v1375_v4, %v1328_v10 }
 0x170   : > { %v1377_v28 = vsel %vm532_vm5, %v1376_v35, %v3810_v33  ;;  %v1348_v8 = vpop.permute.xlu0 %1347  ;;  %v3864_v30 = vpop.permute.xlu2 %2832  ;;  %v1635_v35 = vrot.slane %v3765_v50, 4 }
 0x171   : > { %v1378_v63 = vsel %vm534_vm6, %v1377_v28, %v1336_v20  ;;  %v1381_v56 = vsel %vm526_vm2, %v3697_v6, %v1348_v8  ;;  %v2834_v3 = vunpack.i.l.bf16 %v3864_v30  ;;  %v2835_v23 = vunpack.i.h.bf16 %v3864_v30 }
 0x172   : > { %v1379_v15 = vsel %vm536_vm7, %v1378_v63, %v1340_v57  ;;  %v1382_v49 = vsel %vm528_vm3, %v1381_v56, %v1352_v32  ;;  %v3938_v63 = vperm.slane %v3723_v1, %v3135_v11 }
 0x173   : > { %v3869_v37 = vsel %vm538_vm8, %v1379_v15, %v1344_v14  ;;  %v1383_v34 = vsel %vm530_vm4, %v1382_v49, %v1356_v13  ;;  %v1426_v18 = vrot.slane %v2834_v3, 4 }
 0x174   : > { %2585 = vmatpush.msk.msra.mxu2 %vm2241_vm10, %v3869_v37 }
 0x176   : > { %v1364_v29 = vpop.permute.xlu1 %1363 }
 0x178   : > { %v1360_v33 = vpop.permute.xlu0 %1359  ;;  %v3876_v2 = vpop.permute.xlu2 %2847 }
 0x179   : > { %v1384_v61 = vsel %vm532_vm5, %v1383_v34, %v1360_v33  ;;  %v2849_v38 = vunpack.i.l.bf16 %v3876_v2  ;;  %v2850_v21 = vunpack.i.h.bf16 %v3876_v2 }
 0x17a   : > { %v1385_v59 = vsel %vm534_vm6, %v1384_v61, %v1364_v29 }
 0x17b   : > { %v1386_v14 = vsel %vm536_vm7, %v1385_v59, %v1368_v26  ;;  %v1897_v5 = vrot.slane %v2849_v38, 4  ;;  %v1636_v59 = vsel %vm358_vm0, %v1635_v35, %v3788_v45 }
 0x17d   : > { %v1898_v25 = vsel %vm358_vm0, %v1897_v5, %v2850_v21  ;;  %v3965_v5 = vperm.slane %v3775_v19, %v3135_v11 }
 0x17e   : > { %v3879_v57 = vpop.permute.xlu1 %2827  ;;  %v1904_v15 = vperm.slane %v1898_v25, %v3135_v11 }
 0x17f   : > { %v2829_v46 = vunpack.i.l.bf16 %v3879_v57  ;;  %v2830_v54 = vunpack.i.h.bf16 %v3879_v57 }
 0x180   : > { %v1372_v6 = vpop.permute.xlu0 %1371  ;;  %v3889_v7 = vpop.permute.xlu2 %2017 }
 0x181   : > { %v3884_v27 = vsel %vm538_vm8, %v1386_v14, %v1372_v6  ;;  %v1414_v43 = vrot.slane %v2829_v46, 4  ;;  %v3955_v14 = vperm.slane %v3751_v17, %v3135_v11 }
 0x182   : > { %2587 = vmatpush.msk.msra.mxu3 %vm2241_vm10, %v3884_v27 }
 0x186   : > { %v3891_v13 = vpop.permute.xlu1 %2842 }
 0x187   : > { %v2844_v9 = vunpack.i.l.bf16 %v3891_v13  ;;  %v2845_v0 = vunpack.i.h.bf16 %v3891_v13 }
 0x188   : > { %v3896_v62 = vpop.permute.xlu0 %2837  ;;  %v3929_v4 = vpop.permute.xlu2 %2857 }
 0x189   : > { %v1424_v42 = vrot.slane %v2844_v9, 4  ;;  %v3899_v47 = vsel %vm358_vm0, %v2844_v9, %v1426_v18  ;;  %v2840_v40 = vunpack.i.h.bf16 %v3896_v62  ;;  %v2839_v32 = vunpack.i.l.bf16 %v3896_v62 }
 0x18a   : > { %v1480_v36 = vrot.slane %v2845_v0, 4  ;;  %v2859_v29 = vunpack.i.l.bf16 %v3929_v4  ;;  %v1909_v9 = vrot.slane %v1904_v15, 4  ;;  %v4108_v62 = vperm.slane %v3726_v60, %v3135_v11 }
 0x18b   : > { %v1425_v24 = vsel %vm358_vm0, %v1424_v42, %v2834_v3  ;;  %v1468_v16 = vrot.slane %v2840_v40, 4  ;;  %v1412_v20 = vrot.slane %v2839_v32, 4  ;;  %v3913_v55 = vsel %vm358_vm0, %v2839_v32, %v1414_v43 }
 0x18c   : > { %v3923_v31 = vperm.slane %v1425_v24, %v3135_v11  ;;  %v1481_v22 = vsel %vm358_vm0, %v1480_v36, %v2835_v23  ;;  %v1703_v32 = vrot.slane %v3938_v63, 4  ;;  %v3968_v36 = vperm.slane %v1636_v59, %v3135_v11 }
 0x18d   : > { %v1469_v41 = vsel %vm358_vm0, %v1468_v16, %v2830_v54  ;;  %v1413_v28 = vsel %vm358_vm0, %v1412_v20, %v2829_v46  ;;  %v1487_v56 = vperm.slane %v1481_v22, %v3135_v11  ;;  %v1899_v20 = vrot.slane %v2850_v21, 4 }
 0x18e   : > { %v3916_v26 = vpop.permute.xlu1 %2852  ;;  %v1475_v48 = vperm.slane %v1469_v41, %v3135_v11  ;;  %v1436_v34 = vrot.slane %v3923_v31, 4  ;;  %v3947_v61 = vperm.slane %v1413_v28, %v3135_v11  ;;  %v1887_v30 = vrot.slane %v2859_v29, 4 }
 0x18f   : > { %v2854_v8 = vunpack.i.l.bf16 %v3916_v26  ;;  %v4535_v3 = vunpack.i.h.bf16 %v3916_v26  ;;  %v1492_v43 = vrot.slane %v1487_v56, 4 }
 0x190   : > { %v3931_v10 = vpop.permute.xlu0 %2025  ;;  %v1494_v49 = vrot.slane %v1475_v48, 4  ;;  %v1437_v16 = vsel %vm358_vm0, %v1436_v34, %v3947_v61  ;;  %v1704_v34 = vsel %vm358_vm0, %v1703_v32, %v3955_v14 }
 0x191   : > { %v1885_v33 = vrot.slane %v2854_v8, 4  ;;  %v2103_v6 = vrot.slane %v3931_v10, 4  ;;  %v3977_v41 = vperm.slane %v1437_v16, %v3137_v12  ;;  %v1841_v19 = vrot.slane %v4535_v3, 4 }
 0x192   : > { %v1495_v42 = vsel %vm358_vm0, %v1487_v56, %v1494_v49  ;;  %v1888_v13 = vsel %vm358_vm0, %v2854_v8, %v1887_v30 }
 0x193   : > { %v1886_v1 = vsel %vm358_vm0, %v1885_v33, %v2859_v29  ;;  %v2104_v25 = vsel %vm358_vm0, %v2103_v6, %v3889_v7  ;;  %v3983_v35 = vperm.slane %v1495_v42, %v3137_v12  ;;  %v1460_v49 = vrot.slane %v3977_v41, 4 }
 0x194   : > { %v1892_v18 = vperm.slane %v1886_v1, %v3135_v11  ;;  %v1493_v33 = vsel %vm358_vm0, %v1492_v43, %v1475_v48  ;;  %v3997_v59 = vperm.slane %v2104_v25, %v3135_v11  ;;  %v4004_v6 = vperm.slane %v1704_v34, %v3137_v12 }
 0x195   : > { %v1647_v43 = vrot.slane %v3968_v36, 4  ;;  %v1461_v32 = vsel %vm358_vm0, 0.0, %v1460_v49 }
 0x196   : > { %v3959_v46 = vpop.permute.xlu1 %2023  ;;  %v1911_v17 = vrot.slane %v1892_v18, 4  ;;  %v1910_v22 = vsel %vm358_vm0, %v1909_v9, %v1892_v18  ;;  %v4536_v18 = vunpack.i.h.bf16 %v3929_v4  ;;  %v1727_v3 = vrot.slane %v4004_v6, 4 }
 0x197   : > { %v3987_v56 = vperm.slane %v1910_v22, %v3137_v12 }
 0x198   : > { %v3970_v24 = vpop.permute.xlu0 %2021  ;;  %v1912_v28 = vsel %vm358_vm0, %v1904_v15, %v1911_v17  ;;  %v4001_v15 = vperm.slane %v1493_v33, %v3137_v12  ;;  %v1842_v16 = vsel %vm358_vm0, %v1841_v19, %v4536_v18  ;;  %v2115_v33 = vrot.slane %v3997_v59, 4 }
 0x199   : > { %v3990_v21 = vperm.slane %v1912_v28, %v3137_v12  ;;  %v1933_v1 = vrot.slane %v3987_v56, 4  ;;  %v2091_v9 = vrot.slane %v3970_v24, 4  ;;  %v1648_v28 = vsel %vm358_vm0, %v1647_v43, %v3965_v5 }
 0x19a   : > { %v1482_v19 = vrot.slane %v2835_v23, 4  ;;  %v4041_v18 = vperm.slane %v1648_v28, %v3137_v12  ;;  %v1728_v29 = vsel %vm358_vm0, 0.0, %v1727_v3 }
 0x19b   : > { %v2871_v48 = vpack.i.bf16 %v3983_v35, %v3990_v21  ;;  %v1934_v17 = vsel %vm358_vm0, 0.0, %v1933_v1  ;;  %v1516_v1 = vrot.slane %v4001_v15, 4 }
 0x19c   : > { %v2866_v22 = vpack.i.bf16 %v1934_v17, %v1461_v32  ;;  %v1705_v32 = vrot.slane %v3955_v14, 4  ;;  %v1848_v17 = vperm.slane %v1842_v16, %v3135_v11  ;;  %v1470_v14 = vrot.slane %v2830_v54, 4  ;;  %v4054_v16 = vpop.permute.xlu2 %2015 }
 0x19d   : > { %2872 = vrot.lane.b32.xlu0 %v2871_v48, %s3027_s12  ;;  %v2047_v48 = vrot.slane %v3959_v46, 4  ;;  %v1483_v28 = vsel %vm358_vm0, %v2845_v0, %v1482_v19 }
 0x19e   : > { %v4011_v42 = vpop.permute.xlu1 %2013  ;;  %2867 = vrot.lane.b32.xlu2 %v2866_v22, %s3029_s14  ;;  %v1517_v22 = vsel %vm358_vm0, 0.0, %v1516_v1  ;;  %v1853_v54 = vrot.slane %v1848_v17, 4  ;;  %v1671_v1 = vrot.slane %v4041_v18, 4  ;;  %v1706_v3 = vsel %vm358_vm0, %v3938_v63, %v1705_v32 }
 0x19f   : > { %v2092_v25 = vsel %vm358_vm0, %v2091_v9, %v4011_v42  ;;  %v1900_v9 = vsel %vm358_vm0, %v2849_v38, %v1899_v20  ;;  %v2876_v0 = vpack.i.bf16 %v1728_v29, %v1517_v22  ;;  %v4084_v63 = vperm.slane %v1483_v28, %v3135_v11 }
 0x1a0   : > { %v2098_v34 = vperm.slane %v2092_v25, %v3135_v11  ;;  %v4025_v49 = vpop.permute.xlu0 %2862  ;;  %v4050_v20 = vperm.slane %v1900_v9, %v3135_v11  ;;  %v1471_v30 = vsel %vm358_vm0, %v2840_v40, %v1470_v14  ;;  %v4097_v22 = vperm.slane %v1888_v13, %v3135_v11 }
 0x1a1   : > { %v4537_v43 = vunpack.i.l.bf16 %v4025_v49  ;;  %v4538_v2 = vunpack.i.h.bf16 %v4025_v49  ;;  %v1672_v28 = vsel %vm358_vm0, 0.0, %v1671_v1  ;;  %v4118_v13 = vperm.slane %v1471_v30, %v3135_v11 }
 0x1a2   : > { %v2116_v25 = vsel %vm358_vm0, %v2115_v33, %v2098_v34  ;;  %v2048_v33 = vsel %vm358_vm0, %v2047_v48, %v4054_v16  ;;  %v1935_v48 = vrot.slane %v3990_v21, 4  ;;  %v1518_v21 = vrot.slane %v3983_v35, 4 }
 0x1a3   : > { %v1829_v38 = vrot.slane %v4537_v43, 4  ;;  %v4047_v23 = vperm.slane %v2116_v25, %v3137_v12  ;;  %v2117_v43 = vrot.slane %v2098_v34, 4  ;;  %v1921_v34 = vrot.slane %v4050_v20, 4 }
 0x1a4   : > { %v1936_v35 = vsel %vm358_vm0, 0.0, %v1935_v48  ;;  %v1715_v30 = vrot.slane %v4108_v62, 4 }
 0x1a5   : > { %v1830_v9 = vsel %vm358_vm0, %v1829_v38, %v4538_v2  ;;  %v2139_v57 = vrot.slane %v4047_v23, 4  ;;  %v4077_v38 = vperm.slane %v2048_v33, %v3135_v11  ;;  %v2118_v1 = vsel %vm358_vm0, %v3997_v59, %v2117_v43 }
 0x1a6   : > { %v1836_v25 = vperm.slane %v1830_v9, %v3135_v11  ;;  %2877 = vrot.lane.b32.xlu2 %v2876_v0, %s3029_s14  ;;  %v4099_v29 = vpop.permute.xlu1 %2011  ;;  %v1922_v59 = vsel %vm358_vm0, %v1921_v34, %v4097_v22  ;;  %v1714_v34 = vperm.slane %v1706_v3, %v3137_v12  ;;  %v1423_v3 = vperm.slane %v3913_v55, %v3135_v11 }
 0x1a7   : > { %v2140_v19 = vsel %vm358_vm0, 0.0, %v2139_v57  ;;  %v2059_v40 = vrot.slane %v4077_v38, 4  ;;  %v1637_v55 = vrot.slane %v3788_v45, 4 }
 0x1a8   : > { %v4079_v2 = vpop.permute.xlu0 %2019  ;;  %2176 = vrot.lane.b32.xlu1 %v2140_v19, %s3029_s14  ;;  %v1854_v9 = vsel %vm358_vm0, %v1853_v54, %v1836_v25  ;;  %v1855_v33 = vrot.slane %v1836_v25, 4  ;;  %v1504_v25 = vrot.slane %v4084_v63, 4  ;;  %v1519_v19 = vsel %vm358_vm0, 0.0, %v1518_v21 }
 0x1a9   : > { %v2035_v8 = vrot.slane %v4079_v2, 4  ;;  %v4089_v32 = vperm.slane %v1854_v9, %v3137_v12  ;;  %v2886_v60 = vpack.i.bf16 %v1519_v19, %v1936_v35  ;;  %v1649_v21 = vrot.slane %v3965_v5, 4 }
 0x1aa   : > { %v1928_v35 = vperm.slane %v1922_v59, %v3137_v12 }
 0x1ab   : > { %v2036_v57 = vsel %vm358_vm0, %v2035_v8, %v4099_v29  ;;  %v1877_v54 = vrot.slane %v4089_v32, 4  ;;  %v2126_v8 = vperm.slane %v2118_v1, %v3137_v12  ;;  %v1650_v5 = vsel %vm358_vm0, %v3968_v36, %v1649_v21 }
 0x1ac   : > { %v4112_v14 = vperm.slane %v2036_v57, %v3135_v11  ;;  %v1856_v57 = vsel %vm358_vm0, %v1848_v17, %v1855_v33  ;;  %v1505_v17 = vsel %vm358_vm0, %v1504_v25, %v4118_v13  ;;  %v2093_v1 = vrot.slane %v4011_v42, 4 }
 0x1ad   : > { %v1878_v0 = vsel %vm358_vm0, 0.0, %v1877_v54  ;;  %v1435_v54 = vperm.slane %v3899_v47, %v3135_v11  ;;  %v1864_v33 = vperm.slane %v1856_v57, %v3137_v12  ;;  %v1690_v47 = vperm.slane %v3760_v52, %v3135_v11 }
 0x1ae   : > { %v2881_v48 = vpack.i.bf16 %v1672_v28, %v1878_v0  ;;  %v2060_v9 = vsel %vm358_vm0, %v2059_v40, %v4112_v14  ;;  %v2105_v28 = vrot.slane %v3889_v7, 4  ;;  %2180 = vrot.lane.b32.xlu2 %v2126_v8, %s3027_s12  ;;  %v4539_v40 = vunpack.i.h.bf16 %v3929_v4 }
 0x1af   : > { %v4131_v43 = vperm.slane %v2060_v9, %v3137_v12  ;;  %v1511_v25 = vperm.slane %v1505_v17, %v3137_v12  ;;  %v4156_v19 = vsel %vm358_vm0, %v1715_v30, %v1690_v47  ;;  %v2891_v36 = vpack.i.bf16 %v1864_v33, %v1714_v34 }
 0x1b0   : > { %2882 = vrot.lane.b32.xlu0 %v2881_v48, %s3029_s14  ;;  %2887 = vrot.lane.b32.xlu1 %v2886_v60, %s3030_s15  ;;  %v1843_v7 = vrot.slane %v4539_v40, 4  ;;  %v1448_v48 = vrot.slane %v1435_v54, 4  ;;  %v2106_v4 = vsel %vm358_vm0, %v3931_v10, %v2105_v28  ;;  %v4540_v42 = vunpack.i.h.bf16 %v3916_v26 }
 0x1b1   : > { %v2083_v0 = vrot.slane %v4131_v43, 4  ;;  %v2896_v60 = vpack.i.bf16 %v1511_v25, %v1928_v35  ;;  %v2094_v9 = vsel %vm358_vm0, %v3970_v24, %v2093_v1  ;;  %v1729_v57 = vrot.slane %v1714_v34, 4 }
 0x1b2   : > { %v1844_v52 = vsel %vm358_vm0, %v4540_v42, %v1843_v7  ;;  %v1879_v59 = vrot.slane %v1864_v33, 4  ;;  %v4541_v21 = vunpack.i.h.bf16 %v4025_v49  ;;  %v1937_v10 = vrot.slane %v1928_v35, 4 }
 0x1b3   : > { %v2084_v17 = vsel %vm358_vm0, 0.0, %v2083_v0  ;;  %v1450_v26 = vrot.slane %v1423_v3, 4  ;;  %v1520_v28 = vrot.slane %v1511_v25, 4  ;;  %v1438_v24 = vrot.slane %v3947_v61, 4 }
 0x1b4   : > { %v1831_v30 = vrot.slane %v4541_v21, 4  ;;  %v4174_v34 = vperm.slane %v1844_v52, %v3135_v11  ;;  %v4177_v45 = vperm.slane %v2106_v4, %v3135_v11  ;;  %v4180_v33 = vperm.slane %v2094_v9, %v3135_v11 }
 0x1b5   : > { %v2141_v40 = vrot.slane %v2126_v8, 4  ;;  %v1730_v7 = vsel %vm358_vm0, 0.0, %v1729_v57  ;;  %v1880_v35 = vsel %vm358_vm0, 0.0, %v1879_v59  ;;  %v1449_v1 = vsel %vm358_vm0, %v1448_v48, %v1423_v3 }
 0x1b6   : > { %2148 = vrot.lane.b32.xlu2 %v2084_v17, %s3029_s14  ;;  %v4542_v0 = vunpack.i.l.bf16 %v4025_v49  ;;  %v1938_v25 = vsel %vm358_vm0, 0.0, %v1937_v10  ;;  %v1638_v4 = vsel %vm358_vm0, %v3765_v50, %v1637_v55  ;;  %v1521_v8 = vsel %vm358_vm0, 0.0, %v1520_v28 }
 0x1b7   : > { %v1646_v42 = vperm.slane %v1638_v4, %v3135_v11  ;;  %v1717_v3 = vrot.slane %v1690_v47, 4  ;;  %v2061_v49 = vrot.slane %v4112_v14, 4  ;;  %v2901_v48 = vpack.i.bf16 %v1880_v35, %v1730_v7 }
 0x1b8   : > { %2892 = vrot.lane.b32.xlu0 %v2891_v36, %s3027_s12  ;;  %2897 = vrot.lane.b32.xlu1 %v2896_v60, %s3028_s13  ;;  %v1832_v61 = vsel %vm358_vm0, %v4542_v0, %v1831_v30  ;;  %v4190_v36 = vperm.slane %v1449_v1, %v3137_v12  ;;  %v1634_v60 = vperm.slane %v3771_v51, %v3135_v11  ;;  %v2142_v59 = vsel %vm358_vm0, 0.0, %v2141_v40 }
 0x1b9   : > { %v1439_v52 = vsel %vm358_vm0, %v3923_v31, %v1438_v24  ;;  %v1451_v9 = vsel %vm358_vm0, %v1435_v54, %v1450_v26  ;;  %v2906_v57 = vpack.i.bf16 %v1521_v8, %v1938_v25  ;;  %v1659_v50 = vrot.slane %v1646_v42, 4 }
 0x1ba   : > { %v4205_v55 = vsel %vm358_vm0, %v4108_v62, %v1717_v3  ;;  %v1923_v51 = vrot.slane %v4097_v22, 4  ;;  %v2127_v47 = vrot.slane %v4177_v45, 4  ;;  %v1464_v31 = vrot.slane %v4190_v36, 4 }
 0x1bb   : > { %v4213_v14 = vperm.slane %v1451_v9, %v3137_v12  ;;  %v4216_v54 = vperm.slane %v1832_v61, %v3135_v11  ;;  %v1447_v62 = vperm.slane %v1439_v52, %v3137_v12  ;;  %v1660_v22 = vsel %vm358_vm0, %v1659_v50, %v1634_v60 }
 0x1bc   : > { %v1661_v21 = vrot.slane %v1634_v60, 4  ;;  %v1658_v30 = vperm.slane %v1650_v5, %v3137_v12  ;;  %v2062_v17 = vsel %vm358_vm0, %v4077_v38, %v2061_v49  ;;  %v2128_v10 = vsel %vm358_vm0, %v2127_v47, %v4180_v33 }
 0x1bd   : > { %v4227_v26 = vperm.slane %v1660_v22, %v3137_v12  ;;  %v1466_v24 = vrot.slane %v4213_v14, 4  ;;  %v1865_v40 = vrot.slane %v4174_v34, 4  ;;  %v4235_v5 = vsel %vm358_vm0, 0.0, %v1464_v31 }
 0x1be   : > { %2907 = vrot.lane.b32.xlu2 %v2906_v57, %s3033_s18  ;;  %v1662_v28 = vsel %vm358_vm0, %v1646_v42, %v1661_v21  ;;  %v1506_v35 = vrot.slane %v4118_v13, 4  ;;  %v2070_v1 = vperm.slane %v2062_v17, %v3137_v12  ;;  %v2134_v0 = vperm.slane %v2128_v10, %v3137_v12 }
 0x1bf   : > { %v2941_v7 = vpack.i.bf16 %v4227_v26, %v4190_v36  ;;  %v1675_v38 = vrot.slane %v4227_v26, 4  ;;  %v4242_v61 = vperm.slane %v1662_v28, %v3137_v12  ;;  %v2911_v25 = vpack.i.bf16 %v1658_v30, %v1447_v62 }
 0x1c0   : > { %2184 = vrot.lane.b32.xlu0 %v2142_v59, %s3030_s15  ;;  %2902 = vrot.lane.b32.xlu1 %v2901_v48, %s3030_s15  ;;  %v1866_v4 = vsel %vm358_vm0, %v1865_v40, %v4216_v54  ;;  %v1924_v8 = vsel %vm358_vm0, %v4050_v20, %v1923_v51  ;;  %v4256_v3 = vsel %vm358_vm0, 0.0, %v1466_v24  ;;  %v1507_v20 = vsel %vm358_vm0, %v4084_v63, %v1506_v35 }
 0x1c1   : > { %v4249_v60 = vsel %vm358_vm0, 0.0, %v1675_v38  ;;  %v2961_v42 = vpack.i.bf16 %v4242_v61, %v4213_v14  ;;  %v1677_v49 = vrot.slane %v4242_v61, 4  ;;  %v1722_v52 = vperm.slane %v4156_v19, %v3137_v12 }
 0x1c2   : > { %v2951_v13 = vpack.i.bf16 %v4249_v60, %v4235_v5  ;;  %v1872_v9 = vperm.slane %v1866_v4, %v3137_v12  ;;  %v1932_v57 = vperm.slane %v1924_v8, %v3137_v12  ;;  %v2085_v50 = vrot.slane %v2070_v1, 4 }
 0x1c3   : > { %v4265_v48 = vsel %vm358_vm0, 0.0, %v1677_v49  ;;  %v1515_v51 = vperm.slane %v1507_v20, %v3137_v12  ;;  %v2049_v47 = vrot.slane %v4054_v16, 4  ;;  %v1462_v22 = vrot.slane %v1447_v62, 4 }
 0x1c4   : > { %v2966_v59 = vpack.i.bf16 %v4265_v48, %v4256_v3  ;;  %v2916_v31 = vpack.i.bf16 %v1872_v9, %v1722_v52  ;;  %v1673_v21 = vrot.slane %v1658_v30, 4  ;;  %v2037_v17 = vrot.slane %v4099_v29, 4 }
 0x1c5   : > { %v2921_v63 = vpack.i.bf16 %v1515_v51, %v1932_v57  ;;  %v2086_v19 = vsel %vm358_vm0, 0.0, %v2085_v50  ;;  %v1731_v10 = vrot.slane %v1722_v52, 4  ;;  %v1881_v28 = vrot.slane %v1872_v9, 4 }
 0x1c6   : > { %2912 = vrot.lane.b32.xlu2 %v2911_v25, %s3027_s12  ;;  %v2050_v24 = vsel %vm358_vm0, %v3959_v46, %v2049_v47  ;;  %v2143_v16 = vrot.slane %v2134_v0, 4  ;;  %v1463_v40 = vsel %vm358_vm0, 0.0, %v1462_v22  ;;  %v1674_v62 = vsel %vm358_vm0, 0.0, %v1673_v21 }
 0x1c7   : > { %v2038_v29 = vsel %vm358_vm0, %v4079_v2, %v2037_v17  ;;  %v1732_v30 = vsel %vm358_vm0, 0.0, %v1731_v10  ;;  %v1882_v38 = vsel %vm358_vm0, 0.0, %v1881_v28  ;;  %v2058_v35 = vperm.slane %v2050_v24, %v3135_v11 }
 0x1c8   : > { %2152 = vrot.lane.b32.xlu0 %v2070_v1, %s3027_s12  ;;  %2188 = vrot.lane.b32.xlu1 %v2134_v0, %s3028_s13  ;;  %v2926_v1 = vpack.i.bf16 %v1674_v62, %v1463_v40  ;;  %v2046_v25 = vperm.slane %v2038_v29, %v3135_v11  ;;  %v2931_v4 = vpack.i.bf16 %v1882_v38, %v1732_v30  ;;  %v2144_v46 = vsel %vm358_vm0, 0.0, %v2143_v16 }
 0x1c9   : > { %v1939_v0 = vrot.slane %v1932_v57, 4  ;;  %v2129_v8 = vrot.slane %v4180_v33, 4  ;;  %v2071_v2 = vrot.slane %v2058_v35, 4  ;;  %v1522_v49 = vrot.slane %v1515_v51, 4 }
 0x1ca   : > { %v1867_v20 = vrot.slane %v4216_v54, 4  ;;  %v1726_v54 = vperm.slane %v4205_v55, %v3137_v12  ;;  %v2073_v17 = vrot.slane %v2046_v25, 4 }
 0x1cb   : > { %v1940_v52 = vsel %vm358_vm0, 0.0, %v1939_v0  ;;  %v2072_v11 = vsel %vm358_vm0, %v2071_v2, %v2046_v25  ;;  %v2130_v9 = vsel %vm358_vm0, %v4177_v45, %v2129_v8  ;;  %v1523_v57 = vsel %vm358_vm0, 0.0, %v1522_v49 }
 0x1cc   : > { %v2936_v33 = vpack.i.bf16 %v1523_v57, %v1940_v52  ;;  %v2078_v50 = vperm.slane %v2072_v11, %v3137_v12  ;;  %v2138_v47 = vperm.slane %v2130_v9, %v3137_v12  ;;  %v2074_v28 = vsel %vm358_vm0, %v2058_v35, %v2073_v17 }
 0x1cd   : > { %v2082_v36 = vperm.slane %v2074_v28, %v3137_v12 }
 0x1ce   : > { %2156 = vrot.lane.b32.xlu2 %v2086_v19, %s3030_s15  ;;  %v2087_v51 = vrot.slane %v2078_v50, 4  ;;  %v2145_v19 = vrot.slane %v2138_v47, 4 }
 0x1cf   : > { %v2089_v26 = vrot.slane %v2082_v36, 4 }
 0x1d0   : > { %2917 = vrot.lane.b32.xlu0 %v2916_v31, %s3028_s13  ;;  %2922 = vrot.lane.b32.xlu1 %v2921_v63, %s3031_s16  ;;  %v1868_v31 = vsel %vm358_vm0, %v4174_v34, %v1867_v20  ;;  %v2088_v22 = vsel %vm358_vm0, 0.0, %v2087_v51  ;;  %v1733_v34 = vrot.slane %v1726_v54, 4  ;;  %v2146_v16 = vsel %vm358_vm0, 0.0, %v2145_v19 }
 0x1d1   : > { %v1876_v45 = vperm.slane %v1868_v31, %v3137_v12 }
 0x1d2   : > { %v1734_v55 = vsel %vm358_vm0, 0.0, %v1733_v34 }
 0x1d3   : > { %v2946_v63 = vpack.i.bf16 %v1876_v45, %v1726_v54  ;;  %v1883_v21 = vrot.slane %v1876_v45, 4 }
 0x1d5   : > { %v1884_v10 = vsel %vm358_vm0, 0.0, %v1883_v21  ;;  %v2324_v21 = vld [vmem:[%s4530_s2] sm:$0x3] }
 0x1d6   : > { %2932 = vrot.lane.b32.xlu2 %v2931_v4, %s3033_s18  ;;  %v2956_v24 = vpack.i.bf16 %v1884_v10, %v1734_v55  ;;  %2588 = vmatmul.msk.f32.vlgmr.msra.gmra.mxu3 %vm2325_vm11, %v2324_v21 }
 0x1d7   : > { %2586 = vmatmul.msk.f32.vlgmr.msra.gmra.mxu2 %vm2325_vm11, %v2324_v21 }
 0x1d8   : > { %2192 = vrot.lane.b32.xlu0 %v2144_v46, %s3033_s18  ;;  %2927 = vrot.lane.b32.xlu1 %v2926_v1, %s3030_s15 }
 0x1de   : > { %2196 = vrot.lane.b32.xlu2 %v2138_v47, %s3031_s16 }
 0x1e0   : > { %2937 = vrot.lane.b32.xlu0 %v2936_v33, %s3032_s17  ;;  %2160 = vrot.lane.b32.xlu1 %v2078_v50, %s3028_s13 }
 0x1e6   : > { %2164 = vrot.lane.b32.xlu2 %v2088_v22, %s3033_s18 }
 0x1e8   : > { %2942 = vrot.lane.b32.xlu0 %v2941_v7, %s3028_s13  ;;  %2947 = vrot.lane.b32.xlu1 %v2946_v63, %s3031_s16  ;;  %v2090_v7 = vsel %vm358_vm0, 0.0, %v2089_v26  ;;  %s2576_s13 = sshll.u32 %s4554_s22, 3 }
 0x1e9   : > { %s333_s14 = sadd.s32 %s2576_s13, %s4397_s29 }
 0x1ea   : > { %s2577_s15 = sshll.u32 %s333_s14, 1 }
 0x1eb   : > { %s335_s20 = scalar_lea.vmem %s4533_s5, %s2577_s15 }
 0x1ee   : > { %2957 = vrot.lane.b32.xlu2 %v2956_v24, %s3032_s17 }
 0x1f0   : > { %2200 = vrot.lane.b32.xlu0 %v2146_v16, %s3032_s17  ;;  %2952 = vrot.lane.b32.xlu1 %v2951_v13, %s3033_s18  ;;  %s344_s18 = scalar_lea.vmem %s4534_s6, %s2577_s15 }
 0x1f6   : > { %2172 = vrot.lane.b32.xlu2 %v2090_v7, %s3032_s17 }
 0x1f8   : > { %2168 = vrot.lane.b32.xlu0 %v2082_v36, %s3031_s16  ;;  %2962 = vrot.lane.b32.xlu1 %v2961_v42, %s3031_s16  ;;  %v4336_v40 = vpop.permute.xlu2 %2867 }
 0x1f9   : > { %v2870_v60 = vunpack.i.h.bf16 %v4336_v40 }
 0x1fb   : > { %v2004_v14 = vsel %vm526_vm2, %v3987_v56, %v2870_v60 }
 0x200   : > { %2967 = vrot.lane.b32.xlu0 %v2966_v59, %s3032_s17  ;;  %v2878_v12 = vpop.permute.xlu2 %2877 }
 0x201   : > { %v2879_v13 = vunpack.i.l.bf16 %v2878_v12  ;;  %v2880_v51 = vunpack.i.h.bf16 %v2878_v12 }
 0x203   : > { %v1587_v61 = vsel %vm526_vm2, %v4001_v15, %v2879_v13  ;;  %v1798_v24 = vsel %vm526_vm2, %v4004_v6, %v2880_v51 }
 0x208   : > { %v4342_v5 = vpop.permute.xlu2 %2180 }
 0x20f   : > { %v2873_v62 = vpop.permute.xlu0 %2872 }
 0x210   : > { %v2875_v29 = vunpack.i.h.bf16 %v2873_v62  ;;  %v2874_v30 = vunpack.i.l.bf16 %v2873_v62  ;;  %v4349_v42 = vpop.permute.xlu2 %2148 }
 0x212   : > { %v1588_v3 = vsel %vm528_vm3, %v1587_v61, %v2875_v29  ;;  %v2005_v48 = vsel %vm528_vm3, %v2004_v14, %v2874_v30 }
 0x218   : > { %v4353_v38 = vpop.permute.xlu2 %2907 }
 0x219   : > { %v2909_v16 = vunpack.i.l.bf16 %v4353_v38 }
 0x21a   : > { %v2177_v59 = vpop.permute.xlu1 %2176 }
 0x21b   : > { %v2210_v62 = vsel %vm526_vm2, %v4047_v23, %v2177_v59 }
 0x220   : > { %v4357_v25 = vpop.permute.xlu2 %2912 }
 0x222   : > { %v4355_v35 = vpop.permute.xlu0 %2882  ;;  %v2888_v1 = vpop.permute.xlu1 %2887 }
 0x223   : > { %v2884_v4 = vunpack.i.l.bf16 %v4355_v35  ;;  %v2889_v54 = vunpack.i.l.bf16 %v2888_v1  ;;  %v2890_v36 = vunpack.i.h.bf16 %v2888_v1 }
 0x225   : > { %v1997_v15 = vsel %vm526_vm2, %v4089_v32, %v2884_v4  ;;  %v2006_v17 = vsel %vm530_vm4, %v2005_v48, %v2889_v54  ;;  %v1589_v14 = vsel %vm530_vm4, %v1588_v3, %v2890_v36  ;;  %v2211_v3 = vsel %vm528_vm3, %v2210_v62, %v4342_v5 }
 0x228   : > { %v4365_v2 = vpop.permute.xlu2 %2156 }
 0x22a   : > { %v2893_v56 = vpop.permute.xlu0 %2892  ;;  %v2898_v46 = vpop.permute.xlu1 %2897 }
 0x22b   : > { %v2895_v0 = vunpack.i.h.bf16 %v2893_v56  ;;  %v2899_v45 = vunpack.i.l.bf16 %v2898_v46  ;;  %v2894_v34 = vunpack.i.l.bf16 %v2893_v56  ;;  %v2900_v12 = vunpack.i.h.bf16 %v2898_v46 }
 0x22c   : > { %v2910_v56 = vunpack.i.h.bf16 %v4353_v38 }
 0x22d   : > { %v4363_v8 = vsel %vm528_vm3, %v1997_v15, %v2895_v0  ;;  %v2007_v55 = vsel %vm532_vm5, %v2006_v17, %v2899_v45  ;;  %v1799_v7 = vsel %vm528_vm3, %v1798_v24, %v2894_v34  ;;  %v1590_v23 = vsel %vm532_vm5, %v1589_v14, %v2900_v12  ;;  %v2301_v17 = vld [vmem:[%s322_s7] sm:$0x3] }
 0x22e   : > { %v2008_v13 = vsel %vm534_vm6, %v2007_v55, %v2909_v16  ;;  %v1591_v34 = vsel %vm534_vm6, %v1590_v23, %v2910_v56 }
 0x230   : > { %v4371_v9 = vpop.permute.xlu2 %2932 }
 0x231   : > { %v2934_v61 = vunpack.i.l.bf16 %v4371_v9 }
 0x232   : > { %v2185_v49 = vpop.permute.xlu0 %2184  ;;  %v4367_v20 = vpop.permute.xlu1 %2902 }
 0x233   : > { %v2904_v19 = vunpack.i.l.bf16 %v4367_v20  ;;  %v2905_v12 = vunpack.i.h.bf16 %v4367_v20 }
 0x235   : > { %v1800_v60 = vsel %vm530_vm4, %v1799_v7, %v2904_v19  ;;  %v2375_v19 = vld [vmem:[%s326_s10] sm:$0x3] }
 0x238   : > { %v4375_v50 = vpop.permute.xlu2 %2196 }
 0x23a   : > { %v4369_v52 = vpop.permute.xlu0 %2152  ;;  %v2189_v11 = vpop.permute.xlu1 %2188 }
 0x240   : > { %v4379_v31 = vpop.permute.xlu2 %2164 }
 0x242   : > { %v4373_v57 = vpop.permute.xlu0 %2917  ;;  %v2923_v33 = vpop.permute.xlu1 %2922 }
 0x243   : > { %v2919_v10 = vunpack.i.l.bf16 %v4373_v57  ;;  %v2924_v28 = vunpack.i.l.bf16 %v2923_v33  ;;  %v2925_v59 = vunpack.i.h.bf16 %v2923_v33  ;;  %v2212_v33 = vsel %vm530_vm4, %v2211_v3, %v2185_v49 }
 0x244   : > { %v2213_v51 = vsel %vm532_vm5, %v2212_v33, %v2189_v11  ;;  %v3036_v11 = vmov 1  }
 0x245   : > { %v1801_v6 = vsel %vm532_vm5, %v1800_v60, %v2919_v10  ;;  %v2009_v29 = vsel %vm536_vm7, %v2008_v13, %v2924_v28  ;;  %v1592_v5 = vsel %vm536_vm7, %v1591_v34, %v2925_v59  ;;  %v3035_v10 = vmov 0   ;;  %2972 = vset.pattern.permute.xlu2 %v3036_v11 }
 0x246   : > { %v1802_v38 = vsel %vm534_vm6, %v1801_v6, %v2934_v61  ;;  %2971 = vset.pattern.permute.xlu1 %v3035_v10  ;;  %2973 = vset.pattern.permute.xlu0 %v3035_v10  ;;  %v2203_v28 = vsel %vm526_vm2, %v4131_v43, %v4349_v42  ;;  %v2920_v60 = vunpack.i.h.bf16 %v4373_v57  ;;  %v1999_v13 = vsel %vm530_vm4, %v4363_v8, %v2905_v12 }
 0x247   : > { %2304 = vperm.xlu1 %2971, %v2301_v17   ;;  %2378 = vperm.xlu0 %2973, %v2375_v19   ;;  %v2935_v8 = vunpack.i.h.bf16 %v4371_v9  ;;  %v2915_v9 = vunpack.i.h.bf16 %v4357_v25 }
 0x248   : > { %v4403_v30 = vpop.permute.xlu2 %2957  ;;  %2310 = vperm.xlu2 %2972, %v2301_v17   ;;  %v2000_v20 = vsel %vm532_vm5, %v1999_v13, %v2920_v60 }
 0x249   : > { %v2959_v0 = vunpack.i.l.bf16 %v4403_v30 }
 0x24a   : > { %v2193_v47 = vpop.permute.xlu0 %2192  ;;  %v4377_v32 = vpop.permute.xlu1 %2927 }
 0x24b   : > { %v2214_v55 = vsel %vm534_vm6, %v2213_v51, %v2193_v47  ;;  %v2204_v47 = vsel %vm528_vm3, %v2203_v28, %v4369_v52  ;;  %v2930_v14 = vunpack.i.h.bf16 %v4377_v32  ;;  %v2929_v61 = vunpack.i.l.bf16 %v4377_v32 }
 0x24c   : > { %v2215_v16 = vsel %vm536_vm7, %v2214_v55, %v4375_v50  ;;  %v2205_v43 = vsel %vm530_vm4, %v2204_v47, %v4365_v2  ;;  %v2885_v50 = vunpack.i.h.bf16 %v4355_v35  ;;  %v2869_v35 = vunpack.i.l.bf16 %v4336_v40 }
 0x24d   : > { %v2001_v40 = vsel %vm534_vm6, %v2000_v20, %v2935_v8  ;;  %v2960_v32 = vunpack.i.h.bf16 %v4403_v30 }
 0x24f   : > { %2974 = vset.pattern.permute.xlu1 %v3036_v11  ;;  %2975 = vset.pattern.permute.xlu0 %v3036_v11 }
 0x250   : > { %2384 = vperm.xlu1 %2974, %v2375_v19   ;;  %v2173_v62 = vpop.permute.xlu2 %2172 }
 0x252   : > { %v2938_v63 = vpop.permute.xlu0 %2937  ;;  %v4381_v22 = vpop.permute.xlu1 %2160 }
 0x253   : > { %v2939_v26 = vunpack.i.l.bf16 %v2938_v63  ;;  %v2940_v15 = vunpack.i.h.bf16 %v2938_v63  ;;  %v2206_v42 = vsel %vm532_vm5, %v2205_v43, %v4381_v22 }
 0x254   : > { %v2207_v22 = vsel %vm534_vm6, %v2206_v42, %v4379_v31 }
 0x255   : > { %v2010_v4 = vsel %vm538_vm8, %v2009_v29, %v2939_v26  ;;  %v1593_v49 = vsel %vm538_vm8, %v1592_v5, %v2940_v15  ;;  %v2914_v29 = vunpack.i.l.bf16 %v4357_v25 }
 0x256   : > { %v2238_v45 = vrot.slane %v2010_v4, 4  ;;  %v2232_v7 = vrot.slane %v1593_v49, 4 }
 0x258   : > { %v2247_v52 = vsel %vm2241_vm10, %v3884_v27, %v2232_v7  ;;  %v2250_v27 = vld [vmem:[%s4529_s1] sm:$0x3] }
 0x25a   : > { %v4407_v48 = vpop.permute.xlu0 %2942  ;;  %v4409_v1 = vpop.permute.xlu1 %2947 }
 0x25b   : > { %v2949_v46 = vunpack.i.l.bf16 %v4409_v1  ;;  %v2950_v2 = vunpack.i.h.bf16 %v4409_v1  ;;  %v2944_v4 = vunpack.i.l.bf16 %v4407_v48 }
 0x25d   : > { %v1803_v54 = vsel %vm536_vm7, %v1802_v38, %v2949_v46  ;;  %v2002_v56 = vsel %vm536_vm7, %v2001_v40, %v2950_v2 }
 0x25e   : > { %v1804_v21 = vsel %vm538_vm8, %v1803_v54, %v2959_v0 }
 0x25f   : > { %v2249_v63 = vsel %vm2241_vm10, %v1804_v21, %v2238_v45 }
 0x262   : > { %v2201_v24 = vpop.permute.xlu0 %2200  ;;  %v2953_v36 = vpop.permute.xlu1 %2952 }
 0x263   : > { %v2216_v26 = vsel %vm538_vm8, %v2215_v16, %v2201_v24  ;;  %v2955_v23 = vunpack.i.h.bf16 %v2953_v36  ;;  %v2954_v59 = vunpack.i.l.bf16 %v2953_v36  ;;  %v2372_v24 = vpop.f32.mrf.mxu3  ;;  %v2352_v16 = vpop.f32.mrf.mxu2 }
 0x264   : > { %2583 = vmatpush.msk.msra.mxu1 %vm2241_vm10, %v2216_v26 }
 0x266   : > { %2293 = vmatpush.msra.mxu1 %v2249_v63 }
 0x268   : > { %2294 = vmatpush.msra.mxu1 %v2247_v52 }
 0x26a   : > { %v2169_v57 = vpop.permute.xlu0 %2168  ;;  %2295 = vmatpush.msra.mxu1 %v3851_v53  ;;  %v1791_v53 = vsel %vm526_vm2, %v4041_v18, %v2885_v50  ;;  %v2963_v1 = vpop.permute.xlu1 %2962  ;;  %v1580_v18 = vsel %vm526_vm2, %v3977_v41, %v2869_v35 }
 0x26b   : > { %v2208_v6 = vsel %vm536_vm7, %v2207_v22, %v2169_v57  ;;  %v1581_v46 = vsel %vm528_vm3, %v1580_v18, %v2914_v29  ;;  %v1792_v3 = vsel %vm528_vm3, %v1791_v53, %v2915_v9  ;;  %v2965_v0 = vunpack.i.h.bf16 %v2963_v1 }
 0x26c   : > { %2296 = vmatpush.msra.mxu1 %v3830_v58  ;;  %v2209_v31 = vsel %vm538_vm8, %v2208_v6, %v2173_v62  ;;  %v2945_v58 = vunpack.i.h.bf16 %v4407_v48  ;;  %v2964_v15 = vunpack.i.l.bf16 %v2963_v1  ;;  %v1582_v25 = vsel %vm530_vm4, %v1581_v46, %v2929_v61 }
 0x26d   : > { %2581 = vmatpush.msk.msra.mxu0 %vm2241_vm10, %v2209_v31  ;;  %2584 = vmatmul.msk.f32.vlgmr.msra.gmra.mxu1 %vm2251_vm12, %v2250_v27  ;;  %v1793_v38 = vsel %vm530_vm4, %v1792_v3, %v2930_v14  ;;  %v2003_v48 = vsel %vm538_vm8, %v2002_v56, %v2960_v32  ;;  %v1583_v33 = vsel %vm532_vm5, %v1582_v25, %v2944_v4 }
 0x26e   : > { %v1794_v41 = vsel %vm532_vm5, %v1793_v38, %v2945_v58  ;;  %v1584_v30 = vsel %vm534_vm6, %v1583_v33, %v2954_v59  ;;  %v2237_v19 = vrot.slane %v2003_v48, 4 }
 0x26f   : > { %v1795_v45 = vsel %vm534_vm6, %v1794_v41, %v2955_v23  ;;  %v1585_v21 = vsel %vm536_vm7, %v1584_v30, %v2964_v15 }
 0x270   : > { %v1796_v17 = vsel %vm536_vm7, %v1795_v45, %v2965_v0 }
 0x272   : > { %v2968_v54 = vpop.permute.xlu0 %2967 }
 0x273   : > { %v2970_v51 = vunpack.i.h.bf16 %v2968_v54  ;;  %v2969_v34 = vunpack.i.l.bf16 %v2968_v54 }
 0x275   : > { %v1797_v5 = vsel %vm538_vm8, %v1796_v17, %v2970_v51  ;;  %v1586_v55 = vsel %vm538_vm8, %v1585_v21, %v2969_v34 }
 0x276   : > { %v2248_v63 = vsel %vm2241_vm10, %v1797_v5, %v2237_v19  ;;  %v2231_v10 = vrot.slane %v1586_v55, 4 }
 0x277   : > { %2273 = vmatpush.msra.mxu0 %v2248_v63 }
 0x278   : > { %v2246_v49 = vsel %vm2241_vm10, %v3869_v37, %v2231_v10 }
 0x279   : > { %2274 = vmatpush.msra.mxu0 %v2246_v49 }
 0x27b   : > { %2275 = vmatpush.msra.mxu0 %v3854_v44 }
 0x27d   : > { %2276 = vmatpush.msra.mxu0 %v3834_v39 }
 0x27e   : > { %2582 = vmatmul.msk.f32.vlgmr.msra.gmra.mxu0 %vm2251_vm12, %v2250_v27 }
 0x2a2   : > { %v2311_v43 = vpop.permute.xlu2 %2310 }
 0x2b9   : > { %v2305_v11 = vpop.permute.xlu1 %2304  ;;  %v2379_v28 = vpop.permute.xlu0 %2378 }
 0x2ba   : > { %v2382_v47 = vmul.f32 %v2379_v28, %v2372_v24  ;;  %v2381_v36 = vmul.f32 %v2379_v28, %v2352_v16 }
 0x2c2   : > { %v2385_v26 = vpop.permute.xlu1 %2384 }
 0x2c3   : > { %v2387_v7 = vadd.f32 %v2385_v26, %v2381_v36  ;;  %v2388_v12 = vadd.f32 %v2385_v26, %v2382_v47 }
 0x2c5   : > { %v2391_v39 = vrot.slane %v2388_v12, 6 }
 0x2c7   : > { %v2392_v44 = vsel %vm2320_vm13, %v2387_v7, %v2391_v39 }
 0x2c8   : > { %2394 = vst [vmem:[%s344_s18] sm:$0xf] %v2392_v44 }
 0x2ea   : > { %v2298_v37 = vpop.f32.mrf.mxu1 }
 0x2eb   : > { %v2308_v60 = vmul.f32 %v2305_v11, %v2298_v37 }
 0x2ed   : > { %v2314_v42 = vadd.f32 %v2311_v43, %v2308_v60 }
 0x2ef   : > { %v2316_v50 = vmax.f32 %v2314_v42, 0.0 }
 0x2f1   : > { %v2319_v2 = vrot.slane %v2316_v50, 6 }
 0x2fb   : > { %v2278_v52 = vpop.f32.mrf.mxu0 }
 0x2fc   : > { %v2307_v13 = vmul.f32 %v2305_v11, %v2278_v52 }
 0x2fe   : > { %v2313_v20 = vadd.f32 %v2311_v43, %v2307_v13 }
 0x300   : > { %v2315_v57 = vmax.f32 %v2313_v20, 0.0 }
 0x302   : > { %v2321_v22 = vsel %vm2320_vm13, %v2315_v57, %v2319_v2 }
 0x303   : > { %2323 = vst [vmem:[%s335_s20] sm:$0xf] %v2321_v22 }
 0x304 PF: > { %s17_s25 = sadd.s32 1, %s3022_s25   ;;  %s4543_s21 = smov %s3014_s23 }
 0x305   : > { %p14_p7 = scmp.ge.s32.totalorder %s17_s25, 10   ;;  %s4544_s22 = smov %s3018_s24 }
 0x306   : > { %s4545_s23 = smov %s4548_s26  ;;  %s4546_s24 = smov %s4552_s27 }
 0x307   :  { %16 = sbr.rel (!%p14_p7) target bundleno = 3 (0x3), region = 88 }

// kernel: basic_block_forward.3
= control target key start
LH: loop header
LB: loop body
LE: loop exit
PB: predicated region body
PF: predicated region fallthrough
CT: control target
= control target key end

     0   :  { %s4517_s21 = smov 0   ;;  %s4519_s22 = smov 0   ;;  %s7280_s0 = inlined_call_operand.vmem [shape: f32[2,4,8,18,18], index: 0, kind: input, shape index: {}]   ;;  %s7281_s1 = inlined_call_operand.vmem [shape: f32[2,4,2,256], index: 1, kind: input, shape index: {}]   ;;  %s7282_s2 = inlined_call_operand.vmem [shape: f32[2,72], index: 2, kind: input, shape index: {}]   ;;  %s7283_s3 = inlined_call_operand.vmem [shape: f32[4,2,2], index: 3, kind: input, shape index: {}]   ;;  %s7284_s4 = inlined_call_operand.vmem [shape: f32[4,2,2], index: 4, kind: input, shape index: {}]   ;;  %s7285_s5 = inlined_call_operand.vmem [shape: f32[4,2,2], index: 5, kind: input, shape index: {}]   ;;  %s7286_s6 = inlined_call_operand.vmem [shape: f32[2,4,2,256], index: 6, kind: output, shape index: {}]  }
   0x1   :  { %s4521_s23 = smov 0   ;;  %s4523_s24 = smov 0  }
   0x2   :  { %s4525_s25 = smov 0  }
   0x3 LB: > { %s25_s26 = sadd.s32 1, %s4457_s23  ;;  %s28_s27 = sadd.s32 1, %s4461_s24  ;;  %s4465_s25 = sphi %s4525_s25, %s16_s25   ;;  %s4461_s24 = sphi %s4523_s24, %s7679_s24   ;;  %s4457_s23 = sphi %s4521_s23, %s7678_s23   ;;  %s4453_s22 = sphi %s4519_s22, %s7677_s22   ;;  %s4449_s21 = sphi %s4517_s21, %s7676_s21  }
   0x4   : > { %p26_p0 = scmp.ge.s32.totalorder %s25_s26, 4  ;;  %p3793_p1 = scmp.ge.s32.totalorder %s4465_s25, 1 }
   0x5   : > { %p275_p2 = scmp.lt.s32.totalorder %s4465_s25, 9 }
   0x6   : > { %s7681_s26 = smov (%p26_p0, %s25_s26), 0  ;;  %s7683_s27 = smov (!%p26_p0, %s28_s27), %s4461_s24 }
   0x7   : > { %p276_p3 = pnand %p3793_p1, %p275_p2  ;;  %p30_p4 = scmp.ge.s32.totalorder %s7683_s27, 2 }
   0x9   : > { %s7685_s27 = smov (%p30_p4, %s7683_s27), 0  ;;  %279 = sbr.rel (%p276_p3) target bundleno = 1339 (0x53b), region = 44 }
   0xe   : > { %p334_p5 = scmp.lt.s32.totalorder %s4453_s22, 1  ;;  %p336_p6 = scmp.lt.s32.totalorder %s4449_s21, 3  ;;  %v4467_v0 = vmov 1983009808   ;;  %v4468_v2 = vmov 1934713408  }
   0xf   : > { %v403_v1 = vunpack.c.l.s4 %v4467_v0  ;;  %v451_v3 = vunpack.c.l.s4 %v4468_v2  ;;  %vm398_vm0 = vcmask 1047556   ;;  %s4469_s11 = smov 127   ;;  %s4470_s12 = smov 48   ;;  %vm2442_vm1 = vcmask 1045504  }
  0x10   : > { %s7687_s22 = smov (!%p334_p5, %s4453_s22), 1  ;;  %s7689_s21 = smov (!%p336_p6, %s4449_s21), 3  ;;  %vm1407_vm2 = vcmask 1046528   ;;  %vm678_vm3 = vcmask 130048   ;;  %vm680_vm4 = vcmask 261120   ;;  %vm682_vm5 = vcmask 392192  }
  0x11   : > { %s3810_s28 = smul.u32 96, %s7687_s22  ;;  %v4567_v7 = vunpack.c.0.s8 %v403_v1  ;;  %v4588_v16 = vunpack.c.0.s8 %v451_v3  ;;  %s4471_s13 = smov 16   ;;  %vm684_vm6 = vcmask 523264   ;;  %vm686_vm7 = vcmask 654336  }
  0x12   : > { %s3809_s29 = smul.u32 24, %s7689_s21  ;;  %s4472_s14 = smov 32   ;;  %vm688_vm8 = vcmask 785408   ;;  %vm690_vm9 = vcmask 916480   ;;  %vm3478_vm10 = vcmask 588800   ;;  %vm3536_vm11 = vcmask 1041408  }
  0x13   : > { %s4473_s15 = smov 80   ;;  %s4474_s16 = smov 64  }
  0x14   : > { %s340_s30 = sadd.s32 %s3810_s28, %s3809_s29  ;;  %s4475_s17 = smov 112  }
  0x15   : > { %s3794_s7 = sshll.u32 %s340_s30, 3  ;;  %s4476_s18 = smov 96  }
  0x16   : > { %s4556_s10 = scalar_lea.vmem %s7280_s0, %s3794_s7  ;;  %s4477_s19 = smov 126  }
  0x17   : > { %v4559_v4 = vld [vmem:[%s4556_s10] sm:$0xff]  ;;  %v4562_v5 = vld [vmem:[%s4556_s10 + $0x8] sm:$0xff]  ;;  %v4565_v6 = vld [vmem:[%s4556_s10 + $0x30] sm:$0xff]  ;;  %s3796_s20 = sshll.u32 %s7687_s22, 3  ;;  %s7131_s28 = sshll.u32 %s7689_s21, 1 }
  0x18   : > { %7378 = vst [vmem:[#allocation2_spill] sm:$0xff] %v4562_v5  ;;  %v4570_v8 = vld [vmem:[%s4556_s10 + $0x38] sm:$0xff]  ;;  %v397_v9 = vrot.slane %v4565_v6, 4  ;;  %v4575_v10 = vpack.i.bf16 %v4562_v5, %v4559_v4  ;;  %v512_v12 = vrot.slane %v4562_v5, 4  ;;  %v4583_v14 = vld [vmem:[%s4556_s10 + $0x48] sm:$0xff]  ;;  %v4586_v15 = vld [vmem:[%s4556_s10 + $0x50] sm:$0xff]  ;;  %s7136_s29 = sadd.s32 %s3796_s20, %s7131_s28 }
  0x19   : > { %v510_v11 = vrot.slane %v4570_v8, 4  ;;  %v4580_v13 = vld [vmem:[%s4556_s10 + $0x18] sm:$0xff]  ;;  %v400_v18 = vrot.slane %v4559_v4, 4  ;;  %v4596_v19 = vld [vmem:[%s4556_s10 + $0x20] sm:$0xff]  ;;  %v410_v22 = vrot.slane %v4583_v14, 4  ;;  %v522_v23 = vrot.slane %v4586_v15, 4 }
  0x1a   : > { %3867 = vrot.lane.b32.xlu1 %v4575_v10, %s4469_s11  ;;  %v399_v17 = vsel %vm398_vm0, %v397_v9, %v4559_v4  ;;  %v4599_v20 = vld [vmem:[%s4556_s10 + $0x60] sm:$0xff]  ;;  %v4602_v21 = vld [vmem:[%s4556_s10 + $0x78] sm:$0xff]  ;;  %v4609_v25 = vld [vmem:[%s4556_s10 + $0x90] sm:$0xff]  ;;  %v412_v29 = vrot.slane %v4580_v13, 4  ;;  %s3797_s22 = sshll.u32 %s7136_s29, 1 }
  0x1b   : > { %v511_v24 = vsel %vm398_vm0, %v510_v11, %v4562_v5  ;;  %v4612_v26 = vld [vmem:[%s4556_s10 + $0x98] sm:$0xff]  ;;  %v4615_v27 = vld [vmem:[%s4556_s10 + $0xa8] sm:$0xff]  ;;  %v405_v28 = vperm.slane %v399_v17, %v4567_v7  ;;  %v424_v30 = vrot.slane %v4599_v20, 4  ;;  %v4624_v32 = vld [vmem:[%s4556_s10 + $0xb0] sm:$0xff]  ;;  %v411_v33 = vsel %vm398_vm0, %v410_v22, %v4580_v13  ;;  %s351_s7 = scalar_lea.vmem %s7281_s1, %s3797_s22 }
  0x1c   : > { %v4621_v31 = vld [vmem:[%s4556_s10 + $0x68] sm:$0xff]  ;;  %7379 = vst [vmem:[#allocation3_spill] sm:$0xff] %v4624_v32  ;;  %v422_v34 = vrot.slane %v4609_v25, 4  ;;  %v434_v35 = vrot.slane %v4615_v27, 4  ;;  %v517_v36 = vperm.slane %v511_v24, %v4567_v7  ;;  %v4632_v37 = vld [vmem:[%s4556_s10 + $0x80] sm:$0xff]  ;;  %v417_v38 = vperm.slane %v411_v33, %v4567_v7 }
  0x1d   : > { %7380 = vst [vmem:[#allocation4_spill] sm:$0xff] %v4632_v37  ;;  %v448_v39 = vrot.slane %v405_v28, 4  ;;  %v523_v40 = vsel %vm398_vm0, %v522_v23, %v4596_v19  ;;  %v534_v41 = vrot.slane %v4612_v26, 4  ;;  %v546_v45 = vrot.slane %v4624_v32, 4 }
  0x1e   : > { %v423_v42 = vsel %vm398_vm0, %v422_v34, %v4599_v20  ;;  %v435_v43 = vsel %vm398_vm0, %v434_v35, %v4602_v21  ;;  %v529_v44 = vperm.slane %v523_v40, %v4567_v7  ;;  %v560_v53 = vrot.slane %v517_v36, 4 }
  0x1f   : > { %v429_v46 = vperm.slane %v423_v42, %v4567_v7  ;;  %v441_v47 = vperm.slane %v435_v43, %v4567_v7  ;;  %v449_v48 = vsel %vm398_vm0, %v417_v38, %v448_v39  ;;  %v535_v49 = vsel %vm398_vm0, %v534_v41, %v4621_v31 }
  0x20   : > { %v4650_v50 = vperm.slane %v449_v48, %v4588_v16  ;;  %v541_v51 = vperm.slane %v535_v49, %v4567_v7  ;;  %v547_v52 = vsel %vm398_vm0, %v546_v45, %v4632_v37  ;;  %v446_v56 = vrot.slane %v417_v38, 4 }
  0x21   : > { %v472_v54 = vrot.slane %v429_v46, 4  ;;  %v553_v55 = vperm.slane %v547_v52, %v4567_v7  ;;  %v470_v57 = vrot.slane %v441_v47, 4  ;;  %v561_v59 = vsel %vm398_vm0, %v529_v44, %v560_v53 }
  0x22   : > { %v500_v58 = vrot.slane %v4650_v50, 4  ;;  %v584_v60 = vrot.slane %v541_v51, 4  ;;  %v558_v61 = vrot.slane %v529_v44, 4  ;;  %v569_v63 = vperm.slane %v561_v59, %v4588_v16 }
  0x23   : > { %v473_v62 = vsel %vm398_vm0, %v441_v47, %v472_v54  ;;  %v447_v0 = vsel %vm398_vm0, %v446_v56, %v405_v28  ;;  %v471_v1 = vsel %vm398_vm0, %v470_v57, %v429_v46  ;;  %v582_v24 = vrot.slane %v553_v55, 4 }
  0x24   : > { %v481_v2 = vperm.slane %v473_v62, %v4588_v16  ;;  %v585_v3 = vsel %vm398_vm0, %v553_v55, %v584_v60  ;;  %v4665_v9 = vperm.slane %v447_v0, %v4588_v16  ;;  %v4668_v11 = vperm.slane %v471_v1, %v4588_v16 }
  0x25   : > { %v593_v17 = vperm.slane %v585_v3, %v4588_v16  ;;  %v612_v22 = vrot.slane %v569_v63, 4  ;;  %v559_v23 = vsel %vm398_vm0, %v558_v61, %v517_v36  ;;  %v401_v35 = vsel %vm398_vm0, %v4565_v6, %v400_v18 }
  0x26   : > { %v501_v28 = vsel %vm398_vm0, %v481_v2, %v500_v58  ;;  %v496_v33 = vrot.slane %v4665_v9, 4  ;;  %v4675_v34 = vperm.slane %v559_v23, %v4588_v16  ;;  %v583_v39 = vsel %vm398_vm0, %v582_v24, %v541_v51 }
  0x27   : > { %v613_v38 = vsel %vm398_vm0, %v593_v17, %v612_v22  ;;  %v413_v40 = vsel %vm398_vm0, %v4583_v14, %v412_v29  ;;  %v4686_v42 = vperm.slane %v583_v39, %v4588_v16  ;;  %v409_v44 = vperm.slane %v401_v35, %v4567_v7 }
  0x28   : > { %v3886_v41 = vpack.i.bf16 %v613_v38, %v501_v28  ;;  %v497_v36 = vsel %vm398_vm0, %v4668_v11, %v496_v33  ;;  %v608_v43 = vrot.slane %v4675_v34, 4  ;;  %v421_v18 = vperm.slane %v413_v40, %v4567_v7 }
  0x29   : > { %v425_v45 = vsel %vm398_vm0, %v4609_v25, %v424_v30  ;;  %v436_v46 = vrot.slane %v4602_v21, 4  ;;  %v513_v48 = vsel %vm398_vm0, %v4570_v8, %v512_v12  ;;  %v524_v52 = vrot.slane %v4596_v19, 4 }
  0x2a   : > { %3887 = vrot.lane.b32.xlu1 %v3886_v41, %s4470_s12  ;;  %v609_v29 = vsel %vm398_vm0, %v4686_v42, %v608_v43  ;;  %v433_v47 = vperm.slane %v425_v45, %v4567_v7  ;;  %v458_v30 = vrot.slane %v421_v18, 4  ;;  %v536_v54 = vrot.slane %v4621_v31, 4 }
  0x2b   : > { %v3876_v49 = vpack.i.bf16 %v609_v29, %v497_v36  ;;  %v437_v51 = vsel %vm398_vm0, %v4615_v27, %v436_v46  ;;  %v548_v55 = vrot.slane %v4632_v37, 4  ;;  %v498_v56 = vrot.slane %v481_v2, 4 }
  0x2c   : > { %v445_v53 = vperm.slane %v437_v51, %v4567_v7  ;;  %v459_v57 = vsel %vm398_vm0, %v458_v30, %v409_v44  ;;  %v525_v12 = vsel %vm398_vm0, %v4586_v15, %v524_v52  ;;  %v610_v58 = vrot.slane %v593_v17, 4 }
  0x2d   : > { %3877 = vrot.lane.b32.xlu0 %v3876_v49, %s4471_s13  ;;  %v4714_v59 = vpack.i.bf16 %v4596_v19, %v4580_v13  ;;  %v521_v61 = vperm.slane %v513_v48, %v4567_v7  ;;  %v533_v62 = vperm.slane %v525_v12, %v4567_v7  ;;  %v537_v0 = vsel %vm398_vm0, %v4612_v26, %v536_v54 }
  0x2e   : > { %v482_v60 = vrot.slane %v445_v53, 4  ;;  %v465_v1 = vperm.slane %v459_v57, %v4588_v16  ;;  %v549_v2 = vsel %vm398_vm0, %v4624_v32, %v548_v55  ;;  %v499_v3 = vsel %vm398_vm0, %v498_v56, %v4650_v50 }
  0x2f   : > { %v611_v17 = vsel %vm398_vm0, %v610_v58, %v569_v63  ;;  %3872 = vrot.lane.b32.xlu2 %v4714_v59, %s4469_s11  ;;  %v545_v23 = vperm.slane %v537_v0, %v4567_v7  ;;  %v557_v24 = vperm.slane %v549_v2, %v4567_v7  ;;  %v570_v28 = vrot.slane %v533_v62, 4 }
  0x30   : > { %v483_v22 = vsel %vm398_vm0, %v482_v60, %v433_v47  ;;  %v3881_v35 = vpack.i.bf16 %v611_v17, %v499_v3  ;;  %v460_v38 = vrot.slane %v409_v44, 4  ;;  %v484_v39 = vrot.slane %v433_v47, 4 }
  0x31   : > { %v489_v33 = vperm.slane %v483_v22, %v4588_v16  ;;  %v571_v40 = vsel %vm398_vm0, %v570_v28, %v521_v61  ;;  %v594_v50 = vrot.slane %v557_v24, 4  ;;  %v572_v41 = vrot.slane %v521_v61, 4 }
  0x32   : > { %v596_v63 = vrot.slane %v545_v23, 4  ;;  %v577_v43 = vperm.slane %v571_v40, %v4588_v16  ;;  %v461_v45 = vsel %vm398_vm0, %v421_v18, %v460_v38  ;;  %v485_v46 = vsel %vm398_vm0, %v445_v53, %v484_v39 }
  0x33   : > { %v502_v36 = vrot.slane %v489_v33, 4  ;;  %v595_v29 = vsel %vm398_vm0, %v594_v50, %v545_v23  ;;  %v469_v48 = vperm.slane %v461_v45, %v4588_v16  ;;  %v493_v49 = vperm.slane %v485_v46, %v4588_v16  ;;  %v384_v50 = vld [vmem:[%s4556_s10 + $0x58] sm:$0x3]  ;;  %v378_v46 = vld [vmem:[%s4556_s10 + $0x28] sm:$0x3] }
  0x34   : > { %v573_v44 = vsel %vm398_vm0, %v533_v62, %v572_v41  ;;  %v601_v47 = vperm.slane %v595_v29, %v4588_v16  ;;  %v597_v30 = vsel %vm398_vm0, %v557_v24, %v596_v63  ;;  %v504_v53 = vrot.slane %v465_v1, 4 }
  0x35   : > { %3882 = vrot.lane.b32.xlu0 %v3881_v35, %s4472_s14  ;;  %v581_v51 = vperm.slane %v573_v44, %v4588_v16  ;;  %v508_v18 = vrot.slane %v469_v48, 4  ;;  %v605_v52 = vperm.slane %v597_v30, %v4588_v16  ;;  %v616_v54 = vrot.slane %v577_v43, 4 }
  0x36   : > { %v503_v55 = vsel %vm398_vm0, %v502_v36, %v465_v1  ;;  %v614_v56 = vrot.slane %v601_v47, 4  ;;  %v505_v58 = vsel %vm398_vm0, %v489_v33, %v504_v53  ;;  %v506_v61 = vrot.slane %v493_v49, 4 }
  0x37   : > { %v620_v57 = vrot.slane %v581_v51, 4  ;;  %v509_v12 = vsel %vm398_vm0, %v493_v49, %v508_v18  ;;  %v617_v60 = vsel %vm398_vm0, %v601_v47, %v616_v54  ;;  %v618_v3 = vrot.slane %v605_v52, 4 }
  0x38   : > { %v615_v62 = vsel %vm398_vm0, %v614_v56, %v577_v43  ;;  %v3896_v2 = vpack.i.bf16 %v617_v60, %v505_v58  ;;  %v507_v1 = vsel %vm398_vm0, %v506_v61, %v469_v48  ;;  %v4757_v24 = vpack.i.bf16 %v4612_v26, %v4609_v25 }
  0x39   : > { %v621_v0 = vsel %vm398_vm0, %v605_v52, %v620_v57  ;;  %v3891_v17 = vpack.i.bf16 %v615_v62, %v503_v55  ;;  %v619_v23 = vsel %vm398_vm0, %v618_v3, %v581_v51  ;;  %v4762_v33 = vpack.i.bf16 %v4586_v15, %v4583_v14 }
  0x3a   : > { %v3906_v22 = vpack.i.bf16 %v621_v0, %v509_v12  ;;  %3897 = vrot.lane.b32.xlu2 %v3896_v2, %s4473_s15  ;;  %v3901_v28 = vpack.i.bf16 %v619_v23, %v507_v1  ;;  %v3911_v35 = vpack.i.bf16 %v4570_v8, %v4565_v6  ;;  %v4772_v38 = vpack.i.bf16 %v4621_v31, %v4599_v20 }
  0x3b   : > { %3892 = vrot.lane.b32.xlu1 %v3891_v17, %s4474_s16  ;;  %v4776_v39 = vpack.i.bf16 %v4632_v37, %v4602_v21  ;;  %v7288_v40 = vrot.slane %v4562_v5, 1  ;;  %v2458_v41 = vrot.slane %v4583_v14, 2  ;;  %v2459_v63 = vrot.slane %v4586_v15, 2 }
  0x3c   : > { %v2448_v36 = vrot.slane %v4580_v13, 2  ;;  %v1408_v43 = vrot.slane %v4559_v4, 1  ;;  %v2461_v45 = vrot.slane %v384_v50, 2  ;;  %v2449_v29 = vrot.slane %v4596_v19, 2 }
  0x3d   : > { %3907 = vrot.lane.b32.xlu0 %v3906_v22, %s4475_s17  ;;  %v4794_v48 = vpack.i.bf16 %v4624_v32, %v4615_v27  ;;  %v2460_v49 = vsel %vm2442_vm1, %v2458_v41, %v2459_v63  ;;  %v2451_v44 = vrot.slane %v378_v46, 2  ;;  %v1413_v18 = vrot.slane %v4580_v13, 1  ;;  %v4862_v46 = vld [vmem:[%s4556_s10 + $0xa0] sm:$0x3] }
  0x3e   : > { %v2462_v47 = vsel %vm2442_vm1, %v2459_v63, %v2461_v45  ;;  %v2511_v51 = vrot.slane %v2460_v49, 4  ;;  %v2450_v30 = vsel %vm2442_vm1, %v2448_v36, %v2449_v29  ;;  %v7292_v58 = vrot.slane %v4596_v19, 1 }
  0x3f   : > { %v2623_v52 = vrot.slane %v2462_v47, 4  ;;  %v4800_v53 = vpack.i.bf16 %v2462_v47, %v2460_v49  ;;  %v2452_v54 = vsel %vm2442_vm1, %v2449_v29, %v2451_v44  ;;  %v2513_v55 = vrot.slane %v2450_v30, 4 }
  0x40   : > { %v2625_v56 = vrot.slane %v2452_v54, 4  ;;  %v4803_v57 = vpack.i.bf16 %v2452_v54, %v2450_v30  ;;  %v4806_v12 = vsel %vm398_vm0, %v2511_v51, %v2450_v30  ;;  %v1418_v13 = vrot.slane %v4565_v6, 1 }
  0x41   : > { %7381 = vst [vmem:[#allocation5_spill] sm:$0xff] %v4806_v12  ;;  %v4810_v60 = vsel %vm398_vm0, %v2623_v52, %v2452_v54  ;;  %v4813_v61 = vsel %vm398_vm0, %v2460_v49, %v2513_v55  ;;  %v7293_v0 = vrot.slane %v4570_v8, 1  ;;  %v4825_v2 = vsel %vm1407_vm2, %v1408_v43, %v7288_v40 }
  0x42   : > { %3902 = vrot.lane.b32.xlu2 %v3901_v28, %s4476_s18  ;;  %7382 = vst [vmem:[#allocation6_spill] sm:$0xff] %v4810_v60  ;;  %v4817_v62 = vsel %vm398_vm0, %v2462_v47, %v2625_v56  ;;  %v1423_v3 = vrot.slane %v4583_v14, 1  ;;  %v7291_v17 = vrot.slane %v4586_v15, 1  ;;  %v1428_v22 = vrot.slane %v4599_v20, 1 }
  0x43   : > { %3917 = vrot.lane.b32.xlu1 %v4762_v33, %s4469_s11  ;;  %7383 = vst [vmem:[#allocation7_spill] sm:$0xff] %v4813_v61  ;;  %v4835_v1 = vsel %vm1407_vm2, %v1413_v18, %v7292_v58  ;;  %v4840_v23 = vsel %vm1407_vm2, %v1418_v13, %v7293_v0  ;;  %v7290_v14 = vrot.slane %v4621_v31, 1  ;;  %v1433_v28 = vrot.slane %v4602_v21, 1 }
  0x44   : > { %7384 = vst [vmem:[#allocation8_spill] sm:$0xff] %v4817_v62  ;;  %v7287_v50 = vrot.slane %v4632_v37, 1  ;;  %v1438_v41 = vrot.slane %v4609_v25, 1  ;;  %v7294_v63 = vrot.slane %v4612_v26, 1  ;;  %v1443_v43 = vrot.slane %v4615_v27, 1 }
  0x45   : > { %3912 = vrot.lane.b32.xlu0 %v3911_v35, %s4469_s11  ;;  %7385 = vst [vmem:[#allocation9_spill] sm:$0xff] %v4825_v2  ;;  %v4856_v36 = vsel %vm1407_vm2, %v1428_v22, %v7290_v14  ;;  %v1464_v45 = vrot.slane %v4840_v23, 4  ;;  %v2473_v47 = vrot.slane %v4609_v25, 2  ;;  %v2474_v52 = vrot.slane %v4612_v26, 2 }
  0x46   : > { %7386 = vst [vmem:[#allocation10_spill] sm:$0xff] %v4835_v1  ;;  %v4867_v29 = vsel %vm1407_vm2, %v1433_v28, %v7287_v50  ;;  %v4872_v49 = vsel %vm1407_vm2, %v1438_v41, %v7294_v63  ;;  %v2476_v56 = vrot.slane %v4862_v46, 2  ;;  %v375_v50 = vld [vmem:[%s4556_s10 + $0x10] sm:$0x3]  ;;  %v2469_v40 = vrot.slane %v4632_v37, 2 }
  0x47   : > { %7387 = vst [vmem:[#allocation11_spill] sm:$0xff] %v4840_v23  ;;  %v1465_v30 = vsel %vm398_vm0, %v1464_v45, %v4825_v2  ;;  %v1488_v18 = vrot.slane %v4872_v49, 4 }
  0x48   : > { %7389 = vst [vmem:[#allocation13_spill] sm:$0xff] %v4856_v36  ;;  %v1471_v25 = vperm.slane %v1465_v30, %v4567_v7  ;;  %v2477_v41 = vsel %vm2442_vm1, %v2474_v52, %v2476_v56  ;;  %v2453_v56 = vrot.slane %v4565_v6, 2 }
  0x49   : > { %7390 = vst [vmem:[#allocation14_spill] sm:$0xff] %v4867_v29  ;;  %v1489_v22 = vsel %vm398_vm0, %v1488_v18, %v4856_v36 }
  0x4a   : > { %3922 = vrot.lane.b32.xlu2 %v4772_v38, %s4469_s11  ;;  %7391 = vst [vmem:[#allocation15_spill] sm:$0xff] %v4872_v49 }
  0x4b   : > { %3932 = vrot.lane.b32.xlu1 %v4757_v24, %s4469_s11 }
  0x4d   : > { %3927 = vrot.lane.b32.xlu0 %v4776_v39, %s4469_s11 }
  0x52   : > { %3937 = vrot.lane.b32.xlu2 %v4794_v48, %s4469_s11 }
  0x53   : > { %3942 = vrot.lane.b32.xlu1 %v4575_v10, %s4477_s19  ;;  %v4848_v10 = vsel %vm1407_vm2, %v1423_v3, %v7291_v17  ;;  %v2475_v3 = vsel %vm2442_vm1, %v2473_v47, %v2474_v52 }
  0x54   : > { %7388 = vst [vmem:[#allocation12_spill] sm:$0xff] %v4848_v10  ;;  %v1476_v44 = vrot.slane %v4848_v10, 4 }
  0x55   : > { %3952 = vrot.lane.b32.xlu0 %v3911_v35, %s4477_s19  ;;  %v7289_v35 = vrot.slane %v4624_v32, 1 }
  0x56   : > { %v1477_v54 = vsel %vm398_vm0, %v1476_v44, %v4835_v1  ;;  %v4011_v44 = vpack.i.bf16 %v2477_v41, %v2475_v3 }
  0x57   : > { %v4879_v51 = vsel %vm1407_vm2, %v1443_v43, %v7289_v35  ;;  %v1483_v13 = vperm.slane %v1477_v54, %v4567_v7 }
  0x58   : > { %7392 = vst [vmem:[#allocation16_spill] sm:$0xff] %v4879_v51  ;;  %v1500_v55 = vrot.slane %v4879_v51, 4 }
  0x59   : > { %v1512_v45 = vrot.slane %v1483_v13, 4 }
  0x5a   : > { %3947 = vrot.lane.b32.xlu2 %v4714_v59, %s4477_s19  ;;  %v1501_v28 = vsel %vm398_vm0, %v1500_v55, %v4867_v29  ;;  %v1495_v59 = vperm.slane %v1489_v22, %v4567_v7  ;;  %v2454_v22 = vrot.slane %v4570_v8, 2 }
  0x5b   : > { %3957 = vrot.lane.b32.xlu1 %v4762_v33, %s4477_s19  ;;  %v1507_v43 = vperm.slane %v1501_v28, %v4567_v7  ;;  %v1513_v47 = vsel %vm398_vm0, %v1512_v45, %v1471_v25  ;;  %v4934_v45 = vld [vmem:[%s4556_s10 + $0x70] sm:$0x3] }
  0x5c   : > { %v4907_v18 = vperm.slane %v1513_v47, %v4588_v16  ;;  %v1538_v55 = vrot.slane %v1495_v59, 4 }
  0x5d   : > { %3967 = vrot.lane.b32.xlu0 %v4776_v39, %s4477_s19  ;;  %v1536_v30 = vrot.slane %v1507_v43, 4 }
  0x5e   : > { %v1562_v39 = vrot.slane %v4907_v18, 4 }
  0x5f   : > { %v1537_v52 = vsel %vm398_vm0, %v1536_v30, %v1495_v59  ;;  %v2464_v30 = vrot.slane %v4621_v31, 2  ;;  %v2463_v59 = vrot.slane %v4599_v20, 2 }
  0x60   : > { %v4917_v33 = vperm.slane %v1537_v52, %v4588_v16  ;;  %v2466_v52 = vrot.slane %v4934_v45, 2 }
  0x61   : > { %v2465_v20 = vsel %vm2442_vm1, %v2463_v59, %v2464_v30  ;;  %v2446_v59 = vrot.slane %v375_v50, 2 }
  0x62   : > { %3962 = vrot.lane.b32.xlu2 %v4772_v38, %s4477_s19  ;;  %v1563_v54 = vsel %vm398_vm0, %v4917_v33, %v1562_v39  ;;  %v1514_v38 = vrot.slane %v1471_v25, 4  ;;  %v2635_v39 = vrot.slane %v2477_v41, 4 }
  0x63   : > { %3972 = vrot.lane.b32.xlu1 %v4757_v24, %s4477_s19  ;;  %v4928_v24 = vld [vmem:[%s4556_s10 + $0x40] sm:$0x3] }
  0x64   : > { %v2456_v28 = vrot.slane %v4928_v24, 2  ;;  %v1515_v47 = vsel %vm398_vm0, %v1483_v13, %v1514_v38 }
  0x65   : > { %3982 = vrot.lane.b32.xlu0 %v4800_v53, %s4477_s19  ;;  %v4941_v25 = vperm.slane %v1515_v47, %v4588_v16 }
  0x66   : > { %v4954_v38 = vsel %vm2442_vm1, %v2454_v22, %v2456_v28  ;;  %v2525_v28 = vrot.slane %v2465_v20, 4 }
  0x67   : > { %7393 = vst [vmem:[#allocation17_spill] sm:$0xff] %v4941_v25 }
  0x68   : > { %7396 = vst [vmem:[#allocation20_spill] sm:$0xff] %v4954_v38 }
  0x6a   : > { %3977 = vrot.lane.b32.xlu2 %v4794_v48, %s4477_s19  ;;  %v1539_v48 = vsel %vm398_vm0, %v1507_v43, %v1538_v55  ;;  %v4951_v43 = vsel %vm2442_vm1, %v2453_v56, %v2454_v22  ;;  %v2467_v55 = vsel %vm2442_vm1, %v2464_v30, %v2466_v52  ;;  %v2443_v30 = vrot.slane %v4559_v4, 2 }
  0x6b   : > { %1689 = vrot.lane.b32.xlu1 %v1563_v54, %s4471_s13  ;;  %v4944_v6 = vperm.slane %v1539_v48, %v4588_v16  ;;  %v2523_v54 = vrot.slane %v2475_v3, 4  ;;  %7395 = vst [vmem:[#allocation19_spill] sm:$0xff] %v4951_v43  ;;  %v4961_v48 = vsel %vm398_vm0, %v2635_v39, %v2467_v55  ;;  %v4001_v22 = vpack.i.bf16 %v4954_v38, %v4951_v43 }
  0x6c   : > { %7397 = vst [vmem:[#allocation21_spill] sm:$0xff] %v4961_v48  ;;  %v2444_v39 = vrot.slane %v4562_v5, 2  ;;  %v4016_v4 = vpack.i.bf16 %v2467_v55, %v2465_v20 }
  0x6d   : > { %3997 = vrot.lane.b32.xlu0 %v4803_v57, %s4477_s19  ;;  %7394 = vst [vmem:[#allocation18_spill] sm:$0xff] %v4944_v6  ;;  %v1564_v13 = vrot.slane %v4944_v6, 4  ;;  %v4966_v56 = vsel %vm398_vm0, %v2523_v54, %v2465_v20 }
  0x6e   : > { %7398 = vst [vmem:[#allocation22_spill] sm:$0xff] %v4966_v56  ;;  %v4982_v54 = vsel %vm2442_vm1, %v2443_v30, %v2444_v39 }
  0x6f   : > { %v1565_v47 = vsel %vm398_vm0, %v1564_v13, %v4941_v25  ;;  %v4976_v13 = vsel %vm398_vm0, %v2475_v3, %v2525_v28  ;;  %7401 = vst [vmem:[#allocation25_spill] sm:$0xff] %v4982_v54  ;;  %v4994_v3 = vld [vmem:[%s4556_s10 + $0xb8] sm:$0x3] }
  0x70   : > { %7400 = vst [vmem:[#allocation24_spill] sm:$0xff] %v4976_v13 }
  0x71   : > { %7403 = vst [vmem:[#allocation27_spill] sm:$0xff] %v4994_v3 }
  0x72   : > { %1693 = vrot.lane.b32.xlu2 %v1565_v47, %s4472_s14  ;;  %v4985_v47 = vsel %vm2442_vm1, %v2444_v39, %v2446_v59  ;;  %v5008_v39 = vld [vmem:[%s4556_s10 + $0x88] sm:$0x3]  ;;  %v2468_v59 = vrot.slane %v4602_v21, 2 }
  0x73   : > { %3987 = vrot.lane.b32.xlu1 %v4011_v44, %s4477_s19  ;;  %7402 = vst [vmem:[#allocation26_spill] sm:$0xff] %v4985_v47  ;;  %v4991_v50 = vpack.i.bf16 %v4985_v47, %v4982_v54 }
  0x74   : > { %7404 = vst [vmem:[#allocation28_spill] sm:$0xff] %v5008_v39  ;;  %v2470_v35 = vsel %vm2442_vm1, %v2468_v59, %v2469_v40 }
  0x75   : > { %4012 = vrot.lane.b32.xlu0 %v4011_v44, %s4469_s11  ;;  %v2637_v44 = vrot.slane %v2467_v55, 4  ;;  %v2537_v0 = vrot.slane %v2470_v35, 4 }
  0x77   : > { %v4971_v52 = vsel %vm398_vm0, %v2477_v41, %v2637_v44  ;;  %v2478_v41 = vrot.slane %v4615_v27, 2  ;;  %v2481_v44 = vrot.slane %v4994_v3, 2 }
  0x78   : > { %7399 = vst [vmem:[#allocation23_spill] sm:$0xff] %v4971_v52 }
  0x7a   : > { %3992 = vrot.lane.b32.xlu2 %v4800_v53, %s4469_s11 }
  0x7b   : > { %4002 = vrot.lane.b32.xlu1 %v4001_v22, %s4477_s19 }
  0x7d   : > { %4027 = vrot.lane.b32.xlu0 %v4803_v57, %s4469_s11  ;;  %v2479_v57 = vrot.slane %v4624_v32, 2 }
  0x7f   : > { %v2480_v28 = vsel %vm2442_vm1, %v2478_v41, %v2479_v57  ;;  %v2482_v53 = vsel %vm2442_vm1, %v2479_v57, %v2481_v44  ;;  %v2471_v41 = vrot.slane %v5008_v39, 2 }
  0x80   : > { %v4006_v55 = vpack.i.bf16 %v2482_v53, %v2480_v28  ;;  %v2647_v30 = vrot.slane %v2482_v53, 4  ;;  %v2535_v27 = vrot.slane %v2480_v28, 4 }
  0x81   : > { %v2472_v57 = vsel %vm2442_vm1, %v2469_v40, %v2471_v41 }
  0x82   : > { %4007 = vrot.lane.b32.xlu2 %v4006_v55, %s4477_s19  ;;  %v5017_v44 = vsel %vm398_vm0, %v2647_v30, %v2472_v57  ;;  %v2649_v14 = vrot.slane %v2472_v57, 4  ;;  %v4021_v17 = vpack.i.bf16 %v2472_v57, %v2470_v35  ;;  %v5020_v58 = vsel %vm398_vm0, %v2535_v27, %v2470_v35 }
  0x83   : > { %4017 = vrot.lane.b32.xlu1 %v4016_v4, %s4477_s19  ;;  %7405 = vst [vmem:[#allocation29_spill] sm:$0xff] %v5017_v44  ;;  %v494_v30 = vrot.slane %v4668_v11, 4  ;;  %v606_v27 = vrot.slane %v4686_v42, 4 }
  0x84   : > { %7406 = vst [vmem:[#allocation30_spill] sm:$0xff] %v5020_v58  ;;  %v5025_v63 = vsel %vm398_vm0, %v2482_v53, %v2649_v14 }
  0x85   : > { %4042 = vrot.lane.b32.xlu0 %v4991_v50, %s4477_s19  ;;  %7408 = vst [vmem:[#allocation32_spill] sm:$0xff] %v5025_v63  ;;  %v607_v35 = vsel %vm398_vm0, %v606_v27, %v4675_v34  ;;  %v495_v53 = vsel %vm398_vm0, %v494_v30, %v4665_v9 }
  0x89   : > { %v5005_v20 = vpop.permute.xlu2 %3872 }
  0x8a   : > { %4022 = vrot.lane.b32.xlu2 %v4021_v17, %s4477_s19 }
  0x8b   : > { %4032 = vrot.lane.b32.xlu1 %v4001_v22, %s4469_s11  ;;  %v5029_v22 = vsel %vm398_vm0, %v2480_v28, %v2537_v0 }
  0x8c   : > { %7409 = vst [vmem:[#allocation33_spill] sm:$0xff] %v5029_v22  ;;  %v5031_v40 = vpop.permute.xlu1 %3867 }
  0x92   : > { %4037 = vrot.lane.b32.xlu2 %v4006_v55, %s4469_s11 }
  0x93   : > { %4047 = vrot.lane.b32.xlu1 %v4016_v4, %s4469_s11 }
  0x94   : > { %v5022_v21 = vpop.permute.xlu2 %3897 }
  0x95   : > { %7407 = vst [vmem:[#allocation31_spill] sm:$0xff] %v5022_v21 }
  0x9a   : > { %4052 = vrot.lane.b32.xlu2 %v4021_v17, %s4469_s11 }
  0x9c   : > { %v5036_v59 = vpop.permute.xlu2 %3902  ;;  %v3888_v11 = vpop.permute.xlu1 %3887 }
  0x9d   : > { %7410 = vst [vmem:[#allocation34_spill] sm:$0xff] %v5036_v59  ;;  %v3890_v6 = vunpack.i.h.bf16 %v3888_v11  ;;  %v3889_v52 = vunpack.i.l.bf16 %v3888_v11 }
  0x9f   : > { %v3878_v14 = vpop.permute.xlu0 %3877 }
  0xa0   : > { %v3880_v0 = vunpack.i.h.bf16 %v3878_v14  ;;  %v3879_v28 = vunpack.i.l.bf16 %v3878_v14 }
  0xa2   : > { %v692_v41 = vsel %vm678_vm3, %v607_v35, %v3880_v0  ;;  %v679_v4 = vsel %vm678_vm3, %v495_v53, %v3879_v28  ;;  %v3875_v28 = vunpack.i.h.bf16 %v5005_v20 }
  0xa4   : > { %v5045_v42 = vpop.permute.xlu2 %3922  ;;  %v889_v11 = vrot.slane %v3875_v28, 4 }
  0xa5   : > { %v3925_v17 = vunpack.i.h.bf16 %v5045_v42  ;;  %v3924_v62 = vunpack.i.l.bf16 %v5045_v42 }
  0xa7   : > { %v3883_v57 = vpop.permute.xlu0 %3882  ;;  %v789_v47 = vrot.slane %v3924_v62, 4 }
  0xa8   : > { %v3885_v34 = vunpack.i.h.bf16 %v3883_v57  ;;  %v3884_v27 = vunpack.i.l.bf16 %v3883_v57  ;;  %v3869_v57 = vunpack.i.l.bf16 %v5031_v40 }
  0xaa   : > { %v681_v9 = vsel %vm680_vm4, %v679_v4, %v3884_v27  ;;  %v693_v30 = vsel %vm680_vm4, %v692_v41, %v3885_v34  ;;  %v3874_v4 = vunpack.i.l.bf16 %v5005_v20  ;;  %v3870_v41 = vunpack.i.h.bf16 %v5031_v40 }
  0xab   : > { %v5050_v35 = vsel %vm682_vm5, %v681_v9, %v3889_v52  ;;  %v5053_v14 = vsel %vm682_vm5, %v693_v30, %v3890_v6  ;;  %v765_v56 = vrot.slane %v3869_v57, 4 }
  0xac   : > { %7411 = vst [vmem:[#allocation35_spill] sm:$0xff] %v5050_v35  ;;  %v5058_v53 = vpop.permute.xlu2 %3937  ;;  %v777_v52 = vrot.slane %v3874_v4, 4  ;;  %v877_v34 = vrot.slane %v3870_v41, 4 }
  0xad   : > { %7412 = vst [vmem:[#allocation36_spill] sm:$0xff] %v5053_v14  ;;  %v5056_v55 = vpop.permute.xlu1 %3892  ;;  %v7415_v44 = vunpack.i.h.bf16 %v5058_v53  ;;  %v7416_v43 = vunpack.i.l.bf16 %v5058_v53  ;;  %v7419_v29 = vunpack.i.l.bf16 %v5058_v53 }
  0xae   : > { %7413 = vst [vmem:[#allocation37_spill] sm:$0xff] %v5056_v55 }
  0xaf   : > { %v5060_v0 = vpop.permute.xlu0 %3907  ;;  %v911_v40 = vrot.slane %v7415_v44, 4 }
  0xb0   : > { %7414 = vst [vmem:[#allocation38_spill] sm:$0xff] %v5060_v0 }
  0xb4   : > { %v5069_v20 = vpop.permute.xlu2 %3947 }
  0xb5   : > { %v3918_v6 = vpop.permute.xlu1 %3917  ;;  %v7304_v12 = vunpack.i.l.bf16 %v5069_v20 }
  0xb6   : > { %v3920_v27 = vunpack.i.h.bf16 %v3918_v6  ;;  %v3919_v9 = vunpack.i.l.bf16 %v3918_v6 }
  0xb7   : > { %v3913_v30 = vpop.permute.xlu0 %3912 }
  0xb8   : > { %v3915_v61 = vunpack.i.h.bf16 %v3913_v30  ;;  %v3914_v22 = vunpack.i.l.bf16 %v3913_v30  ;;  %v887_v63 = vrot.slane %v3920_v27, 4  ;;  %v775_v58 = vrot.slane %v3919_v9, 4 }
  0xb9   : > { %v890_v48 = vsel %vm398_vm0, %v3920_v27, %v889_v11  ;;  %v778_v42 = vsel %vm398_vm0, %v3919_v9, %v777_v52  ;;  %v901_v30 = vrot.slane %v3925_v17, 4  ;;  %v799_v11 = vrot.slane %v7416_v43, 4 }
  0xba   : > { %v875_v25 = vrot.slane %v3915_v61, 4  ;;  %v888_v6 = vsel %vm398_vm0, %v887_v63, %v3875_v28  ;;  %v878_v13 = vsel %vm398_vm0, %v3915_v61, %v877_v34  ;;  %v763_v54 = vrot.slane %v3914_v22, 4 }
  0xbb   : > { %v776_v60 = vsel %vm398_vm0, %v775_v58, %v3874_v4  ;;  %v7417_v63 = vunpack.i.h.bf16 %v5069_v20  ;;  %v5089_v61 = vperm.slane %v888_v6, %v4567_v7  ;;  %v5092_v52 = vperm.slane %v890_v48, %v4567_v7 }
  0xbc   : > { %v876_v27 = vsel %vm398_vm0, %v875_v25, %v3870_v41  ;;  %v5095_v58 = vperm.slane %v778_v42, %v4567_v7  ;;  %v5098_v44 = vperm.slane %v878_v13, %v4567_v7  ;;  %v5101_v43 = vperm.slane %v776_v60, %v4567_v7 }
  0xbd   : > { %v5086_v28 = vrot.slane %v7417_v63, 4  ;;  %v3933_v4 = vpop.permute.xlu1 %3932  ;;  %v764_v34 = vsel %vm398_vm0, %v763_v54, %v3869_v57  ;;  %v5105_v6 = vperm.slane %v876_v27, %v4567_v7  ;;  %v766_v48 = vsel %vm398_vm0, %v3914_v22, %v765_v56 }
  0xbe   : > { %v3935_v25 = vunpack.i.h.bf16 %v3933_v4  ;;  %v3934_v41 = vunpack.i.l.bf16 %v3933_v4  ;;  %v5110_v42 = vrot.slane %v7304_v12, 4  ;;  %v935_v4 = vrot.slane %v5092_v52, 4 }
  0xbf   : > { %v3928_v9 = vpop.permute.xlu0 %3927  ;;  %v823_v54 = vrot.slane %v5095_v58, 4  ;;  %v5117_v27 = vperm.slane %v764_v34, %v4567_v7  ;;  %v5123_v0 = vperm.slane %v766_v48, %v4567_v7 }
  0xc0   : > { %v3930_v63 = vunpack.i.h.bf16 %v3928_v9  ;;  %v899_v13 = vrot.slane %v3935_v25, 4  ;;  %v902_v14 = vsel %vm398_vm0, %v3935_v25, %v901_v30  ;;  %v787_v60 = vrot.slane %v3934_v41, 4 }
  0xc1   : > { %v3929_v35 = vunpack.i.l.bf16 %v3928_v9  ;;  %v790_v12 = vsel %vm398_vm0, %v3934_v41, %v789_v47  ;;  %v5126_v30 = vperm.slane %v902_v14, %v4567_v7  ;;  %v925_v9 = vrot.slane %v5105_v6, 4  ;;  %v5137_v41 = vpop.permute.xlu2 %3962 }
  0xc2   : > { %v788_v25 = vsel %vm398_vm0, %v787_v60, %v3924_v62  ;;  %v5132_v34 = vsel %vm398_vm0, %v935_v4, %v5098_v44  ;;  %v900_v57 = vsel %vm398_vm0, %v899_v13, %v3925_v17  ;;  %v912_v56 = vsel %vm398_vm0, %v911_v40, %v3930_v63 }
  0xc3   : > { %v913_v22 = vrot.slane %v3930_v63, 4  ;;  %v800_v47 = vsel %vm398_vm0, %v799_v11, %v3929_v35  ;;  %v5140_v14 = vperm.slane %v790_v12, %v4567_v7  ;;  %v813_v62 = vrot.slane %v5117_v27, 4 }
  0xc4   : > { %v801_v60 = vrot.slane %v3929_v35, 4  ;;  %v5145_v4 = vperm.slane %v788_v25, %v4567_v7  ;;  %v5149_v17 = vsel %vm398_vm0, %v823_v54, %v5123_v0  ;;  %v5152_v13 = vperm.slane %v900_v57, %v4567_v7 }
  0xc5   : > { %v3943_v48 = vpop.permute.xlu1 %3942  ;;  %v7418_v12 = vunpack.i.h.bf16 %v5058_v53  ;;  %v5158_v35 = vperm.slane %v912_v56, %v4567_v7  ;;  %v5161_v25 = vperm.slane %v800_v47, %v4567_v7  ;;  %v814_v55 = vsel %vm398_vm0, %v5101_v43, %v813_v62 }
  0xc6   : > { %v3945_v40 = vunpack.i.h.bf16 %v3943_v48  ;;  %v3944_v11 = vunpack.i.l.bf16 %v3943_v48  ;;  %v802_v37 = vsel %vm398_vm0, %v7419_v29, %v801_v60  ;;  %v837_v56 = vrot.slane %v5145_v4, 4 }
  0xc7   : > { %v3953_v63 = vpop.permute.xlu0 %3952  ;;  %v914_v59 = vsel %vm398_vm0, %v7418_v12, %v913_v22  ;;  %v949_v54 = vrot.slane %v5152_v13, 4  ;;  %v947_v38 = vrot.slane %v5158_v35, 4  ;;  %v835_v51 = vrot.slane %v5161_v25, 4 }
  0xc8   : > { %v1219_v21 = vrot.slane %v3945_v40, 4  ;;  %v3955_v48 = vunpack.i.h.bf16 %v3953_v63  ;;  %v1107_v57 = vrot.slane %v3944_v11, 4  ;;  %v3954_v22 = vunpack.i.l.bf16 %v3953_v63 }
  0xc9   : > { %v5171_v12 = vperm.slane %v914_v59, %v4567_v7  ;;  %v7420_v53 = vunpack.i.h.bf16 %v5137_v41  ;;  %v5184_v60 = vperm.slane %v802_v37, %v4567_v7  ;;  %v838_v47 = vsel %vm398_vm0, %v5161_v25, %v837_v56 }
  0xca   : > { %v1217_v59 = vrot.slane %v3955_v48, 4  ;;  %v1220_v63 = vsel %vm398_vm0, %v3955_v48, %v1219_v21  ;;  %v1105_v2 = vrot.slane %v3954_v22, 4  ;;  %v1108_v39 = vsel %vm398_vm0, %v3954_v22, %v1107_v57 }
  0xcb   : > { %v5181_v29 = vrot.slane %v7420_v53, 4  ;;  %v822_v5 = vperm.slane %v814_v55, %v4588_v16  ;;  %v926_v32 = vsel %vm398_vm0, %v5089_v61, %v925_v9  ;;  %v7421_v37 = vunpack.i.l.bf16 %v5137_v41 }
  0xcc   : > { %v5199_v48 = vperm.slane %v1220_v63, %v4567_v7  ;;  %v846_v25 = vperm.slane %v838_v47, %v4588_v16  ;;  %v934_v57 = vperm.slane %v926_v32, %v4588_v16  ;;  %v950_v55 = vsel %vm398_vm0, %v5158_v35, %v949_v54 }
  0xcd   : > { %v3958_v62 = vpop.permute.xlu1 %3957  ;;  %v5196_v3 = vrot.slane %v7421_v37, 4  ;;  %v1218_v56 = vsel %vm398_vm0, %v1217_v59, %v3945_v40  ;;  %v5207_v53 = vperm.slane %v1108_v39, %v4567_v7  ;;  %v865_v63 = vrot.slane %v822_v5, 4  ;;  %v5219_v39 = vpop.permute.xlu2 %3977 }
  0xce   : > { %v3960_v10 = vunpack.i.h.bf16 %v3958_v62  ;;  %v3959_v21 = vunpack.i.l.bf16 %v3958_v62  ;;  %v1106_v62 = vsel %vm398_vm0, %v1105_v2, %v3944_v11  ;;  %v958_v36 = vperm.slane %v950_v55, %v4588_v16 }
  0xcf   : > { %v7422_v47 = vunpack.i.h.bf16 %v5069_v20  ;;  %v977_v54 = vrot.slane %v934_v57, 4  ;;  %v7423_v59 = vunpack.i.l.bf16 %v5069_v20  ;;  %v5225_v11 = vperm.slane %v1218_v56, %v4567_v7 }
  0xd0   : > { %v1229_v22 = vrot.slane %v3960_v10, 4  ;;  %v1117_v9 = vrot.slane %v3959_v21, 4  ;;  %v1232_v35 = vsel %vm398_vm0, %v3960_v10, %v5086_v28  ;;  %v1120_v40 = vsel %vm398_vm0, %v3959_v21, %v5110_v42 }
  0xd1   : > { %v978_v28 = vsel %vm398_vm0, %v958_v36, %v977_v54  ;;  %v863_v42 = vrot.slane %v846_v25, 4  ;;  %v5238_v20 = vperm.slane %v1232_v35, %v4567_v7  ;;  %v3980_v56 = vunpack.i.h.bf16 %v5219_v39 }
  0xd2   : > { %v1230_v32 = vsel %vm398_vm0, %v1229_v22, %v7422_v47  ;;  %v1118_v2 = vsel %vm398_vm0, %v1117_v9, %v7423_v59  ;;  %v866_v22 = vsel %vm398_vm0, %v846_v25, %v865_v63  ;;  %v5230_v47 = vperm.slane %v1106_v62, %v4567_v7 }
  0xd3   : > { %v5235_v21 = vperm.slane %v1230_v32, %v4567_v7  ;;  %v5241_v9 = vperm.slane %v1120_v40, %v4567_v7  ;;  %v5245_v63 = vperm.slane %v1118_v2, %v4567_v7  ;;  %v4066_v62 = vpack.i.bf16 %v978_v28, %v866_v22  ;;  %v3968_v22 = vpop.permute.xlu0 %3967 }
  0xd4   : > { %v864_v59 = vsel %vm398_vm0, %v863_v42, %v822_v5  ;;  %v975_v55 = vrot.slane %v958_v36, 4  ;;  %v7424_v25 = vrot.slane %v5101_v43, 4  ;;  %v836_v35 = vsel %vm398_vm0, %v835_v51, %v5145_v4 }
  0xd5   : > { %v3973_v54 = vpop.permute.xlu1 %3972  ;;  %v7425_v40 = vrot.slane %v5089_v61, 4  ;;  %v948_v2 = vsel %vm398_vm0, %v947_v38, %v5152_v13  ;;  %4067 = vrot.lane.b32.xlu2 %v4066_v62, %s4470_s12  ;;  %v5266_v43 = vperm.slane %v836_v35, %v4588_v16  ;;  %v1253_v4 = vrot.slane %v3980_v56, 4 }
  0xd6   : > { %v812_v32 = vsel %vm398_vm0, %v7424_v25, %v5117_v27  ;;  %v976_v5 = vsel %vm398_vm0, %v975_v55, %v934_v57  ;;  %v3975_v27 = vunpack.i.h.bf16 %v3973_v54  ;;  %v3974_v38 = vunpack.i.l.bf16 %v3973_v54 }
  0xd7   : > { %v924_v10 = vsel %vm398_vm0, %v7425_v40, %v5105_v6  ;;  %v5263_v36 = vperm.slane %v812_v32, %v4588_v16  ;;  %v4061_v61 = vpack.i.bf16 %v976_v5, %v864_v59  ;;  %v5272_v6 = vperm.slane %v948_v2, %v4588_v16 }
  0xd8   : > { %v5269_v51 = vperm.slane %v924_v10, %v4588_v16  ;;  %v3970_v55 = vunpack.i.h.bf16 %v3968_v22  ;;  %v3979_v28 = vunpack.i.l.bf16 %v5219_v39  ;;  %v1241_v10 = vrot.slane %v3975_v27, 4 }
  0xd9   : > { %7426 = vst [vmem:[#allocation39_spill] sm:$0xff] %v5263_v36  ;;  %v861_v13 = vrot.slane %v5263_v36, 4  ;;  %4062 = vrot.lane.b32.xlu1 %v4061_v61, %s4472_s14  ;;  %v1244_v42 = vsel %vm398_vm0, %v3975_v27, %v5181_v29  ;;  %v1129_v62 = vrot.slane %v3974_v38, 4  ;;  %v1165_v59 = vrot.slane %v5241_v9, 4 }
  0xda   : > { %7427 = vst [vmem:[#allocation40_spill] sm:$0xff] %v5269_v51  ;;  %v973_v57 = vrot.slane %v5269_v51, 4  ;;  %v1132_v32 = vsel %vm398_vm0, %v3974_v38, %v5196_v3  ;;  %v7429_v40 = vunpack.i.h.bf16 %v5137_v41  ;;  %v5293_v5 = vperm.slane %v1244_v42, %v4567_v7 }
  0xdb   : > { %7428 = vst [vmem:[#allocation41_spill] sm:$0xff] %v5272_v6  ;;  %v862_v54 = vsel %vm398_vm0, %v5266_v43, %v861_v13  ;;  %v7430_v29 = vmov %v7421_v37  ;;  %v1267_v27 = vrot.slane %v5225_v11, 4  ;;  %v1254_v3 = vsel %vm398_vm0, %v1253_v4, %v3970_v55 }
  0xdc   : > { %v974_v25 = vsel %vm398_vm0, %v5272_v6, %v973_v57  ;;  %v1242_v2 = vsel %vm398_vm0, %v1241_v10, %v7429_v40  ;;  %v1130_v61 = vsel %vm398_vm0, %v1129_v62, %v7430_v29  ;;  %v5303_v57 = vperm.slane %v1132_v32, %v4567_v7 }
  0xdd   : > { %v4056_v35 = vpack.i.bf16 %v974_v25, %v862_v54  ;;  %v5300_v13 = vperm.slane %v1242_v2, %v4567_v7  ;;  %v1155_v38 = vrot.slane %v5230_v47, 4  ;;  %v1141_v10 = vrot.slane %v3979_v28, 4 }
  0xde   : > { %v5309_v42 = vperm.slane %v1130_v61, %v4567_v7  ;;  %v3969_v41 = vunpack.i.l.bf16 %v3968_v22  ;;  %v1255_v54 = vrot.slane %v3970_v55, 4  ;;  %v5313_v25 = vperm.slane %v1254_v3, %v4567_v7 }
  0xdf   : > { %4057 = vrot.lane.b32.xlu0 %v4056_v35, %s4471_s13  ;;  %v7431_v32 = vrot.slane %v5140_v14, 4  ;;  %v1153_v2 = vrot.slane %v5245_v63, 4  ;;  %v5323_v35 = vsel %vm398_vm0, %v1165_v59, %v5207_v53  ;;  %v1291_v55 = vrot.slane %v5300_v13, 4 }
  0xe0   : > { %v7432_v61 = vrot.slane %v5123_v0, 4  ;;  %v1179_v62 = vrot.slane %v5309_v42, 4  ;;  %v1142_v40 = vsel %vm398_vm0, %v1141_v10, %v3969_v41  ;;  %v7433_v59 = vrot.slane %v5126_v30, 4 }
  0xe1   : > { %v850_v4 = vsel %vm398_vm0, %v5184_v60, %v7431_v32  ;;  %v830_v37 = vperm.slane %v5149_v17, %v4588_v16  ;;  %v1256_v0 = vsel %vm398_vm0, %v3980_v56, %v1255_v54  ;;  %v1143_v29 = vrot.slane %v3969_v41, 4 }
  0xe2   : > { %v826_v3 = vsel %vm398_vm0, %v5095_v58, %v7432_v61  ;;  %v858_v32 = vperm.slane %v850_v4, %v4588_v16  ;;  %v962_v22 = vsel %vm398_vm0, %v5171_v12, %v7433_v59  ;;  %v7434_v4 = vrot.slane %v5098_v44, 4 }
  0xe3   : > { %v834_v36 = vperm.slane %v826_v3, %v4588_v16  ;;  %v970_v59 = vperm.slane %v962_v22, %v4588_v16  ;;  %v7435_v17 = vrot.slane %v5184_v60, 4  ;;  %v1148_v56 = vperm.slane %v1142_v40, %v4567_v7 }
  0xe4   : > { %v871_v61 = vrot.slane %v858_v32, 4  ;;  %v938_v10 = vsel %vm398_vm0, %v5092_v52, %v7434_v4  ;;  %v869_v58 = vrot.slane %v830_v37, 4  ;;  %v942_v44 = vperm.slane %v5132_v34, %v4588_v16 }
  0xe5   : > { %v848_v39 = vsel %vm398_vm0, %v7435_v17, %v5140_v14  ;;  %v946_v41 = vperm.slane %v938_v10, %v4588_v16  ;;  %v983_v3 = vrot.slane %v970_v59, 4  ;;  %v7436_v22 = vrot.slane %v5171_v12, 4 }
  0xe6   : > { %v854_v54 = vperm.slane %v848_v39, %v4588_v16  ;;  %v872_v52 = vsel %vm398_vm0, %v871_v61, %v834_v36  ;;  %v981_v4 = vrot.slane %v942_v44, 4  ;;  %v5367_v39 = vpop.permute.xlu0 %3982  ;;  %v5370_v34 = vperm.slane %v1256_v0, %v4567_v7 }
  0xe7   : > { %v960_v60 = vsel %vm398_vm0, %v7436_v22, %v5126_v30  ;;  %v1144_v61 = vsel %vm398_vm0, %v3979_v28, %v1143_v29  ;;  %v984_v10 = vsel %vm398_vm0, %v983_v3, %v946_v41  ;;  %v1156_v12 = vsel %vm398_vm0, %v5245_v63, %v1155_v38 }
  0xe8   : > { %v870_v14 = vsel %vm398_vm0, %v854_v54, %v869_v58  ;;  %v966_v40 = vperm.slane %v960_v60, %v4588_v16  ;;  %v867_v17 = vrot.slane %v854_v54, 4  ;;  %v4081_v51 = vpack.i.bf16 %v984_v10, %v872_v52 }
  0xe9   : > { %v1177_v60 = vrot.slane %v1148_v56, 4  ;;  %v1164_v6 = vperm.slane %v1156_v12, %v4588_v16  ;;  %v1180_v0 = vsel %vm398_vm0, %v1148_v56, %v1179_v62  ;;  %v1268_v63 = vsel %vm398_vm0, %v5235_v21, %v1267_v27 }
  0xea   : > { %v982_v30 = vsel %vm398_vm0, %v966_v40, %v981_v4  ;;  %v868_v58 = vsel %vm398_vm0, %v867_v17, %v830_v37  ;;  %v979_v22 = vrot.slane %v966_v40, 4  ;;  %4082 = vrot.lane.b32.xlu2 %v4081_v51, %s4476_s18  ;;  %v1188_v29 = vperm.slane %v1180_v0, %v4588_v16 }
  0xeb   : > { %v4076_v54 = vpack.i.bf16 %v982_v30, %v870_v14  ;;  %v1292_v38 = vsel %vm398_vm0, %v5313_v25, %v1291_v55  ;;  %v1207_v52 = vrot.slane %v1164_v6, 4  ;;  %v1276_v3 = vperm.slane %v1268_v63, %v4588_v16 }
  0xec   : > { %v980_v28 = vsel %vm398_vm0, %v979_v22, %v942_v44  ;;  %v1300_v62 = vperm.slane %v1292_v38, %v4588_v16  ;;  %v873_v56 = vrot.slane %v834_v36, 4  ;;  %v985_v51 = vrot.slane %v946_v41, 4 }
  0xed   : > { %4077 = vrot.lane.b32.xlu1 %v4076_v54, %s4473_s15  ;;  %v4071_v37 = vpack.i.bf16 %v980_v28, %v868_v58  ;;  %v1205_v14 = vrot.slane %v1188_v29, 4  ;;  %v1154_v44 = vsel %vm398_vm0, %v1153_v2, %v5230_v47  ;;  %v1152_v40 = vperm.slane %v1144_v61, %v4567_v7  ;;  %v5402_v47 = vpop.permute.xlu2 %1693 }
  0xee   : > { %v1208_v27 = vsel %vm398_vm0, %v1188_v29, %v1207_v52  ;;  %v1319_v55 = vrot.slane %v1276_v3, 4  ;;  %v1317_v4 = vrot.slane %v1300_v62, 4  ;;  %v874_v17 = vsel %vm398_vm0, %v858_v32, %v873_v56  ;;  %v5416_v22 = vpop.permute.xlu0 %3997 }
  0xef   : > { %4072 = vrot.lane.b32.xlu0 %v4071_v37, %s4474_s16  ;;  %v986_v10 = vsel %vm398_vm0, %v970_v59, %v985_v51  ;;  %v1206_v12 = vsel %vm398_vm0, %v1205_v14, %v1164_v6  ;;  %v7437_v36 = vrot.slane %v5235_v21, 4  ;;  %v5407_v30 = vperm.slane %v1154_v44, %v4588_v16 }
  0xf0   : > { %v1320_v2 = vsel %vm398_vm0, %v1300_v62, %v1319_v55  ;;  %v1318_v61 = vsel %vm398_vm0, %v1317_v4, %v1276_v3  ;;  %v1178_v32 = vsel %vm398_vm0, %v1177_v60, %v5309_v42  ;;  %v1301_v59 = vrot.slane %v5370_v34, 4 }
  0xf1   : > { %v1266_v41 = vsel %vm398_vm0, %v7437_v36, %v5225_v11  ;;  %v4101_v6 = vpack.i.bf16 %v1320_v2, %v1208_v27  ;;  %v4096_v58 = vpack.i.bf16 %v1318_v61, %v1206_v12  ;;  %v7438_v21 = vrot.slane %v5313_v25, 4 }
  0xf2   : > { %v1189_v54 = vrot.slane %v1152_v40, 4  ;;  %v5419_v0 = vperm.slane %v1266_v41, %v4588_v16  ;;  %v7439_v28 = vrot.slane %v5207_v53, 4  ;;  %v7440_v60 = vrot.slane %v5303_v57, 4 }
  0xf3   : > { %v1290_v11 = vsel %vm398_vm0, %v7438_v21, %v5300_v13  ;;  %v7441_v25 = vrot.slane %v5238_v20, 4  ;;  %v4086_v63 = vpack.i.bf16 %v986_v10, %v874_v17  ;;  %4102 = vrot.lane.b32.xlu2 %v4101_v6, %s4470_s12  ;;  %v5434_v38 = vperm.slane %v1178_v32, %v4588_v16  ;;  %v1690_v10 = vpop.permute.xlu1 %1689 }
  0xf4   : > { %v1168_v42 = vsel %vm398_vm0, %v5241_v9, %v7439_v28  ;;  %v1192_v29 = vsel %vm398_vm0, %v1152_v40, %v7440_v60  ;;  %v1203_v9 = vrot.slane %v5407_v30, 4  ;;  %v5442_v37 = vperm.slane %v1290_v11, %v4588_v16 }
  0xf5   : > { %v1278_v13 = vsel %vm398_vm0, %v7441_v25, %v5199_v48  ;;  %v5437_v53 = vperm.slane %v1192_v29, %v4588_v16  ;;  %4097 = vrot.lane.b32.xlu1 %v4096_v58, %s4472_s14  ;;  %v7442_v52 = vrot.slane %v5199_v48, 4  ;;  %v7443_v62 = vrot.slane %v5293_v5, 4 }
  0xf6   : > { %v5453_v51 = vperm.slane %v1168_v42, %v4588_v16  ;;  %v1172_v40 = vperm.slane %v5323_v35, %v4588_v16  ;;  %v1315_v48 = vrot.slane %v5419_v0, 4  ;;  %v1302_v27 = vsel %vm398_vm0, %v1301_v59, %v5293_v5  ;;  %v5484_v59 = vpop.permute.xlu2 %3992  ;;  %v5492_v60 = vpop.permute.xlu0 %4012 }
  0xf7   : > { %v1280_v3 = vsel %vm398_vm0, %v5238_v20, %v7442_v52  ;;  %v1304_v56 = vsel %vm398_vm0, %v5370_v34, %v7443_v62  ;;  %v1213_v14 = vrot.slane %v5437_v53, 4  ;;  %4087 = vrot.lane.b32.xlu0 %v4086_v63, %s4475_s17  ;;  %v1190_v20 = vsel %vm398_vm0, %v1189_v54, %v5303_v57 }
  0xf8   : > { %v5457_v44 = vperm.slane %v1304_v56, %v4588_v16  ;;  %v1284_v34 = vperm.slane %v1278_v13, %v4588_v16  ;;  %v5471_v4 = vperm.slane %v1280_v3, %v4588_v16  ;;  %v1196_v17 = vperm.slane %v1190_v20, %v4588_v16 }
  0xf9   : > { %v1214_v55 = vsel %vm398_vm0, %v1213_v14, %v5453_v51  ;;  %v1204_v12 = vsel %vm398_vm0, %v5434_v38, %v1203_v9  ;;  %v1211_v57 = vrot.slane %v1172_v40, 4  ;;  %v1308_v36 = vperm.slane %v1302_v27, %v4588_v16 }
  0xfa   : > { %v1325_v35 = vrot.slane %v5457_v44, 4  ;;  %v1323_v41 = vrot.slane %v1284_v34, 4  ;;  %v1316_v5 = vsel %vm398_vm0, %v5442_v37, %v1315_v48  ;;  %v1441_v61 = vrot.slane %v4862_v46, 1 }
  0xfb   : > { %v4000_v32 = vunpack.i.h.bf16 %v5416_v22  ;;  %v1560_v6 = vrot.slane %v4917_v33, 4  ;;  %v1212_v21 = vsel %vm398_vm0, %v1196_v17, %v1211_v57  ;;  %v3999_v42 = vunpack.i.l.bf16 %v5416_v22  ;;  %v5524_v27 = vpop.permute.xlu1 %3987 }
  0xfc   : > { %v1326_v2 = vsel %vm398_vm0, %v1325_v35, %v5471_v4  ;;  %v1324_v11 = vsel %vm398_vm0, %v1308_v36, %v1323_v41  ;;  %v4091_v46 = vpack.i.bf16 %v1316_v5, %v1204_v12  ;;  %v3985_v29 = vunpack.i.h.bf16 %v5367_v39  ;;  %v4425_v41 = vld [vmem:[%s4556_s10 + $0x58] sm:$0x3] }
  0xfd   : > { %v4116_v58 = vpack.i.bf16 %v1326_v2, %v1214_v55  ;;  %v4111_v54 = vpack.i.bf16 %v1324_v11, %v1212_v21  ;;  %v3309_v28 = vrot.slane %v4000_v32, 4  ;;  %v3984_v33 = vunpack.i.l.bf16 %v5367_v39 }
  0xfe   : > { %v1209_v25 = vrot.slane %v1196_v17, 4  ;;  %v1321_v13 = vrot.slane %v1308_v36, 4  ;;  %v7444_v63 = vrot.slane %v4612_v26, 1  ;;  %v3197_v52 = vrot.slane %v3999_v42, 4  ;;  %v5527_v35 = vpop.permute.xlu2 %4007 }
  0xff   : > { %4117 = vrot.lane.b32.xlu2 %v4116_v58, %s4476_s18  ;;  %4112 = vrot.lane.b32.xlu1 %v4111_v54, %s4473_s15  ;;  %v5505_v3 = vsel %vm398_vm0, %v3985_v29, %v3309_v28  ;;  %v1561_v62 = vsel %vm398_vm0, %v1560_v6, %v4907_v18  ;;  %v1421_v18 = vrot.slane %v4928_v24, 1  ;;  %v3995_v55 = vunpack.i.h.bf16 %v5484_v59 }
 0x100   : > { %v5501_v9 = vsel %vm1407_vm2, %v7444_v63, %v1441_v61  ;;  %4092 = vrot.lane.b32.xlu0 %v4091_v46, %s4471_s13  ;;  %v5510_v39 = vsel %vm398_vm0, %v3984_v33, %v3197_v52  ;;  %v1744_v56 = vsel %vm678_vm3, %v1561_v62, %v1690_v10  ;;  %v1210_v48 = vsel %vm398_vm0, %v1209_v25, %v1172_v40  ;;  %v4028_v10 = vpop.permute.xlu0 %4027 }
 0x101   : > { %7445 = vst [vmem:[#allocation42_spill] sm:$0xff] %v5501_v9  ;;  %v5515_v26 = vpack.i.bf16 %v5501_v9, %v4872_v49  ;;  %v5519_v14 = vsel %vm680_vm4, %v1744_v56, %v5402_v47  ;;  %v1322_v20 = vsel %vm398_vm0, %v1321_v13, %v1284_v34  ;;  %v7447_v47 = vrot.slane %v4570_v8, 1  ;;  %v4424_v34 = vld [vmem:[%s4556_s10 + $0x28] sm:$0x3]  ;;  %v7481_v49 = vld [vmem:[#allocation40_spill] sm:$0xff] }
 0x102   : > { %7446 = vst [vmem:[#allocation43_spill] sm:$0xff] %v5519_v14  ;;  %v4106_v17 = vpack.i.bf16 %v1322_v20, %v1210_v48  ;;  %v1416_v24 = vrot.slane %v4424_v34, 1  ;;  %v3195_v12 = vrot.slane %v3984_v33, 4  ;;  %v1215_v57 = vrot.slane %v5453_v51, 4 }
 0x103   : > { %v5536_v40 = vsel %vm1407_vm2, %v7447_v47, %v1421_v18  ;;  %v3994_v36 = vunpack.i.l.bf16 %v5484_v59  ;;  %v1426_v5 = vrot.slane %v4425_v41, 1  ;;  %v1327_v2 = vrot.slane %v5471_v4, 4  ;;  %v7453_v47 = vld [vmem:[#allocation13_spill] sm:$0xff] }
 0x104   : > { %v7448_v8 = vrot.slane %v4596_v19, 1  ;;  %v4030_v6 = vunpack.i.h.bf16 %v4028_v10  ;;  %v5549_v58 = vpack.i.bf16 %v5536_v40, %v4840_v23  ;;  %v7449_v11 = vrot.slane %v4586_v15, 1 }
 0x105   : > { %v1431_v59 = vrot.slane %v4934_v45, 1  ;;  %v1216_v4 = vsel %vm398_vm0, %v5437_v53, %v1215_v57  ;;  %v1328_v19 = vsel %vm398_vm0, %v5457_v44, %v1327_v2  ;;  %v2853_v46 = vrot.slane %v3994_v36, 4  ;;  %v4003_v53 = vpop.permute.xlu1 %4002 }
 0x106   : > { %v1417_v61 = vsel %vm1407_vm2, %v7448_v8, %v1416_v24  ;;  %v1427_v51 = vsel %vm1407_vm2, %v7449_v11, %v1426_v5  ;;  %v3196_v15 = vsel %vm398_vm0, %v3195_v12, %v3999_v42  ;;  %v4121_v13 = vpack.i.bf16 %v1328_v19, %v1216_v4  ;;  %v4023_v42 = vpop.permute.xlu2 %4022 }
 0x107   : > { %4137 = vrot.lane.b32.xlu2 %v5515_v26, %s4477_s19  ;;  %4132 = vrot.lane.b32.xlu1 %v4991_v50, %s4469_s11  ;;  %v2965_v50 = vrot.slane %v3995_v55, 4  ;;  %v1590_v21 = vrot.slane %v1417_v61, 4  ;;  %v5560_v54 = vpack.i.bf16 %v1417_v61, %v4835_v1  ;;  %v1588_v28 = vrot.slane %v1427_v51, 4 }
 0x108   : > { %4107 = vrot.lane.b32.xlu0 %v4106_v17, %s4474_s16  ;;  %v7451_v44 = vrot.slane %v4621_v31, 1  ;;  %v2967_v52 = vrot.slane %v4030_v6, 4  ;;  %v4029_v62 = vunpack.i.l.bf16 %v4028_v10  ;;  %v3307_v56 = vrot.slane %v3985_v29, 4  ;;  %v4043_v10 = vpop.permute.xlu0 %4042 }
 0x109   : > { %v5563_v33 = vsel %vm398_vm0, %v1427_v51, %v1590_v21  ;;  %v5567_v25 = vsel %vm398_vm0, %v1588_v28, %v1417_v61  ;;  %v5570_v45 = vsel %vm398_vm0, %v2965_v50, %v4030_v6  ;;  %v4009_v48 = vunpack.i.l.bf16 %v5527_v35  ;;  %v7454_v50 = vld [vmem:[#allocation12_spill] sm:$0xff] }
 0x10a   : > { %7450 = vst [vmem:[#allocation44_spill] sm:$0xff] %v5567_v25  ;;  %v5577_v63 = vsel %vm1407_vm2, %v7451_v44, %v1431_v59  ;;  %v5584_v20 = vsel %vm398_vm0, %v3995_v55, %v2967_v52  ;;  %v5587_v18 = vsel %vm398_vm0, %v2853_v46, %v4029_v62  ;;  %v2855_v31 = vrot.slane %v4029_v62, 4 }
 0x10b   : > { %7452 = vst [vmem:[#allocation45_spill] sm:$0xff] %v5577_v63  ;;  %v5590_v17 = vperm.slane %v3196_v15, %v4567_v7  ;;  %v5594_v29 = vpack.i.bf16 %v5577_v63, %v7453_v47  ;;  %v4010_v34 = vunpack.i.h.bf16 %v5527_v35  ;;  %v4005_v24 = vunpack.i.h.bf16 %v4003_v53 }
 0x10c   : > { %v5598_v12 = vsel %vm398_vm0, %v3994_v36, %v2855_v31  ;;  %v4004_v55 = vunpack.i.l.bf16 %v4003_v53  ;;  %v4025_v57 = vunpack.i.h.bf16 %v4023_v42  ;;  %v4024_v41 = vunpack.i.l.bf16 %v4023_v42 }
 0x10d   : > { %v3308_v5 = vsel %vm398_vm0, %v3307_v56, %v4000_v32  ;;  %v3990_v2 = vunpack.i.h.bf16 %v5524_v27  ;;  %v4126_v8 = vpack.i.bf16 %v1427_v51, %v7454_v50  ;;  %v3219_v61 = vrot.slane %v4009_v48, 4  ;;  %v7482_v50 = vld [vmem:[#allocation39_spill] sm:$0xff] }
 0x10e   : > { %v3333_v6 = vrot.slane %v4025_v57, 4  ;;  %v3221_v21 = vrot.slane %v4024_v41, 4  ;;  %v4045_v35 = vunpack.i.h.bf16 %v4043_v10  ;;  %v3989_v11 = vunpack.i.l.bf16 %v5524_v27  ;;  %v4018_v27 = vpop.permute.xlu1 %4017 }
 0x10f   : > { %4152 = vrot.lane.b32.xlu2 %v5549_v58, %s4477_s19  ;;  %4147 = vrot.lane.b32.xlu1 %v5560_v54, %s4477_s19  ;;  %v3331_v59 = vrot.slane %v4010_v34, 4  ;;  %v3295_v36 = vrot.slane %v4005_v24, 4  ;;  %v3183_v4 = vrot.slane %v4004_v55, 4  ;;  %v3231_v51 = vrot.slane %v5590_v17, 4 }
 0x110   : > { %4122 = vrot.lane.b32.xlu0 %v4121_v13, %s4475_s17  ;;  %v5609_v22 = vsel %vm398_vm0, %v4009_v48, %v3221_v21  ;;  %v5612_v32 = vsel %vm398_vm0, %v4010_v34, %v3333_v6  ;;  %v3297_v19 = vrot.slane %v4045_v35, 4  ;;  %v5616_v28 = vperm.slane %v3308_v5, %v4567_v7  ;;  %v7455_v5 = vld [vmem:[#allocation27_spill] sm:$0xff] }
 0x111   : > { %v3319_v46 = vrot.slane %v3990_v2, 4  ;;  %v3220_v15 = vsel %vm398_vm0, %v3219_v61, %v4024_v41  ;;  %v4044_v13 = vunpack.i.l.bf16 %v4043_v10  ;;  %v3207_v44 = vrot.slane %v3989_v11, 4 }
 0x112   : > { %v5623_v53 = vsel %vm398_vm0, %v4005_v24, %v3297_v19  ;;  %v3332_v52 = vsel %vm398_vm0, %v3331_v59, %v4025_v57  ;;  %v3296_v62 = vsel %vm398_vm0, %v3295_v36, %v4045_v35  ;;  %v4020_v48 = vunpack.i.h.bf16 %v4018_v27 }
 0x113   : > { %v3184_v56 = vsel %vm398_vm0, %v3183_v4, %v4044_v13  ;;  %v3185_v42 = vrot.slane %v4044_v13, 4  ;;  %v5629_v31 = vperm.slane %v3220_v15, %v4567_v7  ;;  %v1446_v61 = vrot.slane %v7455_v5, 1  ;;  %v4426_v13 = vld [vmem:[%s4556_s10 + $0x10] sm:$0x3]  ;;  %v7462_v5 = vld [vmem:[#allocation9_spill] sm:$0xff]  ;;  %s355_s10 = scalar_lea.vmem %s7283_s3, %s7131_s28 }
 0x114   : > { %v3190_v34 = vperm.slane %v3184_v56, %v4567_v7  ;;  %v3321_v24 = vrot.slane %v4020_v48, 4  ;;  %v3343_v57 = vrot.slane %v5616_v28, 4  ;;  %v5638_v6 = vperm.slane %v3332_v52, %v4567_v7  ;;  %v7458_v56 = vld [vmem:[#allocation2_spill] sm:$0xff] }
 0x115   : > { %v5633_v41 = vsel %vm398_vm0, %v4004_v55, %v3185_v42  ;;  %v3302_v21 = vperm.slane %v3296_v62, %v4567_v7  ;;  %v1576_v36 = vrot.slane %v5536_v40, 4  ;;  %v3255_v4 = vrot.slane %v5629_v31, 4 }
 0x116   : > { %v5648_v59 = vsel %vm398_vm0, %v3990_v2, %v3321_v24  ;;  %v3232_v19 = vsel %vm398_vm0, %v3231_v51, %v3190_v34  ;;  %v3367_v52 = vrot.slane %v5638_v6, 4  ;;  %v7459_v42 = vrot.slane %v7458_v56, 1 }
 0x117   : > { %4167 = vrot.lane.b32.xlu2 %v5594_v29, %s4477_s19  ;;  %4162 = vrot.lane.b32.xlu1 %v5515_v26, %s4469_s11  ;;  %v4019_v26 = vunpack.i.l.bf16 %v4018_v27  ;;  %v3344_v62 = vsel %vm398_vm0, %v3343_v57, %v3302_v21  ;;  %v5669_v24 = vperm.slane %v3232_v19, %v4588_v16  ;;  %v5887_v1 = vperm.slane %v5587_v18, %v4567_v7 }
 0x118   : > { %4127 = vrot.lane.b32.xlu0 %v4126_v8, %s4477_s19  ;;  %v5908_v18 = vperm.slane %v5633_v41, %v4567_v7 }
 0x119   : > { %v3209_v10 = vrot.slane %v4019_v26, 4  ;;  %v3208_v35 = vsel %vm398_vm0, %v3207_v44, %v4019_v26  ;;  %v1411_v44 = vrot.slane %v4426_v13, 1  ;;  %7461 = vst [vmem:[#allocation27_spill] sm:$0xff] %v5669_v24 }
 0x11a   : > { %v3214_v27 = vperm.slane %v3208_v35, %v4567_v7  ;;  %v7463_v35 = vld [vmem:[#allocation16_spill] sm:$0xff] }
 0x11b   : > { %v5645_v55 = vsel %vm398_vm0, %v3989_v11, %v3209_v10  ;;  %v7456_v11 = vld [vmem:[#allocation3_spill] sm:$0xff] }
 0x11c   : > { %v7457_v15 = vrot.slane %v7456_v11, 1  ;;  %v7464_v11 = vld [vmem:[#allocation4_spill] sm:$0xff] }
 0x11e   : > { %v1447_v2 = vsel %vm1407_vm2, %v7457_v15, %v1446_v61  ;;  %v7465_v15 = vrot.slane %v7464_v11, 1  ;;  %v7471_v11 = vld [vmem:[#allocation14_spill] sm:$0xff] }
 0x11f   : > { %4182 = vrot.lane.b32.xlu2 %v5549_v58, %s4469_s11  ;;  %4177 = vrot.lane.b32.xlu1 %v5560_v54, %s4469_s11  ;;  %v3320_v58 = vsel %vm398_vm0, %v3319_v46, %v4020_v48  ;;  %v1612_v51 = vrot.slane %v1447_v2, 4  ;;  %v1412_v54 = vsel %vm1407_vm2, %v7459_v42, %v1411_v44  ;;  %v4156_v57 = vpack.i.bf16 %v1447_v2, %v7463_v35  ;;  %v7479_v35 = vld [vmem:[#allocation35_spill] sm:$0xff] }
 0x120   : > { %4142 = vrot.lane.b32.xlu0 %v4126_v8, %s4469_s11  ;;  %v7460_v8 = vld [vmem:[#allocation28_spill] sm:$0xff]  ;;  %v3326_v46 = vperm.slane %v3320_v58, %v4567_v7  ;;  %v5673_v48 = vsel %vm398_vm0, %v1576_v36, %v1412_v54  ;;  %v1578_v10 = vrot.slane %v1412_v54, 4  ;;  %v4191_v61 = vpack.i.bf16 %v1412_v54, %v7462_v5 }
 0x121   : > { %v1436_v26 = vrot.slane %v7460_v8, 1  ;;  %v3256_v44 = vsel %vm398_vm0, %v3255_v4, %v3214_v27  ;;  %v3281_v42 = vrot.slane %v5669_v24, 4  ;;  %v5695_v54 = vperm.slane %v3344_v62, %v4588_v16 }
 0x122   : > { %v5683_v19 = vsel %vm398_vm0, %v5536_v40, %v1578_v10  ;;  %v5691_v56 = vperm.slane %v3256_v44, %v4588_v16  ;;  %v3368_v4 = vsel %vm398_vm0, %v3367_v52, %v3326_v46  ;;  %v3233_v10 = vrot.slane %v3190_v34, 4 }
 0x123   : > { %v1437_v13 = vsel %vm1407_vm2, %v7465_v15, %v1436_v26  ;;  %7466 = vst [vmem:[#allocation3_spill] sm:$0xff] %v5683_v19  ;;  %v3393_v8 = vrot.slane %v5695_v54, 4  ;;  %v5709_v26 = vpop.permute.xlu2 %4037  ;;  %v3257_v52 = vrot.slane %v3214_v27, 4  ;;  %v3345_v44 = vrot.slane %v3302_v21, 4 }
 0x124   : > { %v5686_v58 = vsel %vm398_vm0, %v1612_v51, %v1437_v13  ;;  %v1614_v36 = vrot.slane %v1437_v13, 4  ;;  %7467 = vst [vmem:[#allocation2_spill] sm:$0xff] %v5691_v56  ;;  %v5706_v51 = vperm.slane %v3368_v4, %v4588_v16  ;;  %v4171_v15 = vpack.i.bf16 %v1437_v13, %v7471_v11 }
 0x125   : > { %7468 = vst [vmem:[#allocation28_spill] sm:$0xff] %v5695_v54  ;;  %v3258_v34 = vsel %vm398_vm0, %v5629_v31, %v3257_v52  ;;  %v3346_v27 = vsel %vm398_vm0, %v5616_v28, %v3345_v44  ;;  %v5735_v28 = vpop.permute.xlu1 %4032 }
 0x126   : > { %v5699_v40 = vsel %vm398_vm0, %v1447_v2, %v1614_v36  ;;  %7470 = vst [vmem:[#allocation46_spill] sm:$0xff] %v5706_v51  ;;  %v3394_v62 = vsel %vm398_vm0, %v5706_v51, %v3393_v8  ;;  %v3234_v36 = vsel %vm398_vm0, %v5590_v17, %v3233_v10  ;;  %v3266_v21 = vperm.slane %v3258_v34, %v4588_v16 }
 0x127   : > { %4197 = vrot.lane.b32.xlu2 %v5594_v29, %s4469_s11  ;;  %4192 = vrot.lane.b32.xlu1 %v4191_v61, %s4477_s19  ;;  %7469 = vst [vmem:[#allocation4_spill] sm:$0xff] %v5699_v40  ;;  %v3282_v29 = vsel %vm398_vm0, %v5691_v56, %v3281_v42  ;;  %v3369_v42 = vrot.slane %v3326_v46, 4  ;;  %v3242_v4 = vperm.slane %v3234_v36, %v4588_v16 }
 0x128   : > { %4157 = vrot.lane.b32.xlu0 %v4156_v57, %s4477_s19  ;;  %v4211_v2 = vpack.i.bf16 %v3394_v62, %v3282_v29  ;;  %v3283_v52 = vrot.slane %v3266_v21, 4 }
 0x129   : > { %v3285_v13 = vrot.slane %v3242_v4, 4  ;;  %v3370_v17 = vsel %vm398_vm0, %v5638_v6, %v3369_v42 }
 0x12a   : > { %v3378_v8 = vperm.slane %v3370_v17, %v4588_v16  ;;  %v3284_v6 = vsel %vm398_vm0, %v3283_v52, %v3242_v4  ;;  %v7474_v17 = vld [vmem:[#allocation31_spill] sm:$0xff] }
 0x12b   : > { %v5722_v29 = vpop.permute.xlu2 %4052  ;;  %v3286_v46 = vsel %vm398_vm0, %v3266_v21, %v3285_v13  ;;  %v7473_v13 = vld [vmem:[#allocation20_spill] sm:$0xff]  ;;  %v3899_v21 = vunpack.i.l.bf16 %v7474_v17 }
 0x12c   : > { %v3395_v44 = vrot.slane %v3378_v8, 4  ;;  %v4054_v23 = vunpack.i.l.bf16 %v5722_v29 }
 0x12d   : > { %v5740_v34 = vpop.permute.xlu1 %4047 }
 0x12e   : > { %v4049_v41 = vunpack.i.l.bf16 %v5740_v34 }
 0x12f   : > { %4212 = vrot.lane.b32.xlu2 %v4211_v2, %s4471_s13  ;;  %4207 = vrot.lane.b32.xlu1 %v4191_v61, %s4469_s11  ;;  %v3354_v61 = vperm.slane %v3346_v27, %v4588_v16  ;;  %v2611_v27 = vrot.slane %v7473_v13, 4 }
 0x130   : > { %4172 = vrot.lane.b32.xlu0 %v4171_v15, %s4477_s19  ;;  %s363_s19 = scalar_lea.vmem %s7285_s5, %s7131_s28 }
 0x131   : > { %v3397_v62 = vrot.slane %v3354_v61, 4  ;;  %v3396_v36 = vsel %vm398_vm0, %v3395_v44, %v3354_v61  ;;  %v859_v44 = vrot.slane %v5266_v43, 4  ;;  %v7480_v43 = vld [vmem:[#allocation36_spill] sm:$0xff] }
 0x132   : > { %v4216_v42 = vpack.i.bf16 %v3396_v36, %v3284_v6  ;;  %v7477_v6 = vld [vmem:[#allocation41_spill] sm:$0xff] }
 0x133   : > { %v3398_v31 = vsel %vm398_vm0, %v3378_v8, %v3397_v62  ;;  %v4068_v2 = vpop.permute.xlu2 %4067  ;;  %v7475_v8 = vld [vmem:[#allocation34_spill] sm:$0xff]  ;;  %v971_v36 = vrot.slane %v7477_v6, 4 }
 0x134   : > { %v4226_v10 = vpack.i.bf16 %v3398_v31, %v3286_v46  ;;  %v3900_v46 = vunpack.i.h.bf16 %v7474_v17  ;;  %v3905_v62 = vunpack.i.h.bf16 %v7475_v8  ;;  %v3904_v52 = vunpack.i.l.bf16 %v7475_v8 }
 0x135   : > { %v4070_v54 = vunpack.i.h.bf16 %v4068_v2  ;;  %v4069_v24 = vunpack.i.l.bf16 %v4068_v2  ;;  %v972_v19 = vsel %vm398_vm0, %v971_v36, %v7481_v49  ;;  %v1600_v36 = vrot.slane %v5501_v9, 4 }
 0x137   : > { %4227 = vrot.lane.b32.xlu2 %v4226_v10, %s4470_s12 }
 0x138   : > { %4187 = vrot.lane.b32.xlu0 %v4156_v57, %s4469_s11 }
 0x140   : > { %4202 = vrot.lane.b32.xlu0 %v4171_v15, %s4469_s11  ;;  %v7476_v15 = vld [vmem:[#allocation37_spill] sm:$0xff] }
 0x141   : > { %v3895_v31 = vunpack.i.h.bf16 %v7476_v15  ;;  %v3894_v4 = vunpack.i.l.bf16 %v7476_v15 }
 0x143   : > { %v685_v8 = vsel %vm684_vm6, %v7479_v35, %v3894_v4  ;;  %v695_v6 = vsel %vm684_vm6, %v7480_v43, %v3895_v31  ;;  %v7483_v4 = vld [vmem:[#allocation19_spill] sm:$0xff] }
 0x144   : > { %v5742_v57 = vpop.permute.xlu2 %4082  ;;  %v687_v2 = vsel %vm686_vm7, %v685_v8, %v3899_v21  ;;  %v2499_v31 = vrot.slane %v7483_v4, 4  ;;  %v5865_v8 = vperm.slane %v5570_v45, %v4567_v7 }
 0x145   : > { %7472 = vst [vmem:[#allocation47_spill] sm:$0xff] %v5742_v57  ;;  %v689_v47 = vsel %vm688_vm8, %v687_v2, %v3904_v52  ;;  %v7487_v52 = vld [vmem:[#allocation26_spill] sm:$0xff]  ;;  %v5811_v2 = vperm.slane %v5505_v3, %v4567_v7 }
 0x146   : > { %v7495_v3 = vld [vmem:[#allocation30_spill] sm:$0xff] }
 0x148   : > { %4217 = vrot.lane.b32.xlu0 %v4216_v42, %s4472_s14  ;;  %v7478_v42 = vld [vmem:[#allocation38_spill] sm:$0xff] }
 0x149   : > { %v3910_v14 = vunpack.i.h.bf16 %v7478_v42  ;;  %v3909_v17 = vunpack.i.l.bf16 %v7478_v42  ;;  %v860_v42 = vsel %vm398_vm0, %v859_v44, %v7482_v50 }
 0x14b   : > { %v4063_v10 = vpop.permute.xlu1 %4062 }
 0x14c   : > { %v4065_v51 = vunpack.i.h.bf16 %v4063_v10  ;;  %v4064_v56 = vunpack.i.l.bf16 %v4063_v10  ;;  %v696_v10 = vsel %vm686_vm7, %v695_v6, %v3900_v46  ;;  %v7484_v46 = vld [vmem:[#allocation5_spill] sm:$0xff]  ;;  %v7497_v6 = vld [vmem:[#allocation32_spill] sm:$0xff] }
 0x14d   : > { %v5751_v61 = vpop.permute.xlu2 %4102  ;;  %v697_v35 = vsel %vm688_vm8, %v696_v10, %v3905_v62  ;;  %v7503_v10 = vunpack.i.l.bf16 %v5492_v60 }
 0x151   : > { %v4058_v15 = vpop.permute.xlu0 %4057 }
 0x152   : > { %v4060_v57 = vunpack.i.h.bf16 %v4058_v15  ;;  %v4059_v40 = vunpack.i.l.bf16 %v4058_v15 }
 0x154   : > { %v1050_v11 = vsel %vm678_vm3, %v972_v19, %v4060_v57  ;;  %v1043_v15 = vsel %vm678_vm3, %v860_v42, %v4059_v40  ;;  %v5779_v19 = vperm.slane %v7484_v46, %v4567_v7  ;;  %v7486_v57 = vld [vmem:[#allocation6_spill] sm:$0xff]  ;;  %v7494_v46 = vld [vmem:[#allocation29_spill] sm:$0xff] }
 0x155   : > { %v1051_v43 = vsel %vm680_vm4, %v1050_v11, %v4065_v51  ;;  %v1044_v49 = vsel %vm680_vm4, %v1043_v15, %v4064_v56  ;;  %v5785_v62 = vperm.slane %v7486_v57, %v4567_v7  ;;  %v2612_v51 = vsel %vm398_vm0, %v2611_v27, %v7487_v52  ;;  %v7492_v15 = vld [vmem:[#allocation21_spill] sm:$0xff] }
 0x156   : > { %v1045_v50 = vsel %vm682_vm5, %v1044_v49, %v4069_v24  ;;  %v1052_v21 = vsel %vm682_vm5, %v1051_v43, %v4070_v54  ;;  %v5790_v56 = vsel %vm690_vm9, %v689_v47, %v3909_v17  ;;  %v5793_v24 = vsel %vm690_vm9, %v697_v35, %v3910_v14  ;;  %v7490_v54 = vld [vmem:[#allocation25_spill] sm:$0xff] }
 0x157   : > { %7488 = vst [vmem:[#allocation34_spill] sm:$0xff] %v5790_v56  ;;  %v2500_v11 = vsel %vm398_vm0, %v2499_v31, %v7490_v54  ;;  %v5798_v44 = vperm.slane %v2612_v51, %v4567_v7  ;;  %v5816_v35 = vperm.slane %v7492_v15, %v4567_v7  ;;  %v7493_v31 = vld [vmem:[#allocation22_spill] sm:$0xff]  ;;  %v5824_v49 = vperm.slane %v5510_v39, %v4567_v7  ;;  %v7499_v42 = vld [vmem:[#allocation33_spill] sm:$0xff] }
 0x158   : > { %7489 = vst [vmem:[#allocation37_spill] sm:$0xff] %v5793_v24  ;;  %v5804_v27 = vperm.slane %v2500_v11, %v4567_v7  ;;  %v5820_v43 = vperm.slane %v7493_v31, %v4567_v7  ;;  %v5828_v57 = vperm.slane %v7494_v46, %v4567_v7  ;;  %v5832_v51 = vperm.slane %v7495_v3, %v4567_v7 }
 0x159   : > { %v5781_v40 = vpop.permute.xlu2 %4117  ;;  %v5842_v39 = vperm.slane %v7497_v6, %v4567_v7  ;;  %v5846_v46 = vperm.slane %v7499_v42, %v4567_v7  ;;  %v4040_v3 = vunpack.i.h.bf16 %v5709_v26  ;;  %v4039_v15 = vunpack.i.l.bf16 %v5709_v26 }
 0x15a   : > { %7485 = vst [vmem:[#allocation31_spill] sm:$0xff] %v5781_v40  ;;  %v5857_v24 = vperm.slane %v5563_v33, %v4567_v7  ;;  %v7502_v14 = vunpack.i.h.bf16 %v5492_v60  ;;  %v2865_v40 = vrot.slane %v7503_v10, 4  ;;  %v5869_v26 = vperm.slane %v5584_v20, %v4567_v7 }
 0x15b   : > { %7498 = vst [vmem:[#allocation38_spill] sm:$0xff] %v5842_v39  ;;  %v2989_v6 = vrot.slane %v4040_v3, 4  ;;  %v4055_v33 = vunpack.i.h.bf16 %v5722_v29  ;;  %v2877_v10 = vrot.slane %v4039_v15, 4  ;;  %v5904_v29 = vperm.slane %v5623_v53, %v4567_v7 }
 0x15c   : > { %7500 = vst [vmem:[#allocation35_spill] sm:$0xff] %v5846_v46  ;;  %v5915_v20 = vperm.slane %v5645_v55, %v4567_v7  ;;  %v2879_v53 = vrot.slane %v4054_v23, 4  ;;  %v5928_v55 = vperm.slane %v5648_v59, %v4567_v7 }
 0x15d   : > { %7501 = vst [vmem:[#allocation36_spill] sm:$0xff] %v5857_v24  ;;  %v2991_v45 = vrot.slane %v4055_v33, 4 }
 0x15f   : > { %v5836_v17 = vpop.permute.xlu1 %4077 }
 0x160   : > { %7496 = vst [vmem:[#allocation41_spill] sm:$0xff] %v5836_v17  ;;  %v2977_v17 = vrot.slane %v7502_v14, 4  ;;  %v5880_v14 = vsel %vm398_vm0, %v1600_v36, %v5577_v63  ;;  %v5900_v36 = vperm.slane %v5612_v32, %v4567_v7  ;;  %v2990_v32 = vsel %vm398_vm0, %v2989_v6, %v4055_v33 }
 0x161   : > { %v5838_v31 = vpop.permute.xlu2 %4137  ;;  %v4073_v11 = vpop.permute.xlu0 %4072  ;;  %7506 = vst [vmem:[#allocation5_spill] sm:$0xff] %v5880_v14  ;;  %v7344_v63 = vunpack.i.h.bf16 %v5735_v28  ;;  %v2880_v6 = vsel %vm398_vm0, %v4039_v15, %v2879_v53  ;;  %v7513_v53 = vunpack.i.h.bf16 %v5492_v60 }
 0x162   : > { %v4075_v42 = vunpack.i.h.bf16 %v4073_v11  ;;  %v4074_v56 = vunpack.i.l.bf16 %v4073_v11  ;;  %v5961_v24 = vperm.slane %v2880_v6, %v4567_v7 }
 0x164   : > { %v5873_v9 = vsel %vm684_vm6, %v1045_v50, %v4074_v56  ;;  %v5876_v11 = vsel %vm684_vm6, %v1052_v21, %v4075_v42  ;;  %v5891_v50 = vperm.slane %v5598_v12, %v4567_v7  ;;  %v5895_v21 = vperm.slane %v5609_v22, %v4567_v7 }
 0x165   : > { %7504 = vst [vmem:[#allocation40_spill] sm:$0xff] %v5873_v9  ;;  %v2878_v56 = vsel %vm398_vm0, %v2877_v10, %v4054_v23  ;;  %v2992_v22 = vsel %vm398_vm0, %v4040_v3, %v2991_v45  ;;  %v2867_v23 = vrot.slane %v4049_v41, 4  ;;  %v5953_v45 = vperm.slane %v5686_v58, %v4567_v7 }
 0x166   : > { %7505 = vst [vmem:[#allocation39_spill] sm:$0xff] %v5876_v11  ;;  %v4050_v11 = vunpack.i.h.bf16 %v5740_v34  ;;  %v5934_v34 = vperm.slane %v2990_v32, %v4567_v7  ;;  %v5937_v10 = vperm.slane %v2878_v56, %v4567_v7  ;;  %v5947_v32 = vperm.slane %v5673_v48, %v4567_v7 }
 0x167   : > { %v4098_v42 = vpop.permute.xlu1 %4097  ;;  %v2866_v56 = vsel %vm398_vm0, %v2865_v40, %v4049_v41  ;;  %7509 = vst [vmem:[#allocation22_spill] sm:$0xff] %v5953_v45  ;;  %v5956_v59 = vperm.slane %v2992_v22, %v4567_v7  ;;  %v2953_v40 = vrot.slane %v7344_v63, 4  ;;  %v7512_v22 = vunpack.i.l.bf16 %v5492_v60 }
 0x168   : > { %7508 = vst [vmem:[#allocation21_spill] sm:$0xff] %v5947_v32  ;;  %v2978_v3 = vsel %vm398_vm0, %v2977_v17, %v4050_v11  ;;  %v7510_v17 = vunpack.i.l.bf16 %v5735_v28  ;;  %v2872_v15 = vperm.slane %v2866_v56, %v4567_v7  ;;  %v7514_v63 = vrot.slane %v5434_v38, 4 }
 0x169   : > { %v5910_v12 = vpop.permute.xlu2 %4152  ;;  %v5921_v9 = vpop.permute.xlu0 %4087  ;;  %v2868_v41 = vsel %vm398_vm0, %v7512_v22, %v2867_v23  ;;  %v5978_v48 = vperm.slane %v2978_v3, %v4567_v7  ;;  %v4140_v60 = vunpack.i.h.bf16 %v5838_v31  ;;  %v4100_v3 = vunpack.i.h.bf16 %v4098_v42 }
 0x16a   : > { %7507 = vst [vmem:[#allocation6_spill] sm:$0xff] %v5921_v9  ;;  %v2979_v9 = vrot.slane %v4050_v11, 4  ;;  %v2841_v58 = vrot.slane %v7510_v17, 4  ;;  %v1202_v17 = vsel %vm398_vm0, %v7514_v63, %v5407_v30  ;;  %v4099_v47 = vunpack.i.l.bf16 %v4098_v42 }
 0x16b   : > { %v4104_v38 = vunpack.i.l.bf16 %v5751_v61  ;;  %v2915_v14 = vrot.slane %v2872_v15, 4  ;;  %v2284_v25 = vrot.slane %v4140_v60, 4 }
 0x16c   : > { %v2980_v6 = vsel %vm398_vm0, %v7513_v53, %v2979_v9  ;;  %v7516_v9 = vunpack.i.l.bf16 %v5838_v31 }
 0x16d   : > { %v5992_v32 = vperm.slane %v2980_v6, %v4567_v7  ;;  %v2916_v39 = vsel %vm398_vm0, %v5937_v10, %v2915_v14  ;;  %v7523_v14 = vunpack.i.l.bf16 %v5838_v31  ;;  %v7527_v31 = vrot.slane %v5887_v1, 4 }
 0x16e   : > { %v2172_v53 = vrot.slane %v7516_v9, 4 }
 0x171   : > { %v4168_v33 = vpop.permute.xlu2 %4167  ;;  %v5968_v11 = vpop.permute.xlu1 %4112 }
 0x172   : > { %7511 = vst [vmem:[#allocation29_spill] sm:$0xff] %v5968_v11  ;;  %v4093_v5 = vpop.permute.xlu0 %4092  ;;  %v7515_v11 = vrot.slane %v5442_v37, 4  ;;  %v4170_v45 = vunpack.i.h.bf16 %v4168_v33 }
 0x173   : > { %v4095_v22 = vunpack.i.h.bf16 %v4093_v5  ;;  %v4094_v56 = vunpack.i.l.bf16 %v4093_v5 }
 0x174   : > { %v1314_v23 = vsel %vm398_vm0, %v7515_v11, %v5419_v0  ;;  %v4105_v0 = vunpack.i.h.bf16 %v5751_v61  ;;  %v4169_v11 = vunpack.i.l.bf16 %v4168_v33  ;;  %v6006_v61 = vperm.slane %v2868_v41, %v4567_v7 }
 0x175   : > { %v1392_v30 = vsel %vm678_vm3, %v1314_v23, %v4095_v22  ;;  %v1385_v37 = vsel %vm678_vm3, %v1202_v17, %v4094_v56  ;;  %v3027_v22 = vrot.slane %v5978_v48, 4  ;;  %v2286_v42 = vrot.slane %v4170_v45, 4 }
 0x176   : > { %v1393_v63 = vsel %vm680_vm4, %v1392_v30, %v4100_v3  ;;  %v1386_v5 = vsel %vm680_vm4, %v1385_v37, %v4099_v47  ;;  %v2173_v23 = vsel %vm398_vm0, %v2172_v53, %v4169_v11  ;;  %v2174_v30 = vrot.slane %v4169_v11, 4 }
 0x177   : > { %v1387_v6 = vsel %vm682_vm5, %v1386_v5, %v4104_v38  ;;  %v1394_v17 = vsel %vm682_vm5, %v1393_v63, %v4105_v0  ;;  %v6015_v0 = vperm.slane %v2173_v23, %v4567_v7  ;;  %v2285_v9 = vsel %vm398_vm0, %v2284_v25, %v4170_v45 }
 0x178   : > { %v7521_v25 = vunpack.i.h.bf16 %v5910_v12 }
 0x179   : > { %v6011_v3 = vpop.permute.xlu2 %4182  ;;  %v4133_v33 = vpop.permute.xlu1 %4132  ;;  %7518 = vst [vmem:[#allocation32_spill] sm:$0xff] %v6015_v0 }
 0x17a   : > { %7517 = vst [vmem:[#allocation30_spill] sm:$0xff] %v6011_v3  ;;  %v4108_v37 = vpop.permute.xlu0 %4107  ;;  %v4135_v5 = vunpack.i.h.bf16 %v4133_v33  ;;  %v4134_v53 = vunpack.i.l.bf16 %v4133_v33  ;;  %v6033_v45 = vrot.slane %v7521_v25, 4  ;;  %v6051_v25 = vperm.slane %v2916_v39, %v4588_v16 }
 0x17b   : > { %v4110_v41 = vunpack.i.h.bf16 %v4108_v37  ;;  %v4109_v63 = vunpack.i.l.bf16 %v4108_v37 }
 0x17c   : > { %v2954_v47 = vsel %vm398_vm0, %v2953_v40, %v4135_v5  ;;  %v2842_v56 = vsel %vm398_vm0, %v2841_v58, %v4134_v53  ;;  %v7522_v40 = vunpack.i.l.bf16 %v5910_v12 }
 0x17d   : > { %v6023_v11 = vsel %vm684_vm6, %v1387_v6, %v4109_v63  ;;  %v6026_v33 = vsel %vm684_vm6, %v1394_v17, %v4110_v41  ;;  %v2960_v23 = vperm.slane %v2954_v47, %v4567_v7  ;;  %v2848_v38 = vperm.slane %v2842_v56, %v4567_v7 }
 0x17e   : > { %7519 = vst [vmem:[#allocation33_spill] sm:$0xff] %v6023_v11  ;;  %v6037_v58 = vrot.slane %v7522_v40, 4  ;;  %v2175_v6 = vsel %vm398_vm0, %v7523_v14, %v2174_v30  ;;  %v2287_v17 = vsel %vm398_vm0, %v4140_v60, %v2286_v42  ;;  %v7524_v47 = vrot.slane %v5865_v8, 4 }
 0x17f   : > { %7520 = vst [vmem:[#allocation48_spill] sm:$0xff] %v6026_v33  ;;  %v7525_v41 = vrot.slane %v5934_v34, 4  ;;  %v6054_v40 = vperm.slane %v2285_v9, %v4567_v7  ;;  %v2890_v30 = vsel %vm398_vm0, %v7527_v31, %v2848_v38  ;;  %v7528_v60 = vrot.slane %v5937_v10, 4 }
 0x180   : > { %v3002_v56 = vsel %vm398_vm0, %v7524_v47, %v2960_v23  ;;  %v6066_v47 = vperm.slane %v2175_v6, %v4567_v7  ;;  %v6072_v37 = vperm.slane %v2287_v17, %v4567_v7  ;;  %v6077_v10 = vperm.slane %v2890_v30, %v4588_v16 }
 0x181   : > { %v3026_v63 = vsel %vm398_vm0, %v7525_v41, %v5978_v48  ;;  %7526 = vst [vmem:[#allocation49_spill] sm:$0xff] %v6054_v40  ;;  %v2914_v42 = vsel %vm398_vm0, %v7528_v60, %v2872_v15  ;;  %v6063_v14 = vperm.slane %v3002_v56, %v4588_v16  ;;  %v3003_v48 = vrot.slane %v2960_v23, 4  ;;  %v6069_v9 = vpop.permute.xlu1 %4147  ;;  %v6083_v39 = vpop.permute.xlu2 %4197 }
 0x182   : > { %7530 = vst [vmem:[#allocation51_spill] sm:$0xff] %v6066_v47  ;;  %v2891_v41 = vrot.slane %v2848_v38, 4  ;;  %v6074_v31 = vpop.permute.xlu0 %4122  ;;  %v6080_v15 = vperm.slane %v3026_v63, %v4588_v16  ;;  %v2955_v56 = vrot.slane %v4135_v5, 4  ;;  %v2843_v60 = vrot.slane %v4134_v53, 4 }
 0x183   : > { %7529 = vst [vmem:[#allocation50_spill] sm:$0xff] %v6063_v14  ;;  %v3051_v6 = vrot.slane %v6063_v14, 4  ;;  %v6086_v38 = vperm.slane %v2914_v42, %v4588_v16  ;;  %v2941_v23 = vrot.slane %v6051_v25, 4  ;;  %v2939_v30 = vrot.slane %v6077_v10, 4 }
 0x184   : > { %7531 = vst [vmem:[#allocation52_spill] sm:$0xff] %v6072_v37  ;;  %v2892_v5 = vsel %vm398_vm0, %v5887_v1, %v2891_v41  ;;  %v3004_v53 = vsel %vm398_vm0, %v5865_v8, %v3003_v48  ;;  %v3028_v42 = vsel %vm398_vm0, %v5934_v34, %v3027_v22  ;;  %v7536_v14 = vrot.slane %v5824_v49, 4 }
 0x185   : > { %7532 = vst [vmem:[#allocation53_spill] sm:$0xff] %v6074_v31  ;;  %v3052_v63 = vsel %vm398_vm0, %v6080_v15, %v3051_v6  ;;  %v2940_v33 = vsel %vm398_vm0, %v6086_v38, %v2939_v30  ;;  %v6110_v6 = vperm.slane %v3004_v53, %v4588_v16  ;;  %v6113_v1 = vperm.slane %v3028_v42, %v4588_v16 }
 0x186   : > { %7533 = vst [vmem:[#allocation54_spill] sm:$0xff] %v6077_v10  ;;  %v3244_v17 = vsel %vm398_vm0, %v7536_v14, %v5908_v18  ;;  %v6107_v10 = vperm.slane %v2892_v5, %v4588_v16  ;;  %v4149_v8 = vunpack.i.l.bf16 %v6069_v9  ;;  %v4221_v34 = vpack.i.bf16 %v3052_v63, %v2940_v33 }
 0x187   : > { %7534 = vst [vmem:[#allocation55_spill] sm:$0xff] %v6080_v15  ;;  %v7537_v22 = vrot.slane %v5895_v21, 4  ;;  %v7538_v48 = vrot.slane %v5811_v2, 4  ;;  %v3053_v42 = vrot.slane %v6113_v1, 4  ;;  %v7539_v63 = vunpack.i.h.bf16 %v5735_v28 }
 0x188   : > { %7535 = vst [vmem:[#allocation56_spill] sm:$0xff] %v6086_v38  ;;  %v2942_v53 = vsel %vm398_vm0, %v2941_v23, %v6107_v10  ;;  %v7540_v15 = vunpack.i.l.bf16 %v5735_v28  ;;  %4222 = vrot.lane.b32.xlu1 %v4221_v34, %s4471_s13  ;;  %v7541_v30 = vrot.slane %v5900_v36, 4  ;;  %v7542_v5 = vunpack.i.h.bf16 %v6069_v9 }
 0x189   : > { %v3268_v14 = vsel %vm398_vm0, %v7537_v22, %v5915_v20  ;;  %v3356_v41 = vsel %vm398_vm0, %v7538_v48, %v5904_v29  ;;  %v2956_v22 = vsel %vm398_vm0, %v7539_v63, %v2955_v56  ;;  %v4163_v48 = vpop.permute.xlu1 %4162  ;;  %v3054_v31 = vsel %vm398_vm0, %v3053_v42, %v6110_v6 }
 0x18a   : > { %v2844_v38 = vsel %vm398_vm0, %v7540_v15, %v2843_v60  ;;  %v3380_v23 = vsel %vm398_vm0, %v7541_v30, %v5928_v55  ;;  %v2274_v11 = vrot.slane %v7542_v5, 4  ;;  %v4128_v33 = vpop.permute.xlu0 %4127  ;;  %v4165_v56 = vunpack.i.h.bf16 %v4163_v48 }
 0x18b   : > { %v6146_v28 = vperm.slane %v3268_v14, %v4588_v16  ;;  %v7543_v15 = vunpack.i.h.bf16 %v6083_v39  ;;  %v2162_v34 = vrot.slane %v4149_v8, 4  ;;  %v4130_v63 = vunpack.i.h.bf16 %v4128_v33 }
 0x18c   : > { %v4129_v13 = vunpack.i.l.bf16 %v4128_v33  ;;  %v6152_v30 = vperm.slane %v2956_v22, %v4567_v7  ;;  %v6155_v5 = vperm.slane %v2844_v38, %v4567_v7  ;;  %v4231_v46 = vpack.i.bf16 %v3054_v31, %v2942_v53 }
 0x18d   : > { %v1944_v60 = vrot.slane %v7543_v15, 4  ;;  %v7544_v14 = vunpack.i.h.bf16 %v6011_v3  ;;  %v4199_v15 = vunpack.i.l.bf16 %v6083_v39  ;;  %v4164_v54 = vunpack.i.l.bf16 %v4163_v48 }
 0x18e   : > { %v2275_v33 = vsel %vm398_vm0, %v4130_v63, %v2274_v11  ;;  %4232 = vrot.lane.b32.xlu0 %v4231_v46, %s4472_s14  ;;  %v1942_v52 = vrot.slane %v4165_v56, 4  ;;  %v6166_v22 = vperm.slane %v3244_v17, %v4588_v16  ;;  %v3287_v38 = vrot.slane %v6146_v28, 4 }
 0x18f   : > { %v6160_v4 = vrot.slane %v7544_v14, 4  ;;  %v7546_v31 = vunpack.i.l.bf16 %v6011_v3  ;;  %v2272_v42 = vrot.slane %v4130_v63, 4  ;;  %v2163_v14 = vsel %vm398_vm0, %v4129_v13, %v2162_v34 }
 0x190   : > { %v1945_v37 = vsel %vm398_vm0, %v4165_v56, %v1944_v60  ;;  %v2160_v46 = vrot.slane %v4129_v13, 4  ;;  %v2943_v47 = vrot.slane %v6107_v10, 4  ;;  %v1832_v17 = vrot.slane %v4199_v15, 4 }
 0x191   : > { %7545 = vst [vmem:[#allocation57_spill] sm:$0xff] %v6160_v4  ;;  %v6171_v53 = vrot.slane %v7546_v31, 4  ;;  %v6179_v40 = vperm.slane %v2275_v33, %v4567_v7  ;;  %v1830_v0 = vrot.slane %v4164_v54, 4  ;;  %v3362_v31 = vperm.slane %v3356_v41, %v4588_v16 }
 0x192   : > { %v6183_v63 = vperm.slane %v2163_v14, %v4567_v7  ;;  %v7548_v56 = vunpack.i.h.bf16 %v6083_v39  ;;  %v6189_v34 = vperm.slane %v1945_v37, %v4567_v7  ;;  %v4143_v13 = vpop.permute.xlu0 %4142  ;;  %v3288_v10 = vsel %vm398_vm0, %v3287_v38, %v6166_v22 }
 0x193   : > { %7547 = vst [vmem:[#allocation58_spill] sm:$0xff] %v6171_v53  ;;  %v4178_v53 = vpop.permute.xlu1 %4177  ;;  %v7550_v33 = vunpack.i.h.bf16 %v6069_v9  ;;  %v4145_v41 = vunpack.i.h.bf16 %v4143_v13  ;;  %v4144_v11 = vunpack.i.l.bf16 %v4143_v13  ;;  %v3386_v14 = vperm.slane %v3380_v23, %v4588_v16 }
 0x194   : > { %v1943_v60 = vsel %vm398_vm0, %v1942_v52, %v7548_v56  ;;  %7549 = vst [vmem:[#allocation59_spill] sm:$0xff] %v6189_v34  ;;  %v2161_v3 = vsel %vm398_vm0, %v2160_v46, %v4149_v8  ;;  %v2944_v52 = vsel %vm398_vm0, %v6051_v25, %v2943_v47  ;;  %v3055_v37 = vrot.slane %v6110_v6, 4 }
 0x195   : > { %v2273_v48 = vsel %vm398_vm0, %v2272_v42, %v7550_v33  ;;  %v4180_v39 = vunpack.i.h.bf16 %v4178_v53  ;;  %v6202_v56 = vperm.slane %v1943_v60, %v4567_v7  ;;  %v1831_v38 = vsel %vm398_vm0, %v1830_v0, %v4199_v15 }
 0x196   : > { %v3399_v9 = vrot.slane %v3386_v14, 4  ;;  %v4179_v4 = vunpack.i.l.bf16 %v4178_v53  ;;  %v6206_v42 = vperm.slane %v2273_v48, %v4567_v7  ;;  %v1818_v13 = vrot.slane %v4144_v11, 4 }
 0x197   : > { %v3056_v8 = vsel %vm398_vm0, %v6113_v1, %v3055_v37  ;;  %v1833_v25 = vsel %vm398_vm0, %v4164_v54, %v1832_v17  ;;  %v1930_v47 = vrot.slane %v4145_v41, 4  ;;  %v1932_v33 = vrot.slane %v4180_v39, 4 }
 0x198   : > { %v3400_v6 = vsel %vm398_vm0, %v3399_v9, %v3362_v31  ;;  %v4246_v46 = vpack.i.bf16 %v3056_v8, %v2944_v52  ;;  %v1819_v0 = vsel %vm398_vm0, %v1818_v13, %v4179_v4  ;;  %v1820_v15 = vrot.slane %v4179_v4, 4 }
 0x199   : > { %v4236_v60 = vpack.i.bf16 %v3400_v6, %v3288_v10  ;;  %v6215_v53 = vperm.slane %v2161_v3, %v4567_v7  ;;  %v3289_v54 = vrot.slane %v6166_v22, 4  ;;  %v1931_v17 = vsel %vm398_vm0, %v1930_v47, %v4180_v39 }
 0x19a   : > { %4247 = vrot.lane.b32.xlu0 %v4246_v46, %s4470_s12  ;;  %v6224_v10 = vpop.permute.xlu0 %4157  ;;  %v3401_v4 = vrot.slane %v3362_v31, 4  ;;  %v7551_v3 = vrot.slane %v5891_v50, 4  ;;  %v6232_v9 = vperm.slane %v1831_v38, %v4567_v7  ;;  %v6235_v22 = vperm.slane %v1833_v25, %v4567_v7 }
 0x19b   : > { %4237 = vrot.lane.b32.xlu1 %v4236_v60, %s4474_s16  ;;  %v6238_v13 = vperm.slane %v1819_v0, %v4567_v7  ;;  %v4193_v39 = vpop.permute.xlu1 %4192  ;;  %v1821_v8 = vsel %vm398_vm0, %v4144_v11, %v1820_v15  ;;  %v1933_v31 = vsel %vm398_vm0, %v4145_v41, %v1932_v33  ;;  %v3290_v47 = vsel %vm398_vm0, %v6146_v28, %v3289_v54 }
 0x19c   : > { %v2902_v52 = vsel %vm398_vm0, %v7551_v3, %v6155_v5  ;;  %7552 = vst [vmem:[#allocation60_spill] sm:$0xff] %v6235_v22  ;;  %v3402_v6 = vsel %vm398_vm0, %v3386_v14, %v3401_v4  ;;  %v6246_v46 = vperm.slane %v1931_v17, %v4567_v7  ;;  %v7553_v60 = vrot.slane %v5961_v24, 4 }
 0x19d   : > { %v4251_v38 = vpack.i.bf16 %v3402_v6, %v3290_v47  ;;  %v6249_v25 = vperm.slane %v2902_v52, %v4588_v16  ;;  %v7554_v28 = vrot.slane %v5869_v26, 4  ;;  %v7555_v14 = vrot.slane %v5956_v59, 4 }
 0x19e   : > { %v2926_v0 = vsel %vm398_vm0, %v7553_v60, %v6006_v61  ;;  %v4195_v15 = vunpack.i.h.bf16 %v4193_v39  ;;  %v6267_v54 = vperm.slane %v1933_v31, %v4567_v7  ;;  %v7556_v3 = vrot.slane %v5779_v19, 4 }
 0x19f   : > { %v6256_v11 = vperm.slane %v2926_v0, %v4588_v16  ;;  %v3014_v41 = vsel %vm398_vm0, %v7554_v28, %v6152_v30  ;;  %v3038_v33 = vsel %vm398_vm0, %v7555_v14, %v5992_v32  ;;  %v2196_v47 = vrot.slane %v6215_v53, 4 }
 0x1a0   : > { %v6270_v17 = vperm.slane %v3014_v41, %v4588_v16  ;;  %v6273_v4 = vperm.slane %v3038_v33, %v4588_v16  ;;  %v2548_v52 = vsel %vm398_vm0, %v7556_v3, %v5804_v27  ;;  %v4194_v0 = vunpack.i.l.bf16 %v4193_v39 }
 0x1a1   : > { %v2945_v60 = vrot.slane %v6256_v11, 4  ;;  %v4159_v28 = vunpack.i.l.bf16 %v6224_v10  ;;  %v6286_v14 = vperm.slane %v2548_v52, %v4588_v16  ;;  %v6289_v33 = vperm.slane %v1821_v8, %v4567_v7 }
 0x1a2   : > { %v3057_v41 = vrot.slane %v6273_v4, 4  ;;  %v2262_v1 = vrot.slane %v4195_v15, 4  ;;  %v2571_v39 = vrot.slane %v5832_v51, 4  ;;  %v2150_v37 = vrot.slane %v4194_v0, 4 }
 0x1a3   : > { %7557 = vst [vmem:[#allocation61_spill] sm:$0xff] %v6286_v14  ;;  %4252 = vrot.lane.b32.xlu1 %v4251_v38, %s4473_s15  ;;  %v2946_v3 = vsel %vm398_vm0, %v2945_v60, %v6249_v25  ;;  %v2261_v38 = vsel %vm398_vm0, %v6033_v45, %v4195_v15  ;;  %v4173_v60 = vpop.permute.xlu0 %4172  ;;  %v2184_v34 = vrot.slane %v4159_v28, 4  ;;  %v2149_v22 = vsel %vm398_vm0, %v6037_v58, %v4194_v0 }
 0x1a4   : > { %v3058_v52 = vsel %vm398_vm0, %v3057_v41, %v6270_v17  ;;  %v2572_v48 = vsel %vm398_vm0, %v2571_v39, %v5820_v43  ;;  %v2597_v23 = vrot.slane %v6286_v14, 4  ;;  %v7558_v41 = vunpack.i.h.bf16 %v5910_v12 }
 0x1a5   : > { %v4261_v6 = vpack.i.bf16 %v3058_v52, %v2946_v3  ;;  %v6313_v52 = vperm.slane %v2572_v48, %v4588_v16  ;;  %v7559_v45 = vrot.slane %v5785_v62, 4  ;;  %v2683_v58 = vrot.slane %v5828_v57, 4 }
 0x1a6   : > { %v2263_v3 = vsel %vm398_vm0, %v7558_v41, %v2262_v1  ;;  %v6321_v0 = vperm.slane %v2261_v38, %v4567_v7  ;;  %v7561_v31 = vrot.slane %v5908_v18, 4  ;;  %v7562_v1 = vunpack.i.l.bf16 %v5910_v12 }
 0x1a7   : > { %4262 = vrot.lane.b32.xlu0 %v4261_v6, %s4474_s16  ;;  %v2660_v15 = vsel %vm398_vm0, %v7559_v45, %v5798_v44  ;;  %v4174_v6 = vunpack.i.l.bf16 %v4173_v60  ;;  %v6334_v45 = vperm.slane %v2149_v22, %v4567_v7  ;;  %v2684_v38 = vsel %vm398_vm0, %v2683_v58, %v5816_v35 }
 0x1a8   : > { %v6324_v39 = vperm.slane %v2660_v15, %v4588_v16  ;;  %v3246_v48 = vsel %vm398_vm0, %v5824_v49, %v7561_v31  ;;  %v2151_v41 = vsel %vm398_vm0, %v7562_v1, %v2150_v37  ;;  %v4175_v8 = vunpack.i.h.bf16 %v4173_v60 }
 0x1a9   : > { %v6339_v15 = vperm.slane %v2263_v3, %v4567_v7  ;;  %v2598_v18 = vsel %vm398_vm0, %v6313_v52, %v2597_v23  ;;  %v6344_v14 = vperm.slane %v2684_v38, %v4588_v16  ;;  %v7564_v37 = vunpack.i.h.bf16 %v6224_v10 }
 0x1aa   : > { %7560 = vst [vmem:[#allocation62_spill] sm:$0xff] %v6324_v39  ;;  %v2709_v49 = vrot.slane %v6324_v39, 4  ;;  %v2185_v31 = vsel %vm398_vm0, %v2184_v34, %v4174_v6  ;;  %v7565_v60 = vrot.slane %v5915_v20, 4  ;;  %v6357_v23 = vperm.slane %v2151_v41, %v4567_v7  ;;  %v7575_v39 = vld [vmem:[#allocation30_spill] sm:$0xff] }
 0x1ab   : > { %7563 = vst [vmem:[#allocation63_spill] sm:$0xff] %v6344_v14  ;;  %v2296_v22 = vrot.slane %v7564_v37, 4  ;;  %v2186_v38 = vrot.slane %v4174_v6, 4  ;;  %v6363_v12 = vsel %vm398_vm0, %v2196_v47, %v6334_v45  ;;  %v6369_v58 = vperm.slane %v2185_v31, %v4567_v7  ;;  %v4208_v31 = vpop.permute.xlu1 %4207 }
 0x1ac   : > { %v3270_v3 = vsel %vm398_vm0, %v5895_v21, %v7565_v60  ;;  %v2710_v1 = vsel %vm398_vm0, %v6344_v14, %v2709_v49  ;;  %v2298_v60 = vrot.slane %v4175_v8, 4  ;;  %v6372_v41 = vperm.slane %v3246_v48, %v4588_v16 }
 0x1ad   : > { %v4241_v37 = vpack.i.bf16 %v2710_v1, %v2598_v18  ;;  %v2297_v20 = vsel %vm398_vm0, %v2296_v22, %v4175_v8  ;;  %v6376_v6 = vperm.slane %v3270_v3, %v4588_v16  ;;  %v7566_v47 = vrot.slane %v5904_v29, 4 }
 0x1ae   : > { %v7567_v49 = vrot.slane %v5928_v55, 4  ;;  %v7568_v22 = vrot.slane %v5804_v27, 4  ;;  %v2187_v1 = vsel %vm398_vm0, %v4159_v28, %v2186_v38  ;;  %v6392_v3 = vperm.slane %v2297_v20, %v4567_v7 }
 0x1af   : > { %4242 = vrot.lane.b32.xlu2 %v4241_v37, %s4471_s13  ;;  %v3358_v18 = vsel %vm398_vm0, %v5811_v2, %v7566_v47  ;;  %v3291_v55 = vrot.slane %v6376_v6, 4  ;;  %v2573_v27 = vrot.slane %v5820_v43, 4  ;;  %v2685_v20 = vrot.slane %v5816_v35, 4 }
 0x1b0   : > { %v3382_v8 = vsel %vm398_vm0, %v5900_v36, %v7567_v49  ;;  %v2550_v48 = vsel %vm398_vm0, %v5779_v19, %v7568_v22  ;;  %v6395_v29 = vperm.slane %v3358_v18, %v4588_v16  ;;  %v7569_v19 = vrot.slane %v5798_v44, 4 }
 0x1b1   : > { %v6398_v2 = vperm.slane %v3382_v8, %v4588_v16  ;;  %v2558_v36 = vperm.slane %v2550_v48, %v4588_v16  ;;  %v4210_v47 = vunpack.i.h.bf16 %v4208_v31  ;;  %v3292_v18 = vsel %vm398_vm0, %v3291_v55, %v6372_v41 }
 0x1b2   : > { %v2662_v28 = vsel %vm398_vm0, %v5785_v62, %v7569_v19  ;;  %v2574_v49 = vsel %vm398_vm0, %v5832_v51, %v2573_v27  ;;  %v4209_v43 = vunpack.i.l.bf16 %v4208_v31  ;;  %v2686_v22 = vsel %vm398_vm0, %v5828_v57, %v2685_v20  ;;  %v6419_v19 = vpop.permute.xlu0 %4187  ;;  %v7573_v31 = vld [vmem:[#allocation32_spill] sm:$0xff] }
 0x1b3   : > { %v3403_v38 = vrot.slane %v6398_v2, 4  ;;  %v2670_v37 = vperm.slane %v2662_v28, %v4588_v16  ;;  %v2601_v8 = vrot.slane %v2558_v36, 4  ;;  %v2582_v62 = vperm.slane %v2574_v49, %v4588_v16 }
 0x1b4   : > { %v6422_v35 = vperm.slane %v2187_v1, %v4567_v7  ;;  %v2694_v28 = vperm.slane %v2686_v22, %v4588_v16  ;;  %v1920_v51 = vrot.slane %v4210_v47, 4  ;;  %v7570_v27 = vrot.slane %v6206_v42, 4 }
 0x1b5   : > { %v3404_v44 = vsel %vm398_vm0, %v3403_v38, %v6395_v29  ;;  %v2713_v48 = vrot.slane %v2670_v37, 4  ;;  %v7571_v49 = vunpack.i.h.bf16 %v6224_v10  ;;  %v2602_v20 = vsel %vm398_vm0, %v2582_v62, %v2601_v8 }
 0x1b6   : > { %v4266_v55 = vpack.i.bf16 %v3404_v44, %v3292_v18  ;;  %v2309_v38 = vsel %vm398_vm0, %v7570_v27, %v6321_v0  ;;  %v2220_v1 = vrot.slane %v6369_v58, 4  ;;  %v7572_v44 = vld [vmem:[#allocation57_spill] sm:$0xff]  ;;  %v2599_v21 = vrot.slane %v2582_v62, 4 }
 0x1b7   : > { %v2299_v57 = vsel %vm398_vm0, %v7571_v49, %v2298_v60  ;;  %v2714_v18 = vsel %vm398_vm0, %v2694_v28, %v2713_v48  ;;  %v1919_v22 = vsel %vm398_vm0, %v7572_v44, %v4210_v47  ;;  %v7574_v34 = vrot.slane %v7573_v31, 4  ;;  %v7577_v49 = vld [vmem:[#allocation58_spill] sm:$0xff]  ;;  %v7578_v62 = vld [vmem:[#allocation49_spill] sm:$0xff] }
 0x1b8   : > { %4267 = vrot.lane.b32.xlu1 %v4266_v55, %s4476_s18  ;;  %v4276_v10 = vpack.i.bf16 %v2714_v18, %v2602_v20  ;;  %v7576_v60 = vunpack.i.h.bf16 %v7575_v39  ;;  %v1807_v14 = vsel %vm398_vm0, %v7577_v49, %v4209_v43  ;;  %v6450_v48 = vperm.slane %v2299_v57, %v4567_v7 }
 0x1b9   : > { %v2223_v27 = vsel %vm398_vm0, %v6369_v58, %v7574_v34  ;;  %v2332_v47 = vrot.slane %v6392_v3, 4  ;;  %v7579_v44 = vrot.slane %v7578_v62, 4  ;;  %v6459_v34 = vperm.slane %v1919_v22, %v4567_v7 }
 0x1ba   : > { %v1921_v8 = vsel %vm398_vm0, %v7576_v60, %v1920_v51  ;;  %4277 = vrot.lane.b32.xlu0 %v4276_v10, %s4470_s12  ;;  %v1808_v51 = vrot.slane %v4209_v43, 4  ;;  %v2600_v20 = vsel %vm398_vm0, %v2599_v21, %v2558_v36  ;;  %v2711_v18 = vrot.slane %v2694_v28, 4 }
 0x1bb   : > { %v2335_v58 = vsel %vm398_vm0, %v6392_v3, %v7579_v44  ;;  %v6463_v60 = vperm.slane %v1921_v8, %v4567_v7  ;;  %v6466_v57 = vperm.slane %v1807_v14, %v4567_v7  ;;  %v2947_v49 = vrot.slane %v6249_v25, 4  ;;  %v4203_v8 = vpop.permute.xlu0 %4202 }
 0x1bc   : > { %v3059_v55 = vrot.slane %v6270_v17, 4  ;;  %v2712_v3 = vsel %vm398_vm0, %v2711_v18, %v2670_v37  ;;  %v4190_v10 = vunpack.i.h.bf16 %v6419_v19  ;;  %v7580_v22 = vrot.slane %v6334_v45, 4 }
 0x1bd   : > { %v6477_v36 = vperm.slane %v2223_v27, %v4588_v16  ;;  %v4256_v43 = vpack.i.bf16 %v2712_v3, %v2600_v20  ;;  %v4189_v14 = vunpack.i.l.bf16 %v6419_v19  ;;  %v2948_v25 = vsel %vm398_vm0, %v6256_v11, %v2947_v49 }
 0x1be   : > { %v2199_v21 = vsel %vm398_vm0, %v6215_v53, %v7580_v22  ;;  %v3060_v17 = vsel %vm398_vm0, %v6273_v4, %v3059_v55  ;;  %v7581_v53 = vrot.slane %v6321_v0, 4  ;;  %v6497_v11 = vperm.slane %v2335_v58, %v4588_v16 }
 0x1bf   : > { %v4281_v37 = vpack.i.bf16 %v3060_v17, %v2948_v25  ;;  %v6485_v28 = vperm.slane %v2199_v21, %v4588_v16  ;;  %v2248_v45 = vrot.slane %v6477_v36, 4  ;;  %4257 = vrot.lane.b32.xlu2 %v4256_v43, %s4472_s14  ;;  %v6501_v4 = vperm.slane %v6363_v12, %v4588_v16  ;;  %v7587_v43 = vld [vmem:[#allocation25_spill] sm:$0xff]  ;;  %v7589_v17 = vld [vmem:[#allocation19_spill] sm:$0xff] }
 0x1c0   : > { %v2311_v27 = vsel %vm398_vm0, %v6206_v42, %v7581_v53  ;;  %v2221_v55 = vsel %vm398_vm0, %v2220_v1, %v7573_v31  ;;  %v6512_v44 = vperm.slane %v2309_v38, %v4588_v16  ;;  %v2333_v58 = vsel %vm398_vm0, %v2332_v47, %v7578_v62 }
 0x1c1   : > { %v6494_v19 = vperm.slane %v2311_v27, %v4588_v16  ;;  %7582 = vst [vmem:[#allocation57_spill] sm:$0xff] %v6501_v4  ;;  %4282 = vrot.lane.b32.xlu1 %v4281_v37, %s4473_s15  ;;  %v2249_v42 = vsel %vm398_vm0, %v2248_v45, %v6485_v28  ;;  %v6509_v0 = vperm.slane %v2221_v55, %v4588_v16  ;;  %v2360_v12 = vrot.slane %v6497_v11, 4 }
 0x1c2   : > { %7584 = vst [vmem:[#allocation30_spill] sm:$0xff] %v6512_v44  ;;  %v2246_v20 = vrot.slane %v6501_v4, 4  ;;  %v6519_v31 = vperm.slane %v2333_v58, %v4588_v16  ;;  %v4205_v1 = vunpack.i.h.bf16 %v4203_v8  ;;  %v7586_v18 = vunpack.i.l.bf16 %v7575_v39 }
 0x1c3   : > { %7583 = vst [vmem:[#allocation32_spill] sm:$0xff] %v6509_v0  ;;  %v1954_v3 = vrot.slane %v4190_v10, 4  ;;  %v2358_v22 = vrot.slane %v6512_v44, 4  ;;  %v4204_v38 = vunpack.i.l.bf16 %v4203_v8  ;;  %v1842_v21 = vrot.slane %v4189_v14, 4 }
 0x1c4   : > { %7585 = vst [vmem:[#allocation58_spill] sm:$0xff] %v6519_v31  ;;  %v1809_v49 = vsel %vm398_vm0, %v7586_v18, %v1808_v51  ;;  %v2361_v47 = vsel %vm398_vm0, %v2360_v12, %v6494_v19  ;;  %v2247_v62 = vsel %vm398_vm0, %v6509_v0, %v2246_v20  ;;  %v7588_v25 = vrot.slane %v7587_v43, 4 }
 0x1c5   : > { %v4291_v45 = vpack.i.bf16 %v2361_v47, %v2249_v42  ;;  %v2359_v39 = vsel %vm398_vm0, %v6519_v31, %v2358_v22  ;;  %v1956_v51 = vrot.slane %v4205_v1, 4  ;;  %v1844_v53 = vrot.slane %v4204_v38, 4 }
 0x1c6   : > { %v2502_v37 = vsel %vm398_vm0, %v7589_v17, %v7588_v25  ;;  %v4271_v55 = vpack.i.bf16 %v2359_v39, %v2247_v62  ;;  %v1843_v58 = vsel %vm398_vm0, %v1842_v21, %v4204_v38  ;;  %v6539_v12 = vperm.slane %v1809_v49, %v4567_v7  ;;  %v7592_v21 = vld [vmem:[#allocation7_spill] sm:$0xff]  ;;  %v7593_v17 = vld [vmem:[#allocation24_spill] sm:$0xff] }
 0x1c7   : > { %v7590_v20 = vrot.slane %v6238_v13, 4  ;;  %4292 = vrot.lane.b32.xlu0 %v4291_v45, %s4472_s14  ;;  %v1955_v22 = vsel %vm398_vm0, %v1954_v3, %v4205_v1  ;;  %v7591_v62 = vrot.slane %v6246_v46, 4  ;;  %v6555_v49 = vperm.slane %v2502_v37, %v4567_v7  ;;  %v7594_v37 = vld [vmem:[#allocation35_spill] sm:$0xff] }
 0x1c8   : > { %4272 = vrot.lane.b32.xlu2 %v4271_v55, %s4471_s13  ;;  %v6559_v43 = vperm.slane %v7592_v21, %v4567_v7  ;;  %v1845_v25 = vsel %vm398_vm0, %v4189_v14, %v1844_v53  ;;  %v1849_v1 = vperm.slane %v1843_v58, %v4567_v7  ;;  %v1957_v3 = vsel %vm398_vm0, %v4190_v10, %v1956_v51  ;;  %v7597_v21 = vld [vmem:[#allocation20_spill] sm:$0xff]  ;;  %v7599_v53 = vld [vmem:[#allocation23_spill] sm:$0xff] }
 0x1c9   : > { %v1855_v42 = vsel %vm398_vm0, %v7590_v20, %v6466_v57  ;;  %v1967_v38 = vsel %vm398_vm0, %v7591_v62, %v6459_v34  ;;  %v6566_v45 = vperm.slane %v7593_v17, %v4567_v7  ;;  %v1961_v39 = vperm.slane %v1955_v22, %v4567_v7  ;;  %v7595_v62 = vld [vmem:[#allocation26_spill] sm:$0xff]  ;;  %v7598_v10 = vld [vmem:[#allocation8_spill] sm:$0xff] }
 0x1ca   : > { %v2559_v55 = vrot.slane %v6559_v43, 4  ;;  %v2583_v20 = vrot.slane %v7594_v37, 4  ;;  %v7596_v47 = vrot.slane %v7595_v62, 4  ;;  %v6580_v51 = vperm.slane %v7598_v10, %v4567_v7  ;;  %v7600_v22 = vld [vmem:[#allocation38_spill] sm:$0xff] }
 0x1cb   : > { %v6584_v58 = vperm.slane %v7599_v53, %v4567_v7  ;;  %v2695_v17 = vrot.slane %v7600_v22, 4  ;;  %v1878_v4 = vrot.slane %v1849_v1, 4  ;;  %v2250_v0 = vrot.slane %v6485_v28, 4 }
 0x1cc   : > { %v2614_v27 = vsel %vm398_vm0, %v7597_v21, %v7596_v47  ;;  %v2560_v8 = vsel %vm398_vm0, %v2559_v55, %v6555_v49  ;;  %v2584_v62 = vsel %vm398_vm0, %v2583_v20, %v6566_v45  ;;  %v3293_v47 = vrot.slane %v6372_v41, 4 }
 0x1cd   : > { %v6576_v14 = vperm.slane %v2614_v27, %v4567_v7  ;;  %v3405_v27 = vrot.slane %v6395_v29, 4  ;;  %v6594_v21 = vperm.slane %v2560_v8, %v4588_v16  ;;  %v6597_v10 = vperm.slane %v2584_v62, %v4588_v16 }
 0x1ce   : > { %v2671_v53 = vrot.slane %v6580_v51, 4  ;;  %v2696_v18 = vsel %vm398_vm0, %v2695_v17, %v6584_v58  ;;  %v3294_v41 = vsel %vm398_vm0, %v6376_v6, %v3293_v47  ;;  %v6610_v8 = vperm.slane %v1957_v3, %v4567_v7 }
 0x1cf   : > { %v6603_v55 = vperm.slane %v2696_v18, %v4588_v16  ;;  %v3406_v29 = vsel %vm398_vm0, %v6398_v2, %v3405_v27  ;;  %v2603_v20 = vrot.slane %v6597_v10, 4  ;;  %v1990_v17 = vrot.slane %v1961_v39, 4 }
 0x1d0   : > { %v2672_v62 = vsel %vm398_vm0, %v2671_v53, %v6576_v14  ;;  %v4286_v44 = vpack.i.bf16 %v3406_v29, %v3294_v41  ;;  %v6619_v6 = vperm.slane %v1845_v25, %v4567_v7  ;;  %v2362_v3 = vrot.slane %v6494_v19, 4 }
 0x1d1   : > { %v2678_v31 = vperm.slane %v2672_v62, %v4588_v16  ;;  %v2715_v18 = vrot.slane %v6603_v55, 4  ;;  %v2604_v2 = vsel %vm398_vm0, %v2603_v20, %v6594_v21  ;;  %v6626_v47 = vperm.slane %v1855_v42, %v4588_v16 }
 0x1d2   : > { %4287 = vrot.lane.b32.xlu2 %v4286_v44, %s4475_s17  ;;  %v7601_v27 = vrot.slane %v6232_v9, 4  ;;  %v1879_v28 = vsel %vm398_vm0, %v1878_v4, %v6232_v9  ;;  %v6635_v25 = vperm.slane %v1967_v38, %v4588_v16  ;;  %v7602_v29 = vrot.slane %v6202_v56, 4 }
 0x1d3   : > { %v2716_v41 = vsel %vm398_vm0, %v2715_v18, %v2678_v31  ;;  %v6641_v42 = vperm.slane %v1879_v28, %v4588_v16  ;;  %v1904_v20 = vrot.slane %v6626_v47, 4  ;;  %v2363_v62 = vsel %vm398_vm0, %v6497_v11, %v2362_v3 }
 0x1d4   : > { %v1881_v53 = vsel %vm398_vm0, %v1849_v1, %v7601_v27  ;;  %v1993_v44 = vsel %vm398_vm0, %v1961_v39, %v7602_v29  ;;  %v4296_v19 = vpack.i.bf16 %v2716_v41, %v2604_v2  ;;  %v2251_v1 = vsel %vm398_vm0, %v6477_v36, %v2250_v0 }
 0x1d5   : > { %v1991_v9 = vsel %vm398_vm0, %v1990_v17, %v6202_v56  ;;  %v7603_v4 = vrot.slane %v6155_v5, 4  ;;  %v1905_v39 = vsel %vm398_vm0, %v6641_v42, %v1904_v20  ;;  %v2016_v36 = vrot.slane %v6635_v25, 4 }
 0x1d6   : > { %4297 = vrot.lane.b32.xlu1 %v4296_v19, %s4474_s16  ;;  %v6658_v18 = vperm.slane %v1991_v9, %v4588_v16  ;;  %v7604_v0 = vrot.slane %v6006_v61, 4  ;;  %v7605_v56 = vrot.slane %v6152_v30, 4  ;;  %v7606_v17 = vrot.slane %v5992_v32, 4 }
 0x1d7   : > { %v2904_v38 = vsel %vm398_vm0, %v5891_v50, %v7603_v4  ;;  %v7607_v3 = vrot.slane %v6466_v57, 4  ;;  %v4311_v41 = vpack.i.bf16 %v2363_v62, %v2251_v1  ;;  %v6694_v19 = vperm.slane %v1993_v44, %v4588_v16 }
 0x1d8   : > { %v2912_v11 = vperm.slane %v2904_v38, %v4588_v16  ;;  %v2928_v5 = vsel %vm398_vm0, %v5961_v24, %v7604_v0  ;;  %v3016_v50 = vsel %vm398_vm0, %v5869_v26, %v7605_v56  ;;  %v3040_v2 = vsel %vm398_vm0, %v5956_v59, %v7606_v17 }
 0x1d9   : > { %v1857_v27 = vsel %vm398_vm0, %v6238_v13, %v7607_v3  ;;  %v2017_v61 = vsel %vm398_vm0, %v6658_v18, %v2016_v36  ;;  %v2936_v24 = vperm.slane %v2928_v5, %v4588_v16  ;;  %v3024_v30 = vperm.slane %v3016_v50, %v4588_v16 }
 0x1da   : > { %v4306_v28 = vpack.i.bf16 %v2017_v61, %v1905_v39  ;;  %v3048_v26 = vperm.slane %v3040_v2, %v4588_v16  ;;  %v6684_v32 = vperm.slane %v1857_v27, %v4588_v16  ;;  %v6687_v59 = vperm.slane %v1881_v53, %v4588_v16  ;;  %v7609_v2 = vld [vmem:[#allocation44_spill] sm:$0xff]  ;;  %v7611_v61 = vld [vmem:[#allocation22_spill] sm:$0xff] }
 0x1db   : > { %v2949_v57 = vrot.slane %v2936_v24, 4  ;;  %v7608_v13 = vrot.slane %v6459_v34, 4  ;;  %v2951_v20 = vrot.slane %v2912_v11, 4  ;;  %v3063_v53 = vrot.slane %v3024_v30, 4 }
 0x1dc   : > { %4307 = vrot.lane.b32.xlu0 %v4306_v28, %s4471_s13  ;;  %v3061_v1 = vrot.slane %v3048_v26, 4  ;;  %v1906_v62 = vrot.slane %v6687_v59, 4  ;;  %v2018_v34 = vrot.slane %v6694_v19, 4  ;;  %v2717_v0 = vrot.slane %v2678_v31, 4  ;;  %v7610_v31 = vld [vmem:[#allocation5_spill] sm:$0xff] }
 0x1dd   : > { %v1969_v29 = vsel %vm398_vm0, %v6246_v46, %v7608_v13  ;;  %v2950_v4 = vsel %vm398_vm0, %v2949_v57, %v2912_v11  ;;  %v2952_v38 = vsel %vm398_vm0, %v2936_v24, %v2951_v20  ;;  %v2605_v46 = vrot.slane %v6594_v21, 4 }
 0x1de   : > { %v6699_v9 = vperm.slane %v1969_v29, %v4588_v16  ;;  %v3062_v44 = vsel %vm398_vm0, %v3061_v1, %v3024_v30  ;;  %v1907_v39 = vsel %vm398_vm0, %v1906_v62, %v6684_v32  ;;  %v3064_v36 = vsel %vm398_vm0, %v3048_v26, %v3063_v53  ;;  %4312 = vrot.lane.b32.xlu1 %v4311_v41, %s4470_s12  ;;  %v7613_v1 = vld [vmem:[#allocation21_spill] sm:$0xff] }
 0x1df   : > { %v4301_v5 = vpack.i.bf16 %v3062_v44, %v2950_v4  ;;  %v4321_v56 = vpack.i.bf16 %v3064_v36, %v2952_v38  ;;  %v2606_v50 = vsel %vm398_vm0, %v6597_v10, %v2605_v46  ;;  %v2002_v21 = vrot.slane %v6610_v8, 4 }
 0x1e0   : > { %v2019_v11 = vsel %vm398_vm0, %v2018_v34, %v6699_v9  ;;  %v2718_v17 = vsel %vm398_vm0, %v6603_v55, %v2717_v0  ;;  %v6719_v3 = vperm.slane %v7609_v2, %v4567_v7  ;;  %v6723_v27 = vperm.slane %v7610_v31, %v4567_v7  ;;  %v7614_v34 = vld [vmem:[#allocation51_spill] sm:$0xff] }
 0x1e1   : > { %4302 = vrot.lane.b32.xlu2 %v4301_v5, %s4476_s18  ;;  %v4316_v41 = vpack.i.bf16 %v2718_v17, %v2606_v50  ;;  %v1648_v24 = vrot.slane %v7611_v61, 4  ;;  %v2561_v10 = vrot.slane %v6555_v49, 4  ;;  %v2585_v30 = vrot.slane %v6566_v45, 4 }
 0x1e2   : > { %v4326_v28 = vpack.i.bf16 %v2019_v11, %v1907_v39  ;;  %v1624_v55 = vrot.slane %v6719_v3, 4  ;;  %v2673_v26 = vrot.slane %v6576_v14, 4  ;;  %v2697_v57 = vrot.slane %v6584_v58, 4 }
 0x1e3   : > { %v1649_v13 = vsel %vm398_vm0, %v1648_v24, %v6723_v27  ;;  %v2562_v29 = vsel %vm398_vm0, %v6559_v43, %v2561_v10  ;;  %v2586_v20 = vsel %vm398_vm0, %v7594_v37, %v2585_v30  ;;  %v7612_v49 = vrot.slane %v6183_v63, 4 }
 0x1e4   : > { %4322 = vrot.lane.b32.xlu0 %v4321_v56, %s4475_s17  ;;  %v1625_v14 = vsel %vm398_vm0, %v1624_v55, %v7613_v1  ;;  %v6746_v58 = vperm.slane %v1649_v13, %v4588_v16  ;;  %v2570_v62 = vperm.slane %v2562_v29, %v4588_v16  ;;  %v2594_v43 = vperm.slane %v2586_v20, %v4588_v16  ;;  %v7617_v56 = vld [vmem:[#allocation52_spill] sm:$0xff] }
 0x1e5   : > { %v2209_v45 = vsel %vm398_vm0, %v7612_v49, %v6357_v23  ;;  %v6751_v53 = vperm.slane %v1625_v14, %v4588_v16  ;;  %v2674_v37 = vsel %vm398_vm0, %v6580_v51, %v2673_v26  ;;  %v2698_v4 = vsel %vm398_vm0, %v7600_v22, %v2697_v57 }
 0x1e6   : > { %v7615_v38 = vrot.slane %v6422_v35, 4  ;;  %v2607_v44 = vrot.slane %v2594_v43, 4  ;;  %v2682_v39 = vperm.slane %v2674_v37, %v4588_v16  ;;  %v2706_v36 = vperm.slane %v2698_v4, %v4588_v16  ;;  %4327 = vrot.lane.b32.xlu1 %v4326_v28, %s4472_s14 }
 0x1e7   : > { %v2215_v0 = vperm.slane %v2209_v45, %v4588_v16  ;;  %v1674_v5 = vrot.slane %v6751_v53, 4  ;;  %v7616_v22 = vrot.slane %v6179_v40, 4  ;;  %v7618_v50 = vrot.slane %v6450_v48, 4 }
 0x1e8   : > { %v2233_v46 = vsel %vm398_vm0, %v7615_v38, %v7614_v34  ;;  %v2608_v2 = vsel %vm398_vm0, %v2607_v44, %v2570_v62  ;;  %v2719_v31 = vrot.slane %v2706_v36, 4  ;;  %v2609_v55 = vrot.slane %v2570_v62, 4 }
 0x1e9   : > { %v2239_v51 = vperm.slane %v2233_v46, %v4588_v16  ;;  %v2321_v11 = vsel %vm398_vm0, %v7616_v22, %v6339_v15  ;;  %v2345_v17 = vsel %vm398_vm0, %v7618_v50, %v7617_v56  ;;  %4317 = vrot.lane.b32.xlu2 %v4316_v41, %s4473_s15  ;;  %v1675_v30 = vsel %vm398_vm0, %v6746_v58, %v1674_v5 }
 0x1ea   : > { %v2327_v24 = vperm.slane %v2321_v11, %v4588_v16  ;;  %v2351_v10 = vperm.slane %v2345_v17, %v4588_v16  ;;  %v2721_v26 = vrot.slane %v2682_v39, 4  ;;  %v2720_v57 = vsel %vm398_vm0, %v2719_v31, %v2682_v39 }
 0x1eb   : > { %v2252_v28 = vrot.slane %v2239_v51, 4  ;;  %v2254_v29 = vrot.slane %v2215_v0, 4  ;;  %v4336_v49 = vpack.i.bf16 %v2720_v57, %v2608_v2  ;;  %v2610_v14 = vsel %vm398_vm0, %v2594_v43, %v2609_v55  ;;  %v7624_v2 = vld [vmem:[#allocation60_spill] sm:$0xff]  ;;  %v7626_v55 = vld [vmem:[#allocation59_spill] sm:$0xff] }
 0x1ec   : > { %v2364_v13 = vrot.slane %v2351_v10, 4  ;;  %v2366_v20 = vrot.slane %v2327_v24, 4  ;;  %v2722_v37 = vsel %vm398_vm0, %v2706_v36, %v2721_v26  ;;  %v1890_v46 = vrot.slane %v6619_v6, 4 }
 0x1ed   : > { %v2253_v45 = vsel %vm398_vm0, %v2252_v28, %v2215_v0  ;;  %v4351_v4 = vpack.i.bf16 %v2722_v37, %v2610_v14  ;;  %v2255_v38 = vsel %vm398_vm0, %v2239_v51, %v2254_v29  ;;  %4337 = vrot.lane.b32.xlu0 %v4336_v49, %s4476_s18  ;;  %v1908_v39 = vrot.slane %v6684_v32, 4 }
 0x1ee   : > { %v2365_v41 = vsel %vm398_vm0, %v2364_v13, %v2327_v24  ;;  %v2367_v62 = vsel %vm398_vm0, %v2351_v10, %v2366_v20  ;;  %v2020_v0 = vrot.slane %v6699_v9, 4  ;;  %v7619_v43 = vrot.slane %v6357_v23, 4  ;;  %1717 = vrot.lane.b32.xlu1 %v1675_v30, %s4471_s13 }
 0x1ef   : > { %v4331_v44 = vpack.i.bf16 %v2365_v41, %v2253_v45  ;;  %v7620_v5 = vrot.slane %v7614_v34, 4  ;;  %v7621_v22 = vrot.slane %v6339_v15, 4  ;;  %v7622_v50 = vrot.slane %v7617_v56, 4 }
 0x1f0   : > { %v2211_v36 = vsel %vm398_vm0, %v6183_v63, %v7619_v43  ;;  %v4346_v23 = vpack.i.bf16 %v2367_v62, %v2255_v38  ;;  %v1909_v63 = vsel %vm398_vm0, %v6687_v59, %v1908_v39  ;;  %v2021_v9 = vsel %vm398_vm0, %v6694_v19, %v2020_v0 }
 0x1f1   : > { %v2235_v51 = vsel %vm398_vm0, %v6422_v35, %v7620_v5  ;;  %v2323_v11 = vsel %vm398_vm0, %v6179_v40, %v7621_v22  ;;  %v2347_v32 = vsel %vm398_vm0, %v6450_v48, %v7622_v50  ;;  %v2219_v15 = vperm.slane %v2211_v36, %v4588_v16  ;;  %4332 = vrot.lane.b32.xlu2 %v4331_v44, %s4474_s16  ;;  %v7629_v50 = vld [vmem:[#allocation18_spill] sm:$0xff] }
 0x1f2   : > { %v2243_v35 = vperm.slane %v2235_v51, %v4588_v16  ;;  %v2331_v40 = vperm.slane %v2323_v11, %v4588_v16  ;;  %v2355_v34 = vperm.slane %v2347_v32, %v4588_v16  ;;  %v7623_v48 = vrot.slane %v6289_v33, 4  ;;  %v7627_v11 = vld [vmem:[#allocation17_spill] sm:$0xff] }
 0x1f3   : > { %v1891_v19 = vsel %vm398_vm0, %v1890_v46, %v7624_v2  ;;  %v7625_v31 = vrot.slane %v6267_v54, 4  ;;  %v2003_v26 = vsel %vm398_vm0, %v2002_v21, %v7626_v55  ;;  %v1626_v29 = vrot.slane %v7613_v1, 4 }
 0x1f4   : > { %v1867_v56 = vsel %vm398_vm0, %v7623_v48, %v6539_v12  ;;  %v2256_v17 = vrot.slane %v2243_v35, 4  ;;  %v2368_v10 = vrot.slane %v2355_v34, 4  ;;  %v1897_v30 = vperm.slane %v1891_v19, %v4588_v16 }
 0x1f5   : > { %v1873_v59 = vperm.slane %v1867_v56, %v4588_v16  ;;  %v1979_v24 = vsel %vm398_vm0, %v7625_v31, %v6463_v60  ;;  %v2009_v13 = vperm.slane %v2003_v26, %v4588_v16  ;;  %v1650_v20 = vrot.slane %v6723_v27, 4  ;;  %4347 = vrot.lane.b32.xlu0 %v4346_v23, %s4473_s15  ;;  %v7630_v23 = vld [vmem:[#allocation9_spill] sm:$0xff]  ;;  %v7632_v56 = vld [vmem:[#allocation11_spill] sm:$0xff]  ;;  %v7634_v31 = vld [vmem:[#allocation14_spill] sm:$0xff] }
 0x1f6   : > { %v1985_v28 = vperm.slane %v1979_v24, %v4588_v16  ;;  %v2257_v57 = vsel %vm398_vm0, %v2256_v17, %v2219_v15  ;;  %v2369_v49 = vsel %vm398_vm0, %v2368_v10, %v2331_v40  ;;  %v1910_v45 = vrot.slane %v1897_v30, 4  ;;  %4352 = vrot.lane.b32.xlu1 %v4351_v4, %s4475_s17  ;;  %v6878_v10 = vpop.permute.xlu2 %4212 }
 0x1f7   : > { %v2258_v14 = vrot.slane %v2219_v15, 4  ;;  %v2370_v37 = vrot.slane %v2331_v40, 4  ;;  %v1868_v41 = vrot.slane %v6539_v12, 4  ;;  %v2022_v38 = vrot.slane %v2009_v13, 4  ;;  %v7631_v40 = vld [vmem:[#allocation10_spill] sm:$0xff] }
 0x1f8   : > { %v1627_v21 = vsel %vm398_vm0, %v6719_v3, %v1626_v29  ;;  %v1651_v62 = vsel %vm398_vm0, %v7611_v61, %v1650_v20  ;;  %v4341_v46 = vpack.i.bf16 %v2021_v9, %v1909_v63  ;;  %v1911_v1 = vsel %vm398_vm0, %v1910_v45, %v1873_v59  ;;  %v7637_v29 = vld [vmem:[#allocation45_spill] sm:$0xff] }
 0x1f9   : > { %v1635_v27 = vperm.slane %v1627_v21, %v4588_v16  ;;  %v1659_v44 = vperm.slane %v1651_v62, %v4588_v16  ;;  %v4361_v39 = vpack.i.bf16 %v2369_v49, %v2257_v57  ;;  %v2023_v12 = vsel %vm398_vm0, %v2022_v38, %v1985_v28  ;;  %v7636_v57 = vld [vmem:[#allocation3_spill] sm:$0xff]  ;;  %v7639_v49 = vld [vmem:[#allocation42_spill] sm:$0xff]  ;;  %v7641_v21 = vld [vmem:[#allocation16_spill] sm:$0xff] }
 0x1fa   : > { %v6852_v0 = vsel %vm398_vm0, %v2243_v35, %v2258_v14  ;;  %v1912_v43 = vrot.slane %v1873_v59, 4  ;;  %v6855_v61 = vsel %vm398_vm0, %v2355_v34, %v2370_v37  ;;  %v2024_v5 = vrot.slane %v1985_v28, 4  ;;  %4342 = vrot.lane.b32.xlu2 %v4341_v46, %s4470_s12  ;;  %v7633_v59 = vld [vmem:[#allocation13_spill] sm:$0xff]  ;;  %v7635_v28 = vld [vmem:[#allocation12_spill] sm:$0xff]  ;;  %v7640_v37 = vld [vmem:[#allocation15_spill] sm:$0xff] }
 0x1fb   : > { %v1676_v3 = vrot.slane %v1659_v44, 4  ;;  %v1678_v36 = vrot.slane %v1635_v27, 4  ;;  %v4356_v51 = vpack.i.bf16 %v2023_v12, %v1911_v1  ;;  %v7628_v4 = vrot.slane %v7627_v11, 4 }
 0x1fc   : > { %v1913_v22 = vsel %vm398_vm0, %v1897_v30, %v1912_v43  ;;  %v1466_v63 = vrot.slane %v7630_v23, 4  ;;  %v2025_v35 = vsel %vm398_vm0, %v2009_v13, %v2024_v5  ;;  %v1478_v34 = vrot.slane %v7631_v40, 4  ;;  %v7643_v43 = vld [vmem:[#allocation36_spill] sm:$0xff] }
 0x1fd   : > { %v6863_v32 = vsel %vm398_vm0, %v7629_v50, %v7628_v4  ;;  %v1677_v9 = vsel %vm398_vm0, %v1676_v3, %v1635_v27  ;;  %v6869_v15 = vsel %vm398_vm0, %v1659_v44, %v1678_v36  ;;  %v1490_v19 = vrot.slane %v7633_v59, 4  ;;  %4357 = vrot.lane.b32.xlu0 %v4356_v51, %s4474_s16  ;;  %v7642_v44 = vld [vmem:[#allocation4_spill] sm:$0xff] }
 0x1fe   : > { %v4366_v48 = vpack.i.bf16 %v6869_v15, %v6863_v32  ;;  %v1467_v17 = vsel %vm398_vm0, %v7632_v56, %v1466_v63  ;;  %v1502_v24 = vrot.slane %v7634_v31, 4  ;;  %v1479_v26 = vsel %vm398_vm0, %v7635_v28, %v1478_v34  ;;  %4362 = vrot.lane.b32.xlu1 %v4361_v39, %s4476_s18  ;;  %v7650_v15 = vld [vmem:[#allocation62_spill] sm:$0xff] }
 0x1ff   : > { %v1475_v30 = vperm.slane %v1467_v17, %v4567_v7  ;;  %v1587_v13 = vperm.slane %v7636_v57, %v4567_v7  ;;  %v7638_v20 = vrot.slane %v7637_v29, 4  ;;  %v1487_v14 = vperm.slane %v1479_v26, %v4567_v7  ;;  %v6937_v17 = vpop.permute.xlu2 %4227 }
 0x200   : > { %v1491_v38 = vsel %vm398_vm0, %v7640_v37, %v1490_v19  ;;  %v1503_v62 = vsel %vm398_vm0, %v7641_v21, %v1502_v24  ;;  %v1623_v12 = vperm.slane %v7642_v44, %v4567_v7  ;;  %v7644_v3 = vrot.slane %v7643_v43, 4 }
 0x201   : > { %v1603_v45 = vsel %vm398_vm0, %v7639_v49, %v7638_v20  ;;  %v1499_v1 = vperm.slane %v1491_v38, %v4567_v7  ;;  %v1511_v27 = vperm.slane %v1503_v62, %v4567_v7  ;;  %v4376_v5 = vpack.i.bf16 %v6855_v61, %v6852_v0 }
 0x202   : > { %v1611_v46 = vperm.slane %v1603_v45, %v4567_v7  ;;  %v1637_v36 = vsel %vm398_vm0, %v7644_v3, %v1587_v13  ;;  %v1524_v51 = vrot.slane %v1487_v14, 4  ;;  %v7645_v4 = vrot.slane %v7624_v2, 4  ;;  %1721 = vrot.lane.b32.xlu2 %v1677_v9, %s4472_s14 }
 0x203   : > { %v1643_v11 = vperm.slane %v1637_v36, %v4588_v16  ;;  %v1548_v23 = vrot.slane %v1511_v27, 4  ;;  %v1660_v63 = vrot.slane %v1623_v12, 4  ;;  %v1869_v7 = vsel %vm398_vm0, %v6289_v33, %v1868_v41 }
 0x204   : > { %v1893_v50 = vsel %vm398_vm0, %v6619_v6, %v7645_v4  ;;  %v4371_v39 = vpack.i.bf16 %v2025_v35, %v1913_v22  ;;  %v1525_v0 = vsel %vm398_vm0, %v1524_v51, %v1475_v30  ;;  %v7646_v34 = vrot.slane %v7626_v55, 4 }
 0x205   : > { %v6914_v40 = vperm.slane %v1893_v50, %v4588_v16  ;;  %v1682_v61 = vrot.slane %v1643_v11, 4  ;;  %v1531_v6 = vperm.slane %v1525_v0, %v4588_v16  ;;  %v1549_v56 = vsel %vm398_vm0, %v1548_v23, %v1499_v1  ;;  %v7649_v23 = vld [vmem:[#allocation61_spill] sm:$0xff] }
 0x206   : > { %v2005_v2 = vsel %vm398_vm0, %v6610_v8, %v7646_v34  ;;  %v1661_v33 = vsel %vm398_vm0, %v1660_v63, %v1611_v46  ;;  %v7647_v41 = vrot.slane %v6463_v60, 4  ;;  %v6931_v35 = vperm.slane %v1869_v7, %v4588_v16  ;;  %4372 = vrot.lane.b32.xlu0 %v4371_v39, %s4473_s15  ;;  %4377 = vrot.lane.b32.xlu1 %v4376_v5, %s4475_s17 }
 0x207   : > { %v1667_v22 = vperm.slane %v1661_v33, %v4588_v16  ;;  %v1914_v55 = vrot.slane %v6914_v40, 4  ;;  %v6935_v8 = vperm.slane %v2005_v2, %v4588_v16  ;;  %v1555_v59 = vperm.slane %v1549_v56, %v4588_v16  ;;  %v7652_v33 = vld [vmem:[#allocation31_spill] sm:$0xff] }
 0x208   : > { %v1981_v9 = vsel %vm398_vm0, %v6267_v54, %v7647_v41  ;;  %v1570_v19 = vrot.slane %v1531_v6, 4  ;;  %v1526_v31 = vrot.slane %v1475_v30, 4  ;;  %v1550_v60 = vrot.slane %v1499_v1, 4  ;;  %v7648_v30 = vld [vmem:[#allocation63_spill] sm:$0xff] }
 0x209   : > { %v1683_v54 = vsel %vm398_vm0, %v1667_v22, %v1682_v61  ;;  %v6943_v24 = vperm.slane %v1981_v9, %v4588_v16  ;;  %v2026_v28 = vrot.slane %v6935_v8, 4  ;;  %v1680_v26 = vrot.slane %v1667_v22, 4 }
 0x20a   : > { %v1568_v57 = vrot.slane %v1555_v59, 4  ;;  %v1527_v29 = vsel %vm398_vm0, %v1487_v14, %v1526_v31  ;;  %v1551_v20 = vsel %vm398_vm0, %v1511_v27, %v1550_v60  ;;  %v1638_v49 = vrot.slane %v1587_v13, 4  ;;  %4367 = vrot.lane.b32.xlu2 %v4366_v48, %s4470_s12 }
 0x20b   : > { %v2595_v45 = vrot.slane %v6313_v52, 4  ;;  %v2707_v37 = vrot.slane %v7648_v30, 4  ;;  %v1915_v38 = vsel %vm398_vm0, %v1914_v55, %v6931_v35  ;;  %v1681_v21 = vsel %vm398_vm0, %v1680_v26, %v1643_v11  ;;  %v7655_v26 = vld [vmem:[#allocation53_spill] sm:$0xff] }
 0x20c   : > { %v1571_v62 = vsel %vm398_vm0, %v1555_v59, %v1570_v19  ;;  %v2027_v1 = vsel %vm398_vm0, %v2026_v28, %v6943_v24  ;;  %v1535_v14 = vperm.slane %v1527_v29, %v4588_v16  ;;  %v1559_v13 = vperm.slane %v1551_v20, %v4588_v16  ;;  %v7653_v59 = vld [vmem:[#allocation41_spill] sm:$0xff] }
 0x20d   : > { %v1639_v52 = vsel %vm398_vm0, %v7643_v43, %v1638_v49  ;;  %v1662_v27 = vrot.slane %v1611_v46, 4  ;;  %v1569_v44 = vsel %vm398_vm0, %v1568_v57, %v1531_v6  ;;  %v4391_v5 = vpack.i.bf16 %v1683_v54, %v1571_v62  ;;  %v4243_v43 = vpop.permute.xlu2 %4242  ;;  %v7651_v6 = vld [vmem:[#allocation47_spill] sm:$0xff]  ;;  %v7654_v54 = vld [vmem:[#allocation29_spill] sm:$0xff]  ;;  %v7656_v49 = vld [vmem:[#allocation6_spill] sm:$0xff] }
 0x20e   : > { %v1572_v3 = vrot.slane %v1559_v13, 4  ;;  %v1647_v36 = vperm.slane %v1639_v52, %v4588_v16  ;;  %v4386_v51 = vpack.i.bf16 %v2027_v1, %v1915_v38  ;;  %v1574_v50 = vrot.slane %v1535_v14, 4  ;;  %v7658_v52 = vld [vmem:[#allocation48_spill] sm:$0xff] }
 0x20f   : > { %v1663_v11 = vsel %vm398_vm0, %v1623_v12, %v1662_v27  ;;  %v2596_v32 = vsel %vm398_vm0, %v2595_v45, %v7649_v23  ;;  %v2708_v48 = vsel %vm398_vm0, %v2707_v37, %v7650_v15  ;;  %v4381_v46 = vpack.i.bf16 %v1681_v21, %v1569_v44  ;;  %v6975_v12 = vpop.permute.xlu1 %4222  ;;  %4392 = vrot.lane.b32.xlu1 %v4391_v5, %s4473_s15  ;;  %v7659_v44 = vld [vmem:[#allocation40_spill] sm:$0xff]  ;;  %v7660_v5 = vld [vmem:[#allocation39_spill] sm:$0xff] }
 0x210   : > { %v1671_v4 = vperm.slane %v1663_v11, %v4588_v16  ;;  %4387 = vrot.lane.b32.xlu0 %v4386_v51, %s4476_s18  ;;  %v1686_v63 = vrot.slane %v1647_v36, 4  ;;  %v4245_v7 = vunpack.i.h.bf16 %v4243_v43  ;;  %v4244_v39 = vunpack.i.l.bf16 %v4243_v43 }
 0x211   : > { %v1573_v0 = vsel %vm398_vm0, %v1572_v3, %v1535_v14  ;;  %v4084_v56 = vunpack.i.l.bf16 %v7651_v6  ;;  %v4120_v41 = vunpack.i.h.bf16 %v7652_v33  ;;  %v1575_v22 = vsel %vm398_vm0, %v1559_v13, %v1574_v50  ;;  %v7657_v14 = vld [vmem:[#allocation33_spill] sm:$0xff] }
 0x212   : > { %v1684_v61 = vrot.slane %v1671_v4, 4  ;;  %v1687_v16 = vsel %vm398_vm0, %v1671_v4, %v1686_v63  ;;  %v2786_v34 = vsel %vm678_vm3, %v2708_v48, %v4245_v7  ;;  %v2779_v2 = vsel %vm678_vm3, %v2596_v32, %v4244_v39  ;;  %4382 = vrot.lane.b32.xlu2 %v4381_v46, %s4474_s16  ;;  %v4218_v32 = vpop.permute.xlu0 %4217  ;;  %s359_s16 = scalar_lea.vmem %s7284_s4, %s7131_s28  ;;  %s372_s28 = scalar_lea.vmem %s7286_s6, %s3797_s22 }
 0x213   : > { %v4119_v55 = vunpack.i.l.bf16 %v7652_v33  ;;  %v4080_v19 = vunpack.i.h.bf16 %v7653_v59  ;;  %v4079_v31 = vunpack.i.l.bf16 %v7653_v59  ;;  %v4114_v28 = vunpack.i.l.bf16 %v7654_v54 }
 0x214   : > { %v1685_v9 = vsel %vm398_vm0, %v1684_v61, %v1647_v36  ;;  %v4124_v57 = vunpack.i.l.bf16 %v7655_v26  ;;  %v1916_v29 = vrot.slane %v6931_v35, 4  ;;  %v2028_v20 = vrot.slane %v6943_v24, 4  ;;  %v7661_v61 = vld [vmem:[#allocation32_spill] sm:$0xff] }
 0x215   : > { %v4401_v60 = vpack.i.bf16 %v1685_v9, %v1573_v0  ;;  %v4089_v45 = vunpack.i.l.bf16 %v7656_v49  ;;  %v4115_v30 = vunpack.i.h.bf16 %v7654_v54  ;;  %v4125_v37 = vunpack.i.h.bf16 %v7655_v26 }
 0x216   : > { %v4406_v38 = vpack.i.bf16 %v1687_v16, %v1575_v22  ;;  %v4090_v21 = vunpack.i.h.bf16 %v7656_v49  ;;  %v1917_v62 = vsel %vm398_vm0, %v6914_v40, %v1916_v29  ;;  %v2029_v1 = vsel %vm398_vm0, %v6935_v8, %v2028_v20  ;;  %v7664_v22 = vld [vmem:[#allocation46_spill] sm:$0xff]  ;;  %v7667_v20 = vld [vmem:[#allocation27_spill] sm:$0xff] }
 0x217   : > { %v1389_v35 = vsel %vm686_vm7, %v7657_v14, %v4114_v28  ;;  %v4085_v24 = vunpack.i.h.bf16 %v7651_v6  ;;  %v1396_v27 = vsel %vm686_vm7, %v7658_v52, %v4115_v30  ;;  %v1047_v3 = vsel %vm686_vm7, %v7659_v44, %v4079_v31  ;;  %v4238_v15 = vpop.permute.xlu1 %4237  ;;  %v7662_v6 = vld [vmem:[#allocation58_spill] sm:$0xff] }
 0x218   : > { %4402 = vrot.lane.b32.xlu0 %v4401_v60, %s4476_s18  ;;  %v1390_v13 = vsel %vm688_vm8, %v1389_v35, %v4119_v55  ;;  %v1397_v8 = vsel %vm688_vm8, %v1396_v27, %v4120_v41  ;;  %v1048_v36 = vsel %vm688_vm8, %v1047_v3, %v4084_v56  ;;  %v1054_v51 = vsel %vm686_vm7, %v7660_v5, %v4080_v19  ;;  %v7663_v41 = vld [vmem:[#allocation2_spill] sm:$0xff] }
 0x219   : > { %v7011_v40 = vsel %vm690_vm9, %v1390_v13, %v4124_v57  ;;  %v4396_v11 = vpack.i.bf16 %v2029_v1, %v1917_v62  ;;  %4407 = vrot.lane.b32.xlu1 %v4406_v38, %s4475_s17  ;;  %v7019_v4 = vsel %vm690_vm9, %v1397_v8, %v4125_v37  ;;  %v7022_v50 = vsel %vm690_vm9, %v1048_v36, %v4089_v45  ;;  %v4258_v43 = vpop.permute.xlu2 %4257  ;;  %v7665_v28 = vld [vmem:[#allocation30_spill] sm:$0xff]  ;;  %v7666_v57 = vld [vmem:[#allocation57_spill] sm:$0xff]  ;;  %v7668_v45 = vld [vmem:[#allocation28_spill] sm:$0xff] }
 0x21a   : > { %v1055_v23 = vsel %vm688_vm8, %v1054_v51, %v4085_v24  ;;  %v4260_v46 = vunpack.i.h.bf16 %v4258_v43  ;;  %v4259_v63 = vunpack.i.l.bf16 %v4258_v43  ;;  %v7035_v0 = vpop.permute.xlu0 %4232  ;;  %v2244_v16 = vrot.slane %v7661_v61, 4 }
 0x21b   : > { %v7026_v48 = vsel %vm690_vm9, %v1055_v23, %v4090_v21  ;;  %4397 = vrot.lane.b32.xlu2 %v4396_v11, %s4475_s17  ;;  %v2356_v56 = vrot.slane %v7662_v6, 4  ;;  %v3279_v9 = vrot.slane %v7663_v41, 4  ;;  %v3391_v55 = vrot.slane %v7664_v22, 4 }
 0x21c   : > { %v7030_v7 = vsel %vm680_vm4, %v2779_v2, %v4259_v63  ;;  %v7033_v39 = vsel %vm680_vm4, %v2786_v34, %v4260_v46  ;;  %v4215_v59 = vunpack.i.h.bf16 %v6878_v10  ;;  %v4214_v19 = vunpack.i.l.bf16 %v6878_v10 }
 0x21d   : > { %v4220_v31 = vunpack.i.h.bf16 %v4218_v32  ;;  %v4219_v60 = vunpack.i.l.bf16 %v4218_v32  ;;  %v2357_v26 = vsel %vm398_vm0, %v2356_v56, %v7665_v28  ;;  %v2245_v29 = vsel %vm398_vm0, %v2244_v16, %v7666_v57 }
 0x21e   : > { %v3280_v49 = vsel %vm398_vm0, %v3279_v9, %v7667_v20  ;;  %v3392_v30 = vsel %vm398_vm0, %v3391_v55, %v7668_v45  ;;  %v4240_v14 = vunpack.i.h.bf16 %v4238_v15  ;;  %v4239_v35 = vunpack.i.l.bf16 %v4238_v15 }
 0x21f   : > { %v4253_v33 = vpop.permute.xlu1 %4252  ;;  %v3470_v38 = vsel %vm678_vm3, %v3392_v30, %v4215_v59  ;;  %v3463_v21 = vsel %vm678_vm3, %v3280_v49, %v4214_v19  ;;  %v4230_v24 = vunpack.i.h.bf16 %v6937_v17  ;;  %v4229_v13 = vunpack.i.l.bf16 %v6937_v17 }
 0x220   : > { %v3471_v62 = vsel %vm680_vm4, %v3470_v38, %v4220_v31  ;;  %v3464_v1 = vsel %vm680_vm4, %v3463_v21, %v4219_v60  ;;  %v4255_v27 = vunpack.i.h.bf16 %v4253_v33  ;;  %v4254_v44 = vunpack.i.l.bf16 %v4253_v33  ;;  %v7669_v31 = vld [vmem:[#allocation56_spill] sm:$0xff] }
 0x221   : > { %v3465_v3 = vsel %vm682_vm5, %v3464_v1, %v4229_v13  ;;  %v3472_v8 = vsel %vm682_vm5, %v3471_v62, %v4230_v24  ;;  %v4225_v19 = vunpack.i.h.bf16 %v6975_v12  ;;  %v2937_v60 = vrot.slane %v7669_v31, 4 }
 0x222   : > { %v4273_v2 = vpop.permute.xlu2 %4272  ;;  %v4248_v52 = vpop.permute.xlu0 %4247  ;;  %v3466_v5 = vsel %vm684_vm6, %v3465_v3, %v4239_v35  ;;  %v3473_v51 = vsel %vm684_vm6, %v3472_v8, %v4240_v14  ;;  %v4235_v49 = vunpack.i.h.bf16 %v7035_v0  ;;  %v4234_v45 = vunpack.i.l.bf16 %v7035_v0 }
 0x223   : > { %v4275_v34 = vunpack.i.h.bf16 %v4273_v2  ;;  %v4274_v54 = vunpack.i.l.bf16 %v4273_v2  ;;  %v3467_v46 = vsel %vm686_vm7, %v3466_v5, %v4254_v44  ;;  %v3474_v17 = vsel %vm686_vm7, %v3473_v51, %v4255_v27 }
 0x224   : > { %v4224_v2 = vunpack.i.l.bf16 %v6975_v12  ;;  %v4250_v21 = vunpack.i.h.bf16 %v4248_v52  ;;  %v4249_v62 = vunpack.i.l.bf16 %v4248_v52 }
 0x225   : > { %v7052_v37 = vsel %vm678_vm3, %v2357_v26, %v4275_v34  ;;  %v7055_v10 = vsel %vm678_vm3, %v2245_v29, %v4274_v54  ;;  %v7670_v34 = vld [vmem:[#allocation55_spill] sm:$0xff]  ;;  %v7671_v26 = vld [vmem:[#allocation50_spill] sm:$0xff] }
 0x226   : > { %v3049_v54 = vrot.slane %v7670_v34, 4  ;;  %v7672_v29 = vld [vmem:[#allocation54_spill] sm:$0xff] }
 0x227   : > { %v2938_v20 = vsel %vm398_vm0, %v2937_v60, %v7672_v29 }
 0x228   : > { %v3050_v57 = vsel %vm398_vm0, %v3049_v54, %v7671_v26  ;;  %v3121_v38 = vsel %vm678_vm3, %v2938_v20, %v4224_v2 }
 0x229   : > { %v3128_v12 = vsel %vm678_vm3, %v3050_v57, %v4225_v19  ;;  %v3122_v44 = vsel %vm680_vm4, %v3121_v38, %v4234_v45 }
 0x22a   : > { %v4268_v36 = vpop.permute.xlu1 %4267  ;;  %v4263_v56 = vpop.permute.xlu0 %4262  ;;  %v3129_v27 = vsel %vm680_vm4, %v3128_v12, %v4235_v49  ;;  %v3123_v0 = vsel %vm682_vm5, %v3122_v44, %v4249_v62 }
 0x22b   : > { %v4270_v23 = vunpack.i.h.bf16 %v4268_v36  ;;  %v4269_v32 = vunpack.i.l.bf16 %v4268_v36  ;;  %v4265_v1 = vunpack.i.h.bf16 %v4263_v56  ;;  %v4264_v14 = vunpack.i.l.bf16 %v4263_v56 }
 0x22c   : > { %v4288_v11 = vpop.permute.xlu2 %4287  ;;  %v3130_v3 = vsel %vm682_vm5, %v3129_v27, %v4250_v21 }
 0x22d   : > { %v4290_v15 = vunpack.i.h.bf16 %v4288_v11  ;;  %v4289_v43 = vunpack.i.l.bf16 %v4288_v11  ;;  %v3468_v63 = vsel %vm688_vm8, %v3467_v46, %v4269_v32  ;;  %v3475_v61 = vsel %vm688_vm8, %v3474_v17, %v4270_v23 }
 0x22e   : > { %v3124_v8 = vsel %vm684_vm6, %v3123_v0, %v4264_v14  ;;  %v3131_v36 = vsel %vm684_vm6, %v3130_v3, %v4265_v1  ;;  %v1902_v3 = vrot.slane %v6641_v42, 4 }
 0x22f   : > { %v3469_v16 = vsel %vm690_vm9, %v3468_v63, %v4289_v43  ;;  %v3476_v6 = vsel %vm690_vm9, %v3475_v61, %v4290_v15 }
 0x230   : > { %3489 = vmatpush.msra.mxu0 %v3469_v16  ;;  %3509 = vmatpush.msra.mxu1 %v3476_v6 }
 0x232   : > { %v4278_v41 = vpop.permute.xlu0 %4277 }
 0x233   : > { %v4283_v9 = vpop.permute.xlu1 %4282  ;;  %v4279_v19 = vunpack.i.l.bf16 %v4278_v41 }
 0x234   : > { %v4285_v35 = vunpack.i.h.bf16 %v4283_v9  ;;  %v4284_v24 = vunpack.i.l.bf16 %v4283_v9  ;;  %v4280_v9 = vunpack.i.h.bf16 %v4278_v41 }
 0x235   : > { %v2781_v34 = vsel %vm682_vm5, %v7030_v7, %v4279_v19 }
 0x236   : > { %v3125_v52 = vsel %vm686_vm7, %v3124_v8, %v4284_v24  ;;  %v3132_v5 = vsel %vm686_vm7, %v3131_v36, %v4285_v35  ;;  %v2788_v60 = vsel %vm682_vm5, %v7033_v39, %v4280_v9  ;;  %v2014_v8 = vrot.slane %v6658_v18, 4 }
 0x238   : > { %v2015_v9 = vsel %vm398_vm0, %v2014_v8, %v6635_v25 }
 0x23a   : > { %v7075_v55 = vpop.permute.xlu0 %4292 }
 0x23b   : > { %v4303_v33 = vpop.permute.xlu2 %4302  ;;  %v4295_v35 = vunpack.i.h.bf16 %v7075_v55  ;;  %v4294_v24 = vunpack.i.l.bf16 %v7075_v55  ;;  %v1672_v55 = vrot.slane %v6746_v58, 4 }
 0x23c   : > { %v4305_v51 = vunpack.i.h.bf16 %v4303_v33  ;;  %v4304_v11 = vunpack.i.l.bf16 %v4303_v33 }
 0x23d   : > { %v2429_v36 = vsel %vm680_vm4, %v7055_v10, %v4294_v24  ;;  %v1673_v19 = vsel %vm398_vm0, %v1672_v55, %v6751_v53 }
 0x23e   : > { %v3126_v46 = vsel %vm688_vm8, %v3125_v52, %v4304_v11  ;;  %v3133_v17 = vsel %vm688_vm8, %v3132_v5, %v4305_v51  ;;  %v2436_v52 = vsel %vm680_vm4, %v7052_v37, %v4295_v35 }
 0x243   : > { %v7073_v22 = vpop.permute.xlu2 %4317 }
 0x244   : > { %v4320_v54 = vunpack.i.h.bf16 %v7073_v22  ;;  %v4319_v26 = vunpack.i.l.bf16 %v7073_v22 }
 0x248   : > { %v4298_v59 = vpop.permute.xlu1 %4297 }
 0x249   : > { %v4300_v2 = vunpack.i.h.bf16 %v4298_v59  ;;  %v4299_v31 = vunpack.i.l.bf16 %v4298_v59 }
 0x24b   : > { %v7081_v28 = vpop.permute.xlu2 %4332  ;;  %v2782_v57 = vsel %vm684_vm6, %v2781_v34, %v4299_v31  ;;  %v2789_v29 = vsel %vm684_vm6, %v2788_v60, %v4300_v2 }
 0x24c   : > { %v2783_v7 = vsel %vm686_vm7, %v2782_v57, %v4319_v26  ;;  %v2790_v38 = vsel %vm686_vm7, %v2789_v29, %v4320_v54  ;;  %v4335_v5 = vunpack.i.h.bf16 %v7081_v28  ;;  %v4334_v51 = vunpack.i.l.bf16 %v7081_v28 }
 0x24d   : > { %v4479_v28 = vmov 0  }
 0x24e   : > { %v7089_v30 = vpop.permute.xlu0 %4307  ;;  %4411 = vset.pattern.permute.xlu2 %v4479_v28 }
 0x24f   : > { %v4310_v42 = vunpack.i.h.bf16 %v7089_v30  ;;  %v4309_v18 = vunpack.i.l.bf16 %v7089_v30 }
 0x250   : > { %v7093_v13 = vpop.permute.xlu1 %4312 }
 0x251   : > { %v4315_v44 = vunpack.i.h.bf16 %v7093_v13  ;;  %v4314_v0 = vunpack.i.l.bf16 %v7093_v13  ;;  %v3620_v13 = vld [vmem:[%s351_s7] sm:$0xf]  ;;  %v2093_v2 = vsel %vm678_vm3, %v2015_v9, %v4310_v42 }
 0x252   : > { %3622 = vst [vmem:[#allocation1] ss:$4 sm:$0xff] %v3620_v13 }
 0x253   : > { %v2430_v58 = vsel %vm682_vm5, %v2429_v36, %v4314_v0  ;;  %v2437_v10 = vsel %vm682_vm5, %v2436_v52, %v4315_v44 }
 0x254   : > { %v7103_v23 = vpop.permute.xlu2 %4342  ;;  %v2438_v34 = vsel %vm684_vm6, %v2437_v10, %v4335_v5 }
 0x256   : > { %v4323_v32 = vpop.permute.xlu0 %4322 }
 0x257   : > { %v4325_v15 = vunpack.i.h.bf16 %v4323_v32  ;;  %v4324_v43 = vunpack.i.l.bf16 %v4323_v32  ;;  %v3522_v32 = vld [vmem:[%s355_s10] sm:$0x3] }
 0x258   : > { %v7107_v63 = vpop.permute.xlu1 %4327  ;;  %3525 = vperm.xlu2 %4411, %v3522_v32  }
 0x259   : > { %v3127_v61 = vsel %vm690_vm9, %v3126_v46, %v4324_v43  ;;  %v3134_v16 = vsel %vm690_vm9, %v3133_v17, %v4325_v15  ;;  %v4478_v43 = vmov 1   ;;  %v4330_v46 = vunpack.i.h.bf16 %v7107_v63 }
 0x25a   : > { %3490 = vmatpush.msra.mxu0 %v3127_v61  ;;  %3510 = vmatpush.msra.mxu1 %v3134_v16  ;;  %v4329_v17 = vunpack.i.l.bf16 %v7107_v63  ;;  %v2431_v63 = vsel %vm684_vm6, %v2430_v58, %v4334_v51 }
 0x25b   : > { %4412 = vset.pattern.permute.xlu0 %v4478_v43  ;;  %v2094_v29 = vsel %vm680_vm4, %v2093_v2, %v4330_v46  ;;  %v7673_v43 = vld [vmem:[#allocation43_spill] sm:$0xff] }
 0x25c   : > { %v7111_v56 = vpop.permute.xlu2 %1721  ;;  %3531 = vperm.xlu0 %4412, %v3522_v32  }
 0x25f   : > { %v4338_v6 = vpop.permute.xlu0 %4337 }
 0x260   : > { %v7113_v33 = vpop.permute.xlu1 %1717  ;;  %v4340_v20 = vunpack.i.h.bf16 %v4338_v6  ;;  %v4339_v49 = vunpack.i.l.bf16 %v4338_v6  ;;  %v1903_v6 = vsel %vm398_vm0, %v1902_v3, %v6626_v47 }
 0x261   : > { %v2086_v31 = vsel %vm678_vm3, %v1903_v6, %v4309_v18 }
 0x262   : > { %v2784_v22 = vsel %vm688_vm8, %v2783_v7, %v4339_v49  ;;  %v2791_v21 = vsel %vm688_vm8, %v2790_v38, %v4340_v20  ;;  %v2087_v25 = vsel %vm680_vm4, %v2086_v31, %v4329_v17  ;;  %v4344_v7 = vunpack.i.l.bf16 %v7103_v23 }
 0x264   : > { %v7126_v45 = vpop.permute.xlu2 %4367  ;;  %4413 = vset.pattern.permute.xlu0 %v4479_v28 }
 0x265   : > { %v4370_v5 = vunpack.i.h.bf16 %v7126_v45  ;;  %v4369_v51 = vunpack.i.l.bf16 %v7126_v45 }
 0x267   : > { %v7123_v41 = vpop.permute.xlu0 %4347  ;;  %v1746_v45 = vsel %vm682_vm5, %v7673_v43, %v4369_v51 }
 0x268   : > { %v4353_v59 = vpop.permute.xlu1 %4352  ;;  %v4350_v15 = vunpack.i.h.bf16 %v7123_v41  ;;  %v4349_v37 = vunpack.i.l.bf16 %v7123_v41 }
 0x269   : > { %v4355_v39 = vunpack.i.h.bf16 %v4353_v59  ;;  %v4354_v12 = vunpack.i.l.bf16 %v4353_v59 }
 0x26a   : > { %v2432_v57 = vsel %vm686_vm7, %v2431_v63, %v4349_v37  ;;  %v2439_v47 = vsel %vm686_vm7, %v2438_v34, %v4350_v15  ;;  %v3477_v63 = vld [vmem:[%s7282_s2] sm:$0x3]  ;;  %v7674_v34 = vld [vmem:[#allocation34_spill] sm:$0xff] }
 0x26b   : > { %v2785_v62 = vsel %vm690_vm9, %v2784_v22, %v4354_v12  ;;  %v2792_v1 = vsel %vm690_vm9, %v2791_v21, %v4355_v39  ;;  %v4345_v12 = vunpack.i.h.bf16 %v7103_v23 }
 0x26c   : > { %3491 = vmatpush.msra.mxu0 %v2785_v62  ;;  %3511 = vmatpush.msra.mxu1 %v2792_v1  ;;  %v7165_v11 = vpop.permute.xlu2 %4382  ;;  %v1751_v62 = vsel %vm678_vm3, %v1673_v19, %v7113_v33  ;;  %v2088_v1 = vsel %vm682_vm5, %v2087_v25, %v4344_v7 }
 0x26d   : > { %v1752_v42 = vsel %vm680_vm4, %v1751_v62, %v7111_v56  ;;  %v4385_v18 = vunpack.i.h.bf16 %v7165_v11  ;;  %v4384_v58 = vunpack.i.l.bf16 %v7165_v11 }
 0x26e   : > { %v1753_v37 = vsel %vm682_vm5, %v1752_v42, %v4370_v5 }
 0x26f   : > { %v7141_v14 = vpop.permute.xlu0 %4357  ;;  %v1747_v46 = vsel %vm684_vm6, %v1746_v45, %v4384_v58  ;;  %v1754_v17 = vsel %vm684_vm6, %v1753_v37, %v4385_v18  ;;  %v3579_v45 = vld [vmem:[%s359_s16] sm:$0x3] }
 0x270   : > { %v4363_v27 = vpop.permute.xlu1 %4362  ;;  %v4360_v49 = vunpack.i.h.bf16 %v7141_v14  ;;  %v4359_v41 = vunpack.i.l.bf16 %v7141_v14  ;;  %v2095_v14 = vsel %vm682_vm5, %v2094_v29, %v4345_v12 }
 0x271   : > { %v4365_v61 = vunpack.i.h.bf16 %v4363_v27  ;;  %v4364_v16 = vunpack.i.l.bf16 %v4363_v27 }
 0x272   : > { %v2089_v24 = vsel %vm684_vm6, %v2088_v1, %v4359_v41  ;;  %v2096_v27 = vsel %vm684_vm6, %v2095_v14, %v4360_v49  ;;  %v4480_v49 = vmov 256.0  }
 0x273   : > { %v2433_v53 = vsel %vm688_vm8, %v2432_v57, %v4364_v16  ;;  %v2440_v20 = vsel %vm688_vm8, %v2439_v47, %v4365_v61  ;;  %4414 = vrcp.f32 %v4480_v49 }
 0x275   : > { %v4398_v21 = vpop.permute.xlu2 %4397 }
 0x276   : > { %v4400_v0 = vunpack.i.h.bf16 %v4398_v21  ;;  %v4399_v3 = vunpack.i.l.bf16 %v4398_v21 }
 0x278   : > { %v4373_v30 = vpop.permute.xlu0 %4372  ;;  %v4378_v60 = vpop.permute.xlu1 %4377 }
 0x279   : > { %v4380_v54 = vunpack.i.h.bf16 %v4378_v60  ;;  %v4379_v26 = vunpack.i.l.bf16 %v4378_v60  ;;  %v4375_v38 = vunpack.i.h.bf16 %v4373_v30  ;;  %v4374_v22 = vunpack.i.l.bf16 %v4373_v30  ;;  %v4415_v41 = vpop.eup %4414 }
 0x27a   : > { %vm3547_vm12 = vweird.f32 %v4415_v41 }
 0x27b   : > { %v2434_v59 = vsel %vm690_vm9, %v2433_v53, %v4379_v26  ;;  %v2441_v39 = vsel %vm690_vm9, %v2440_v20, %v4380_v54  ;;  %v2090_v55 = vsel %vm686_vm7, %v2089_v24, %v4374_v22  ;;  %v2097_v36 = vsel %vm686_vm7, %v2096_v27, %v4375_v38  ;;  %v7675_v54 = vld [vmem:[#allocation37_spill] sm:$0xff] }
 0x27c   : > { %3492 = vmatpush.msra.mxu0 %v2434_v59  ;;  %3512 = vmatpush.msra.mxu1 %v2441_v39  ;;  %v3543_v59 = vmul.f32 256.0, %v4415_v41 }
 0x27e   : > { %v3544_v39 = vsub.f32 1.0, %v3543_v59 }
 0x280   : > { %v3545_v12 = vmul.f32 %v4415_v41, %v3544_v39 }
 0x281   : > { %v4393_v8 = vpop.permute.xlu1 %4392 }
 0x282   : > { %v4388_v35 = vpop.permute.xlu0 %4387  ;;  %v4395_v10 = vunpack.i.h.bf16 %v4393_v8  ;;  %v4394_v15 = vunpack.i.l.bf16 %v4393_v8  ;;  %v3546_v7 = vadd.f32 %v4415_v41, %v3545_v12 }
 0x283   : > { %v4390_v44 = vunpack.i.h.bf16 %v4388_v35  ;;  %v4389_v23 = vunpack.i.l.bf16 %v4388_v35 }
 0x284   : > { %v1748_v30 = vsel %vm686_vm7, %v1747_v46, %v4394_v15  ;;  %v1755_v11 = vsel %vm686_vm7, %v1754_v17, %v4395_v10  ;;  %v3548_v38 = vsel %vm3547_vm12, %v4415_v41, %v3546_v7  ;;  %v3587_v46 = vld [vmem:[%s363_s19] sm:$0x3] }
 0x285   : > { %v2091_v33 = vsel %vm688_vm8, %v2090_v55, %v4389_v23  ;;  %v2098_v52 = vsel %vm688_vm8, %v2097_v36, %v4390_v44  ;;  %v4481_v23 = vmov 255.0  }
 0x286   : > { %v2092_v32 = vsel %vm690_vm9, %v2091_v33, %v4399_v3  ;;  %v2099_v13 = vsel %vm690_vm9, %v2098_v52, %v4400_v0  ;;  %4416 = vrcp.f32 %v4481_v23 }
 0x287   : > { %3493 = vmatpush.msra.mxu0 %v2092_v32  ;;  %3513 = vmatpush.msra.mxu1 %v2099_v13 }
 0x28a   : > { %v4403_v28 = vpop.permute.xlu0 %4402 }
 0x28b   : > { %v4405_v61 = vunpack.i.h.bf16 %v4403_v28  ;;  %v4404_v56 = vunpack.i.l.bf16 %v4403_v28  ;;  %v4408_v16 = vpop.permute.xlu1 %4407 }
 0x28c   : > { %v4410_v6 = vunpack.i.h.bf16 %v4408_v16  ;;  %v4409_v9 = vunpack.i.l.bf16 %v4408_v16  ;;  %v4417_v0 = vpop.eup %4416 }
 0x28d   : > { %v1749_v19 = vsel %vm688_vm8, %v1748_v30, %v4404_v56  ;;  %v1756_v2 = vsel %vm688_vm8, %v1755_v11, %v4405_v61  ;;  %v3560_v3 = vmul.f32 255.0, %v4417_v0  ;;  %vm3564_vm13 = vweird.f32 %v4417_v0 }
 0x28e   : > { %v1750_v31 = vsel %vm690_vm9, %v1749_v19, %v4409_v9  ;;  %v1757_v60 = vsel %vm690_vm9, %v1756_v2, %v4410_v6 }
 0x28f   : > { %3494 = vmatpush.msra.mxu0 %v1750_v31  ;;  %3514 = vmatpush.msra.mxu1 %v1757_v60  ;;  %v3561_v8 = vsub.f32 1.0, %v3560_v3 }
 0x291   : > { %3495 = vmatpush.msra.mxu0 %v7011_v40  ;;  %3515 = vmatpush.msra.mxu1 %v7019_v4  ;;  %v3562_v55 = vmul.f32 %v4417_v0, %v3561_v8 }
 0x293   : > { %3496 = vmatpush.msra.mxu0 %v7022_v50  ;;  %3516 = vmatpush.msra.mxu1 %v7026_v48  ;;  %v3563_v36 = vadd.f32 %v4417_v0, %v3562_v55 }
 0x295   : > { %3497 = vmatpush.msra.mxu0 %v7674_v34  ;;  %3517 = vmatpush.msra.mxu1 %v7675_v54  ;;  %v3565_v33 = vsel %vm3564_vm13, %v4417_v0, %v3563_v36 }
 0x296   : > { %3804 = vmatmul.msk.f32.vlgmr.msra.gmra.mxu0 %vm3478_vm10, %v3477_v63  ;;  %3805 = vmatmul.msk.f32.vlgmr.msra.gmra.mxu1 %vm3478_vm10, %v3477_v63 }
 0x2b2   : > { %v3526_v26 = vpop.permute.xlu2 %3525 }
 0x2ce   : > { %v3532_v57 = vpop.permute.xlu0 %3531 }
 0x313   : > { %v3499_v40 = vpop.f32.mrf.mxu0  ;;  %v3519_v47 = vpop.f32.mrf.mxu1 }
 0x314   : > { %v3528_v4 = vmul.f32 %v3526_v26, %v3499_v40  ;;  %v3529_v25 = vmul.f32 %v3526_v26, %v3519_v47 }
 0x316   : > { %v7235_v50 = vadd.f32 %v3532_v57, %v3528_v4  ;;  %v7237_v48 = vadd.f32 %v3532_v57, %v3529_v25  ;;  %v3623_v4 = vld.sshfl [vmem:[#allocation1] sm:$0xff pattern:$0x73625140]  ;;  %v3624_v25 = vld.sshfl [vmem:[#allocation1 + $0x8] sm:$0xff pattern:$0x73625140] }
 0x318   : > { %v3537_v29 = vsel %vm3536_vm11, %v7235_v50, 0.0  ;;  %v3538_v53 = vsel %vm3536_vm11, %v7237_v48, 0.0 }
 0x319   : > { %v3539_v20 = vadd.f32 %v3538_v53, %v3537_v29 }
 0x31b   : > { %3540 = vadd.xlane.f32.xlu1 %v3539_v20 }
 0x38e   : > { %v3541_v22 = vpop.xlane.xlu1 %3540 }
 0x38f   : > { %v3549_v21 = vmul.f32 %v3548_v38, %v3541_v22 }
 0x391   : > { %v3550_v62 = vsub.f32 %v7235_v50, %v3549_v21  ;;  %v3551_v1 = vsub.f32 %v7237_v48, %v3549_v21  ;;  %v3580_v61 = vmul.f32 %v3579_v45, %v3549_v21 }
 0x393   : > { %v3552_v14 = vmul.f32 %v3550_v62, %v3550_v62  ;;  %v3553_v35 = vmul.f32 %v3551_v1, %v3551_v1 }
 0x395   : > { %v3554_v24 = vsel %vm3536_vm11, %v3552_v14, 0.0  ;;  %v3555_v27 = vsel %vm3536_vm11, %v3553_v35, 0.0 }
 0x396   : > { %v3556_v44 = vadd.f32 %v3555_v27, %v3554_v24 }
 0x398   : > { %3557 = vadd.xlane.f32.xlu2 %v3556_v44 }
 0x40b   : > { %v3558_v52 = vpop.xlane.xlu2 %3557 }
 0x40c   : > { %v3566_v5 = vmul.f32 %v3565_v33, %v3558_v52 }
 0x40e   : > { %4418 = vrsqrt.f32 %v3566_v5  ;;  %vm3574_vm14 = vcmp.eq.f32.partialorder %v3566_v5, inf  ;;  %v3577_v15 = vand.u32 2147483648, %v3566_v5  ;;  %vm3576_vm15 = vcmp.eq.f32.partialorder %v3566_v5, 0.0 }
 0x414   : > { %v4419_v51 = vpop.eup %4418 }
 0x415   : > { %v3568_v32 = vmul.f32 %v4419_v51, %v3566_v5 }
 0x417   : > { %v3569_v13 = vmul.f32 %v4419_v51, %v3568_v32 }
 0x419   : > { %v3570_v42 = vmul.f32 0.5, %v3569_v13 }
 0x41b   : > { %v3571_v18 = vsub.f32 1.5, %v3570_v42 }
 0x41d   : > { %v3572_v58 = vmul.f32 %v4419_v51, %v3571_v18 }
 0x41f   : > { %v3573_v10 = vmul.f32 %v3572_v58, %v3566_v5 }
 0x421   : > { %v3575_v37 = vsel %vm3574_vm14, %v3566_v5, %v3573_v10 }
 0x422   : > { %v3578_v43 = vsel %vm3576_vm15, %v3577_v15, %v3575_v37 }
 0x423   : > { %v3581_v28 = vmul.f32 %v3579_v45, %v3578_v43 }
 0x425   : > { %3583 = vrot.lane.b32.xlu0 %v3581_v28, %s4469_s11 }
 0x42d   : > { %3590 = vrot.lane.b32.xlu0 %v3587_v46, %s4469_s11 }
 0x497   : > { %v3584_v17 = vpop.permute.xlu0 %3583 }
 0x498   : > { %v3586_v56 = vadd.f32 %v3584_v17, %v3580_v61 }
 0x49a   : > { %v3588_v16 = vmul.f32 %v3587_v46, %v3586_v56 }
 0x49f   : > { %v3591_v30 = vpop.permute.xlu0 %3590 }
 0x4a0   : > { %v3593_v11 = vadd.f32 %v3591_v30, %v3588_v16 }
 0x4a2   : > { %v3806_v6 = vmul.f32 -1.442695, %v3593_v11 }
 0x4a4   : > { %4420 = vpow2.f32 %v3806_v6 }
 0x4aa   : > { %v4421_v9 = vpop.eup %4420 }
 0x4ab   : > { %v3597_v19 = vadd.f32 1.0, %v4421_v9 }
 0x4ad   : > { %4422 = vrcp.f32 %v3597_v19  ;;  %v3609_v63 = vand.u32 2147483648, %v3597_v19  ;;  %v3607_v54 = vand.u32 2147483647, %v3597_v19  ;;  %vm3603_vm1 = vweird.f32 %v3597_v19 }
 0x4af   : > { %v3610_v57 = vor.u32 1.1754944e-38, %v3609_v63  ;;  %vm3608_vm3 = vcmp.eq.f32.partialorder %v3607_v54, 8.507059e+37 }
 0x4b3   : > { %v4423_v2 = vpop.eup %4422 }
 0x4b4   : > { %v3599_v31 = vmul.f32 %v4423_v2, %v3597_v19  ;;  %vm3604_vm0 = vweird.f32 %v4423_v2 }
 0x4b5   : > { %vm3605_vm2 = vmor %vm3603_vm1, %vm3604_vm0 }
 0x4b6   : > { %v3600_v60 = vsub.f32 1.0, %v3599_v31 }
 0x4b8   : > { %v3601_v34 = vmul.f32 %v4423_v2, %v3600_v60 }
 0x4ba   : > { %v3602_v26 = vadd.f32 %v4423_v2, %v3601_v34 }
 0x4bc   : > { %v3606_v40 = vsel %vm3605_vm2, %v4423_v2, %v3602_v26 }
 0x4bd   : > { %v3611_v47 = vsel %vm3608_vm3, %v3610_v57, %v3606_v40 }
 0x4be   : > { %3615 = vperm.xlu0 %4413, %v3611_v47  }
 0x530   : > { %v3616_v29 = vpop.permute.xlu0 %3615 }
 0x531   : > { %v3618_v53 = vmul.f32 %v3616_v29, %v7235_v50  ;;  %v3619_v20 = vmul.f32 %v3616_v29, %v7237_v48 }
 0x533   : > { %v3627_v49 = vadd.f32 %v3623_v4, %v3618_v53  ;;  %v3628_v41 = vadd.f32 %v3624_v25, %v3619_v20 }
 0x535   : > { %v3630_v59 = vmax.f32 %v3628_v41, 0.0  ;;  %v3629_v39 = vmax.f32 %v3627_v49, 0.0 }
 0x537   : > { %v3633_v12 = vrot.slane %v3630_v59, 6 }
 0x539   : > { %v3634_v7 = vsel %vm3536_vm11, %v3629_v39, %v3633_v12 }
 0x53a   : > { %3636 = vst [vmem:[%s372_s28] sm:$0xf] %v3634_v7 }
 0x53b PF: > { %s16_s25 = sadd.s32 1, %s4465_s25   ;;  %s7676_s21 = smov %s4457_s23 }
 0x53c   : > { %p13_p7 = scmp.ge.s32.totalorder %s16_s25, 10   ;;  %s7677_s22 = smov %s4461_s24 }
 0x53d   : > { %s7678_s23 = smov %s7681_s26  ;;  %s7679_s24 = smov %s7685_s27 }
 0x53e   :  { %15 = sbr.rel (!%p13_p7) target bundleno = 3 (0x3), region = 86 }

</bundles_post_ra>
